<compile_context>
chip_gen: v7x
topology: tpu7x:2x2x1
jax: 0.10.0
libtpu: 0.0.40
codegen_flags: <defaults>
</compile_context>

<pallas_src>
import functools

import jax
import jax.numpy as jnp
import numpy as np
from jax import lax
from jax.experimental import pallas as pl
from jax.experimental.pallas import tpu as pltpu


# ------------------------------ fused kernel ------------------------------

def _encoder1_kernel(p1_ref, w1_ref, b1_ref, w2_ref, b2_ref, w3_ref, b3_ref,
                     w4_ref, b4_ref, o_ref,
                     pad2, col2, pad3, col3, pad4, col4,
                     *, bb, oh1, ow1):
    k1p = w1_ref.shape[0]
    oh2, ow2 = oh1 // 2, ow1 // 2
    oh3, ow3 = oh2 // 2, ow2 // 2
    oh4, ow4 = oh3 // 2, ow3 // 2

    # ---- stage 1: conv1 (7x7, s4, p3) as one MXU dot on host-built patches ----
    p1 = p1_ref[...].reshape(bb * oh1 * ow1, k1p)          # leading-dim collapse
    a1 = jnp.dot(p1, w1_ref[...], preferred_element_type=jnp.float32)
    a1 = jnp.maximum(a1 + b1_ref[...], 0.0)                # (bb*oh1*ow1, 32) f32

    def conv3x3(a, pad, col, w_ref, b_ref, h, w, cin):
        """3x3 / s1 / p1 conv + bias + ReLU as ONE deep-K MXU dot.

        a:   (bb*h*w, cin) f32 input activations (row-major over (b, y, x)).
        pad: (bb, h+2, w+2, cin) bf16 scratch (zero border written here).
        col: (bb*h*w, 9*cin) bf16 im2col scratch.
        Returns (bb*h*w, cout) f32.
        """
        # zero only the border strips; interior is fully overwritten below
        zrow = jnp.zeros((bb, 1, w + 2, cin), jnp.bfloat16)
        zcol = jnp.zeros((bb, h, 1, cin), jnp.bfloat16)
        pad[:, 0:1, :, :] = zrow
        pad[:, h + 1:h + 2, :, :] = zrow
        pad[:, 1:h + 1, 0:1, :] = zcol
        pad[:, 1:h + 1, w + 1:w + 2, :] = zcol
        # single f32 -> bf16 cast per element, fused into the scratch write
        pad[:, 1:h + 1, 1:w + 1, :] = a.reshape(bb, h, w, cin).astype(jnp.bfloat16)
        # write each of the 9 shifted taps once into the fused im2col scratch
        for i in range(3):
            for j in range(3):
                t = (i * 3 + j) * cin
                col[:, t:t + cin] = pad[:, i:i + h, j:j + w, :].reshape(bb * h * w, cin)
        out = jnp.dot(col[...], w_ref[...], preferred_element_type=jnp.float32)
        return jnp.maximum(out + b_ref[...], 0.0)

    def pool2x2(a, h, w, c, kind):
        """2x2 / stride 2 pool of (bb*h*w, c) f32 -> (bb*(h//2)*(w//2), c) f32."""
        ho, wo = h // 2, w // 2
        # vertical pairing via leading-dim split (layout-free), halves the data
        y = a.reshape(bb * ho, 2, w, c)
        v = jnp.maximum(y[:, 0], y[:, 1]) if kind == "max" else y[:, 0] + y[:, 1]
        # horizontal pairing on the (already halved) rows
        v = v.reshape(bb * ho * wo, 2, c)
        if kind == "max":
            return jnp.maximum(v[:, 0], v[:, 1])
        return (v[:, 0] + v[:, 1]) * 0.25

    # ---- stage 2: conv2 + ReLU + 2x2 maxpool ----
    a2 = conv3x3(a1, pad2, col2, w2_ref, b2_ref, oh1, ow1, 32)
    x2 = pool2x2(a2, oh1, ow1, 64, "max")                  # (bb*oh2*ow2, 64)
    # ---- stage 3: conv3 + ReLU + 2x2 maxpool ----
    a3 = conv3x3(x2, pad3, col3, w3_ref, b3_ref, oh2, ow2, 64)
    x3 = pool2x2(a3, oh2, ow2, 128, "max")                 # (bb*oh3*ow3, 128)
    # ---- stage 4: conv4 + ReLU + 2x2 avgpool ----
    a4 = conv3x3(x3, pad4, col4, w4_ref, b4_ref, oh3, ow3, 128)
    x4 = pool2x2(a4, oh3, ow3, 128, "avg")                 # (bb*oh4*ow4, 128)

    # 128-lane-dense output store
    o_ref[...] = x4.reshape(bb, oh4 * ow4, 128)


# ------------------------------ host-side wrapper ------------------------------

def encoder1_forward(x_nchw, params):
    x = x_nchw.astype(jnp.float32)
    n = x.shape[0]

    # conv1 patches via a single fused XLA op; output layout (N, oh1, ow1, C*7*7)
    # with patch-channel ordering "chw" (input channel major, then kh, then kw).
    patches = lax.conv_general_dilated_patches(
        x, filter_shape=(7, 7), window_strides=(4, 4),
        padding=((3, 3), (3, 3)),
        dimension_numbers=("NCHW", "OIHW", "NHWC"))
    _, oh1, ow1, k1 = patches.shape                        # k1 = 3*7*7 = 147
    assert oh1 % 8 == 0 and ow1 % 8 == 0, "spatial size must survive three 2x2 pools"

    k1p = 256                                              # pad K 147 -> 256 (lane-dense)
    patches = jnp.pad(patches, ((0, 0), (0, 0), (0, 0), (0, k1p - k1)))
    p1 = patches.reshape(n, oh1 * ow1, k1p).astype(jnp.bfloat16)

    # batch blocking: whole batch per grid step for small batches, capped at 8
    # (per-image VMEM footprint is tiny; cap keeps v7x's 64 MiB VMEM comfortable)
    bb = n if n <= 8 else 8
    n_pad = ((n + bb - 1) // bb) * bb
    if n_pad != n:
        p1 = jnp.pad(p1, ((0, n_pad - n), (0, 0), (0, 0)))

    oh2, ow2 = oh1 // 2, ow1 // 2
    oh3, ow3 = oh2 // 2, ow2 // 2
    oh4, ow4 = oh3 // 2, ow3 // 2

    # weights flattened to match the im2col K orderings, bf16 for the MXU
    def prep3x3(w):                                        # (O,I,3,3) -> (9*I, O), (kh,kw,cin) major->minor
        o, i, kh, kw = w.shape
        return jnp.transpose(w, (2, 3, 1, 0)).reshape(kh * kw * i, o).astype(jnp.bfloat16)

    w1m = jnp.transpose(params["w1"], (1, 2, 3, 0)).reshape(k1, 32)   # (cin,kh,kw) major->minor
    w1m = jnp.pad(w1m, ((0, k1p - k1), (0, 0))).astype(jnp.bfloat16)
    w2m, w3m, w4m = prep3x3(params["w2"]), prep3x3(params["w3"]), prep3x3(params["w4"])
    b1 = params["b1"].reshape(1, -1).astype(jnp.float32)
    b2 = params["b2"].reshape(1, -1).astype(jnp.float32)
    b3 = params["b3"].reshape(1, -1).astype(jnp.float32)
    b4 = params["b4"].reshape(1, -1).astype(jnp.float32)

    kernel = functools.partial(_encoder1_kernel, bb=bb, oh1=oh1, ow1=ow1)

    out = pl.pallas_call(
        kernel,
        out_shape=jax.ShapeDtypeStruct((n_pad, oh4 * ow4, 128), jnp.float32),
        grid=(n_pad // bb,),
        in_specs=[
            pl.BlockSpec((bb, oh1 * ow1, k1p), lambda b: (b, 0, 0)),   # conv1 patches
            pl.BlockSpec((k1p, 32), lambda b: (0, 0)),                 # w1
            pl.BlockSpec((1, 32), lambda b: (0, 0)),                   # b1
            pl.BlockSpec((9 * 32, 64), lambda b: (0, 0)),              # w2
            pl.BlockSpec((1, 64), lambda b: (0, 0)),                   # b2
            pl.BlockSpec((9 * 64, 128), lambda b: (0, 0)),             # w3
            pl.BlockSpec((1, 128), lambda b: (0, 0)),                  # b3
            pl.BlockSpec((9 * 128, 128), lambda b: (0, 0)),            # w4
            pl.BlockSpec((1, 128), lambda b: (0, 0)),                  # b4
        ],
        out_specs=pl.BlockSpec((bb, oh4 * ow4, 128), lambda b: (b, 0, 0)),
        scratch_shapes=[
            pltpu.VMEM((bb, oh1 + 2, ow1 + 2, 32), jnp.bfloat16),      # conv2 padded input
            pltpu.VMEM((bb * oh1 * ow1, 9 * 32), jnp.bfloat16),        # conv2 im2col
            pltpu.VMEM((bb, oh2 + 2, ow2 + 2, 64), jnp.bfloat16),      # conv3 padded input
            pltpu.VMEM((bb * oh2 * ow2, 9 * 64), jnp.bfloat16),        # conv3 im2col
            pltpu.VMEM((bb, oh3 + 2, ow3 + 2, 128), jnp.bfloat16),     # conv4 padded input
            pltpu.VMEM((bb * oh3 * ow3, 9 * 128), jnp.bfloat16),       # conv4 im2col
        ],
        compiler_params=pltpu.CompilerParams(
            dimension_semantics=("parallel",),            # batch blocks across TCs
            vmem_limit_bytes=32 * 1024 * 1024),
    )(p1, w1m, b1, w2m, b2, w3m, b3, w4m, b4)

    out = out[:n].reshape(n, oh4, ow4, 128)
    return jnp.transpose(out, (0, 3, 1, 2))                # NHWC -> NCHW


# ------------------------------ pure-JAX reference ------------------------------

def _ref_forward(x, params):
    def conv(x, w, b, stride, pad):
        y = lax.conv_general_dilated(
            x, w, (stride, stride), [(pad, pad), (pad, pad)],
            dimension_numbers=("NCHW", "OIHW", "NCHW"))
        return jnp.maximum(y + b[None, :, None, None], 0.0)

    def pool(x, kind):
        n, c, h, w = x.shape
        xr = x.reshape(n, c, h // 2, 2, w // 2, 2)
        return xr.max(axis=(3, 5)) if kind == "max" else xr.mean(axis=(3, 5))

    x = conv(x, params["w1"], params["b1"], 4, 3)
    x = conv(x, params["w2"], params["b2"], 1, 1)
    x = pool(x, "max")
    x = conv(x, params["w3"], params["b3"], 1, 1)
    x = pool(x, "max")
    x = conv(x, params["w4"], params["b4"], 1, 1)
    x = pool(x, "avg")
    return x


# ------------------------------ main ------------------------------

if __name__ == "__main__":
    key = jax.random.PRNGKey(0)
    ks = jax.random.split(key, 9)

    def w_init(k, shape):
        fan_in = shape[1] * shape[2] * shape[3]
        return jax.random.normal(k, shape, jnp.float32) * np.float32(
            np.sqrt(2.0 / fan_in))

    params = {
        "w1": w_init(ks[0], (32, 3, 7, 7)),
        "b1": jax.random.normal(ks[1], (32,), jnp.float32) * 0.01,
        "w2": w_init(ks[2], (64, 32, 3, 3)),
        "b2": jax.random.normal(ks[3], (64,), jnp.float32) * 0.01,
        "w3": w_init(ks[4], (128, 64, 3, 3)),
        "b3": jax.random.normal(ks[5], (128,), jnp.float32) * 0.01,
        "w4": w_init(ks[6], (128, 128, 3, 3)),
        "b4": jax.random.normal(ks[7], (128,), jnp.float32) * 0.01,
    }

    # small input consistent with the forward pass: 32x32 -> (2, 128, 1, 1)
    x = jax.random.normal(ks[8], (2, 3, 32, 32), jnp.float32)

    fwd = jax.jit(encoder1_forward)
    out = jax.block_until_ready(fwd(x, params))
    ref = jax.block_until_ready(_ref_forward(x, params))

    assert out.shape == (2, 128, 1, 1), out.shape
    assert np.all(np.isfinite(np.asarray(out)))
    # tolerance accounts for bf16 MXU operands (f32 accumulation) vs f32 reference
    assert np.allclose(np.asarray(out), np.asarray(ref), rtol=5e-2, atol=5e-2)
    print("KERNEL_OK")
</pallas_src>

<mosaic_0001>
module attributes {stable_mosaic.version = 11 : i64} {
  func.func @_encoder1_kernel(%arg0: i32, %arg1: memref<2x64x256xbf16, #tpu.memory_space<vmem>>, %arg2: memref<256x32xbf16, #tpu.memory_space<vmem>>, %arg3: memref<1x32xf32, #tpu.memory_space<vmem>>, %arg4: memref<288x64xbf16, #tpu.memory_space<vmem>>, %arg5: memref<1x64xf32, #tpu.memory_space<vmem>>, %arg6: memref<576x128xbf16, #tpu.memory_space<vmem>>, %arg7: memref<1x128xf32, #tpu.memory_space<vmem>>, %arg8: memref<1152x128xbf16, #tpu.memory_space<vmem>>, %arg9: memref<1x128xf32, #tpu.memory_space<vmem>>, %arg10: memref<2x1x128xf32, #tpu.memory_space<vmem>>, %arg11: memref<2x10x10x32xbf16, #tpu.memory_space<vmem>>, %arg12: memref<128x288xbf16, #tpu.memory_space<vmem>>, %arg13: memref<2x6x6x64xbf16, #tpu.memory_space<vmem>>, %arg14: memref<32x576xbf16, #tpu.memory_space<vmem>>, %arg15: memref<2x4x4x128xbf16, #tpu.memory_space<vmem>>, %arg16: memref<8x1152xbf16, #tpu.memory_space<vmem>>) attributes {dimension_semantics = [#tpu.dimension_semantics<parallel>], iteration_bounds = array<i64: 1>, scalar_prefetch = 0 : i64, scratch_operands = 6 : i64, tpu.core_type = #tpu.core_type<tc>, window_params = [{transform_indices = @transform_0, window_bounds = array<i64: 2, 64, 256>}, {pipeline_mode = #tpu.pipeline_mode<synchronous>, transform_indices = @transform_1, window_bounds = array<i64: 256, 32>}, {pipeline_mode = #tpu.pipeline_mode<synchronous>, transform_indices = @transform_2, window_bounds = array<i64: 1, 32>}, {pipeline_mode = #tpu.pipeline_mode<synchronous>, transform_indices = @transform_3, window_bounds = array<i64: 288, 64>}, {pipeline_mode = #tpu.pipeline_mode<synchronous>, transform_indices = @transform_4, window_bounds = array<i64: 1, 64>}, {pipeline_mode = #tpu.pipeline_mode<synchronous>, transform_indices = @transform_5, window_bounds = array<i64: 576, 128>}, {pipeline_mode = #tpu.pipeline_mode<synchronous>, transform_indices = @transform_6, window_bounds = array<i64: 1, 128>}, {pipeline_mode = #tpu.pipeline_mode<synchronous>, transform_indices = @transform_7, window_bounds = array<i64: 1152, 128>}, {pipeline_mode = #tpu.pipeline_mode<synchronous>, transform_indices = @transform_8, window_bounds = array<i64: 1, 128>}, {transform_indices = @transform_9, window_bounds = array<i64: 2, 1, 128>}]} {
    %c0 = arith.constant 0 : index
    %c0_0 = arith.constant 0 : index
    %c0_1 = arith.constant 0 : index
    %0 = vector.load %arg1[%c0, %c0_0, %c0_1] : memref<2x64x256xbf16, #tpu.memory_space<vmem>>, vector<2x64x256xbf16>
    %1 = vector.shape_cast %0 : vector<2x64x256xbf16> to vector<128x256xbf16>
    %c0_2 = arith.constant 0 : index
    %c0_3 = arith.constant 0 : index
    %2 = vector.load %arg2[%c0_2, %c0_3] : memref<256x32xbf16, #tpu.memory_space<vmem>>, vector<256x32xbf16>
    %cst = arith.constant dense<0.000000e+00> : vector<128x32xf32>
    %3 = tpu.matmul %1, %2, %cst {dimension_numbers = #tpu.dot_dimension_numbers<[1], [0], [0], [1], [0, 0, 1, 1], [], []>} : vector<128x256xbf16>, vector<256x32xbf16>, vector<128x32xf32> -> vector<128x32xf32>
    %c0_4 = arith.constant 0 : index
    %c0_5 = arith.constant 0 : index
    %4 = vector.load %arg3[%c0_4, %c0_5] : memref<1x32xf32, #tpu.memory_space<vmem>>, vector<1x32xf32>
    %5 = vector.broadcast %4 : vector<1x32xf32> to vector<128x32xf32>
    %6 = arith.addf %3, %5 : vector<128x32xf32>
    %cst_6 = arith.constant 0.000000e+00 : f32
    %7 = vector.broadcast %cst_6 : f32 to vector<128x32xf32>
    %8 = arith.maximumf %6, %7 : vector<128x32xf32>
    %cst_7 = arith.constant 0.000000e+00 : bf16
    %9 = vector.broadcast %cst_7 : bf16 to vector<2x1x10x32xbf16>
    %cst_8 = arith.constant 0.000000e+00 : bf16
    %10 = vector.broadcast %cst_8 : bf16 to vector<2x8x1x32xbf16>
    %c0_9 = arith.constant 0 : index
    %c0_10 = arith.constant 0 : index
    %c0_11 = arith.constant 0 : index
    %c0_12 = arith.constant 0 : index
    %11 = vector.load %arg11[%c0_9, %c0_10, %c0_11, %c0_12] : memref<2x10x10x32xbf16, #tpu.memory_space<vmem>>, vector<2x1x10x32xbf16>
    tpu.vector_store %arg11[%c0_9, %c0_10, %c0_11, %c0_12], %9 {strides = array<i32>} : memref<2x10x10x32xbf16, #tpu.memory_space<vmem>>, vector<2x1x10x32xbf16>,
    %c0_13 = arith.constant 0 : index
    %c9 = arith.constant 9 : index
    %c0_14 = arith.constant 0 : index
    %c0_15 = arith.constant 0 : index
    %12 = vector.load %arg11[%c0_13, %c9, %c0_14, %c0_15] : memref<2x10x10x32xbf16, #tpu.memory_space<vmem>>, vector<2x1x10x32xbf16>
    tpu.vector_store %arg11[%c0_13, %c9, %c0_14, %c0_15], %9 {strides = array<i32>} : memref<2x10x10x32xbf16, #tpu.memory_space<vmem>>, vector<2x1x10x32xbf16>,
    %c0_16 = arith.constant 0 : index
    %c1 = arith.constant 1 : index
    %c0_17 = arith.constant 0 : index
    %c0_18 = arith.constant 0 : index
    %13 = vector.load %arg11[%c0_16, %c1, %c0_17, %c0_18] : memref<2x10x10x32xbf16, #tpu.memory_space<vmem>>, vector<2x8x1x32xbf16>
    tpu.vector_store %arg11[%c0_16, %c1, %c0_17, %c0_18], %10 {strides = array<i32>} : memref<2x10x10x32xbf16, #tpu.memory_space<vmem>>, vector<2x8x1x32xbf16>,
    %c0_19 = arith.constant 0 : index
    %c1_20 = arith.constant 1 : index
    %c9_21 = arith.constant 9 : index
    %c0_22 = arith.constant 0 : index
    %14 = vector.load %arg11[%c0_19, %c1_20, %c9_21, %c0_22] : memref<2x10x10x32xbf16, #tpu.memory_space<vmem>>, vector<2x8x1x32xbf16>
    tpu.vector_store %arg11[%c0_19, %c1_20, %c9_21, %c0_22], %10 {strides = array<i32>} : memref<2x10x10x32xbf16, #tpu.memory_space<vmem>>, vector<2x8x1x32xbf16>,
    %15 = vector.shape_cast %8 : vector<128x32xf32> to vector<2x8x8x32xf32>
    %16 = arith.truncf %15 : vector<2x8x8x32xf32> to vector<2x8x8x32xbf16>
    %c0_23 = arith.constant 0 : index
    %c1_24 = arith.constant 1 : index
    %c1_25 = arith.constant 1 : index
    %c0_26 = arith.constant 0 : index
    %17 = vector.load %arg11[%c0_23, %c1_24, %c1_25, %c0_26] : memref<2x10x10x32xbf16, #tpu.memory_space<vmem>>, vector<2x8x8x32xbf16>
    tpu.vector_store %arg11[%c0_23, %c1_24, %c1_25, %c0_26], %16 {strides = array<i32>} : memref<2x10x10x32xbf16, #tpu.memory_space<vmem>>, vector<2x8x8x32xbf16>,
    %c0_27 = arith.constant 0 : index
    %c0_28 = arith.constant 0 : index
    %c0_29 = arith.constant 0 : index
    %c0_30 = arith.constant 0 : index
    %18 = vector.load %arg11[%c0_27, %c0_28, %c0_29, %c0_30] : memref<2x10x10x32xbf16, #tpu.memory_space<vmem>>, vector<2x8x8x32xbf16>
    %19 = vector.shape_cast %18 : vector<2x8x8x32xbf16> to vector<128x32xbf16>
    %c0_31 = arith.constant 0 : index
    %c0_32 = arith.constant 0 : index
    %20 = vector.load %arg12[%c0_31, %c0_32] : memref<128x288xbf16, #tpu.memory_space<vmem>>, vector<128x32xbf16>
    tpu.vector_store %arg12[%c0_31, %c0_32], %19 {strides = array<i32>} : memref<128x288xbf16, #tpu.memory_space<vmem>>, vector<128x32xbf16>,
    %c0_33 = arith.constant 0 : index
    %c0_34 = arith.constant 0 : index
    %c1_35 = arith.constant 1 : index
    %c0_36 = arith.constant 0 : index
    %21 = vector.load %arg11[%c0_33, %c0_34, %c1_35, %c0_36] : memref<2x10x10x32xbf16, #tpu.memory_space<vmem>>, vector<2x8x8x32xbf16>
    %22 = vector.shape_cast %21 : vector<2x8x8x32xbf16> to vector<128x32xbf16>
    %c0_37 = arith.constant 0 : index
    %c32 = arith.constant 32 : index
    %23 = vector.load %arg12[%c0_37, %c32] : memref<128x288xbf16, #tpu.memory_space<vmem>>, vector<128x32xbf16>
    tpu.vector_store %arg12[%c0_37, %c32], %22 {strides = array<i32>} : memref<128x288xbf16, #tpu.memory_space<vmem>>, vector<128x32xbf16>,
    %c0_38 = arith.constant 0 : index
    %c0_39 = arith.constant 0 : index
    %c2 = arith.constant 2 : index
    %c0_40 = arith.constant 0 : index
    %24 = vector.load %arg11[%c0_38, %c0_39, %c2, %c0_40] : memref<2x10x10x32xbf16, #tpu.memory_space<vmem>>, vector<2x8x8x32xbf16>
    %25 = vector.shape_cast %24 : vector<2x8x8x32xbf16> to vector<128x32xbf16>
    %c0_41 = arith.constant 0 : index
    %c64 = arith.constant 64 : index
    %26 = vector.load %arg12[%c0_41, %c64] : memref<128x288xbf16, #tpu.memory_space<vmem>>, vector<128x32xbf16>
    tpu.vector_store %arg12[%c0_41, %c64], %25 {strides = array<i32>} : memref<128x288xbf16, #tpu.memory_space<vmem>>, vector<128x32xbf16>,
    %c0_42 = arith.constant 0 : index
    %c1_43 = arith.constant 1 : index
    %c0_44 = arith.constant 0 : index
    %c0_45 = arith.constant 0 : index
    %27 = vector.load %arg11[%c0_42, %c1_43, %c0_44, %c0_45] : memref<2x10x10x32xbf16, #tpu.memory_space<vmem>>, vector<2x8x8x32xbf16>
    %28 = vector.shape_cast %27 : vector<2x8x8x32xbf16> to vector<128x32xbf16>
    %c0_46 = arith.constant 0 : index
    %c96 = arith.constant 96 : index
    %29 = vector.load %arg12[%c0_46, %c96] : memref<128x288xbf16, #tpu.memory_space<vmem>>, vector<128x32xbf16>
    tpu.vector_store %arg12[%c0_46, %c96], %28 {strides = array<i32>} : memref<128x288xbf16, #tpu.memory_space<vmem>>, vector<128x32xbf16>,
    %c0_47 = arith.constant 0 : index
    %c1_48 = arith.constant 1 : index
    %c1_49 = arith.constant 1 : index
    %c0_50 = arith.constant 0 : index
    %30 = vector.load %arg11[%c0_47, %c1_48, %c1_49, %c0_50] : memref<2x10x10x32xbf16, #tpu.memory_space<vmem>>, vector<2x8x8x32xbf16>
    %31 = vector.shape_cast %30 : vector<2x8x8x32xbf16> to vector<128x32xbf16>
    %c0_51 = arith.constant 0 : index
    %c128 = arith.constant 128 : index
    %32 = vector.load %arg12[%c0_51, %c128] : memref<128x288xbf16, #tpu.memory_space<vmem>>, vector<128x32xbf16>
    tpu.vector_store %arg12[%c0_51, %c128], %31 {strides = array<i32>} : memref<128x288xbf16, #tpu.memory_space<vmem>>, vector<128x32xbf16>,
    %c0_52 = arith.constant 0 : index
    %c1_53 = arith.constant 1 : index
    %c2_54 = arith.constant 2 : index
    %c0_55 = arith.constant 0 : index
    %33 = vector.load %arg11[%c0_52, %c1_53, %c2_54, %c0_55] : memref<2x10x10x32xbf16, #tpu.memory_space<vmem>>, vector<2x8x8x32xbf16>
    %34 = vector.shape_cast %33 : vector<2x8x8x32xbf16> to vector<128x32xbf16>
    %c0_56 = arith.constant 0 : index
    %c160 = arith.constant 160 : index
    %35 = vector.load %arg12[%c0_56, %c160] : memref<128x288xbf16, #tpu.memory_space<vmem>>, vector<128x32xbf16>
    tpu.vector_store %arg12[%c0_56, %c160], %34 {strides = array<i32>} : memref<128x288xbf16, #tpu.memory_space<vmem>>, vector<128x32xbf16>,
    %c0_57 = arith.constant 0 : index
    %c2_58 = arith.constant 2 : index
    %c0_59 = arith.constant 0 : index
    %c0_60 = arith.constant 0 : index
    %36 = vector.load %arg11[%c0_57, %c2_58, %c0_59, %c0_60] : memref<2x10x10x32xbf16, #tpu.memory_space<vmem>>, vector<2x8x8x32xbf16>
    %37 = vector.shape_cast %36 : vector<2x8x8x32xbf16> to vector<128x32xbf16>
    %c0_61 = arith.constant 0 : index
    %c192 = arith.constant 192 : index
    %38 = vector.load %arg12[%c0_61, %c192] : memref<128x288xbf16, #tpu.memory_space<vmem>>, vector<128x32xbf16>
    tpu.vector_store %arg12[%c0_61, %c192], %37 {strides = array<i32>} : memref<128x288xbf16, #tpu.memory_space<vmem>>, vector<128x32xbf16>,
    %c0_62 = arith.constant 0 : index
    %c2_63 = arith.constant 2 : index
    %c1_64 = arith.constant 1 : index
    %c0_65 = arith.constant 0 : index
    %39 = vector.load %arg11[%c0_62, %c2_63, %c1_64, %c0_65] : memref<2x10x10x32xbf16, #tpu.memory_space<vmem>>, vector<2x8x8x32xbf16>
    %40 = vector.shape_cast %39 : vector<2x8x8x32xbf16> to vector<128x32xbf16>
    %c0_66 = arith.constant 0 : index
    %c224 = arith.constant 224 : index
    %41 = vector.load %arg12[%c0_66, %c224] : memref<128x288xbf16, #tpu.memory_space<vmem>>, vector<128x32xbf16>
    tpu.vector_store %arg12[%c0_66, %c224], %40 {strides = array<i32>} : memref<128x288xbf16, #tpu.memory_space<vmem>>, vector<128x32xbf16>,
    %c0_67 = arith.constant 0 : index
    %c2_68 = arith.constant 2 : index
    %c2_69 = arith.constant 2 : index
    %c0_70 = arith.constant 0 : index
    %42 = vector.load %arg11[%c0_67, %c2_68, %c2_69, %c0_70] : memref<2x10x10x32xbf16, #tpu.memory_space<vmem>>, vector<2x8x8x32xbf16>
    %43 = vector.shape_cast %42 : vector<2x8x8x32xbf16> to vector<128x32xbf16>
    %c0_71 = arith.constant 0 : index
    %c256 = arith.constant 256 : index
    %44 = vector.load %arg12[%c0_71, %c256] : memref<128x288xbf16, #tpu.memory_space<vmem>>, vector<128x32xbf16>
    tpu.vector_store %arg12[%c0_71, %c256], %43 {strides = array<i32>} : memref<128x288xbf16, #tpu.memory_space<vmem>>, vector<128x32xbf16>,
    %c0_72 = arith.constant 0 : index
    %c0_73 = arith.constant 0 : index
    %45 = vector.load %arg12[%c0_72, %c0_73] : memref<128x288xbf16, #tpu.memory_space<vmem>>, vector<128x288xbf16>
    %c0_74 = arith.constant 0 : index
    %c0_75 = arith.constant 0 : index
    %46 = vector.load %arg4[%c0_74, %c0_75] : memref<288x64xbf16, #tpu.memory_space<vmem>>, vector<288x64xbf16>
    %cst_76 = arith.constant dense<0.000000e+00> : vector<128x64xf32>
    %47 = tpu.matmul %45, %46, %cst_76 {dimension_numbers = #tpu.dot_dimension_numbers<[1], [0], [0], [1], [0, 0, 1, 1], [], []>} : vector<128x288xbf16>, vector<288x64xbf16>, vector<128x64xf32> -> vector<128x64xf32>
    %c0_77 = arith.constant 0 : index
    %c0_78 = arith.constant 0 : index
    %48 = vector.load %arg5[%c0_77, %c0_78] : memref<1x64xf32, #tpu.memory_space<vmem>>, vector<1x64xf32>
    %49 = vector.broadcast %48 : vector<1x64xf32> to vector<128x64xf32>
    %50 = arith.addf %47, %49 : vector<128x64xf32>
    %cst_79 = arith.constant 0.000000e+00 : f32
    %51 = vector.broadcast %cst_79 : f32 to vector<128x64xf32>
    %52 = arith.maximumf %50, %51 : vector<128x64xf32>
    %53 = vector.shape_cast %52 : vector<128x64xf32> to vector<8x2x8x64xf32>
    %54 = vector.extract_strided_slice %53 {offsets = [0, 0, 0, 0], sizes = [8, 1, 8, 64], strides = [1, 1, 1, 1]} : vector<8x2x8x64xf32> to vector<8x1x8x64xf32>
    %55 = vector.shape_cast %54 : vector<8x1x8x64xf32> to vector<8x8x64xf32>
    %56 = vector.extract_strided_slice %53 {offsets = [0, 1, 0, 0], sizes = [8, 1, 8, 64], strides = [1, 1, 1, 1]} : vector<8x2x8x64xf32> to vector<8x1x8x64xf32>
    %57 = vector.shape_cast %56 : vector<8x1x8x64xf32> to vector<8x8x64xf32>
    %58 = arith.maximumf %55, %57 : vector<8x8x64xf32>
    %59 = vector.shape_cast %58 : vector<8x8x64xf32> to vector<32x2x64xf32>
    %60 = vector.extract_strided_slice %59 {offsets = [0, 0, 0], sizes = [32, 1, 64], strides = [1, 1, 1]} : vector<32x2x64xf32> to vector<32x1x64xf32>
    %61 = vector.shape_cast %60 : vector<32x1x64xf32> to vector<32x64xf32>
    %62 = vector.extract_strided_slice %59 {offsets = [0, 1, 0], sizes = [32, 1, 64], strides = [1, 1, 1]} : vector<32x2x64xf32> to vector<32x1x64xf32>
    %63 = vector.shape_cast %62 : vector<32x1x64xf32> to vector<32x64xf32>
    %64 = arith.maximumf %61, %63 : vector<32x64xf32>
    %cst_80 = arith.constant 0.000000e+00 : bf16
    %65 = vector.broadcast %cst_80 : bf16 to vector<2x1x6x64xbf16>
    %cst_81 = arith.constant 0.000000e+00 : bf16
    %66 = vector.broadcast %cst_81 : bf16 to vector<2x4x1x64xbf16>
    %c0_82 = arith.constant 0 : index
    %c0_83 = arith.constant 0 : index
    %c0_84 = arith.constant 0 : index
    %c0_85 = arith.constant 0 : index
    %67 = vector.load %arg13[%c0_82, %c0_83, %c0_84, %c0_85] : memref<2x6x6x64xbf16, #tpu.memory_space<vmem>>, vector<2x1x6x64xbf16>
    tpu.vector_store %arg13[%c0_82, %c0_83, %c0_84, %c0_85], %65 {strides = array<i32>} : memref<2x6x6x64xbf16, #tpu.memory_space<vmem>>, vector<2x1x6x64xbf16>,
    %c0_86 = arith.constant 0 : index
    %c5 = arith.constant 5 : index
    %c0_87 = arith.constant 0 : index
    %c0_88 = arith.constant 0 : index
    %68 = vector.load %arg13[%c0_86, %c5, %c0_87, %c0_88] : memref<2x6x6x64xbf16, #tpu.memory_space<vmem>>, vector<2x1x6x64xbf16>
    tpu.vector_store %arg13[%c0_86, %c5, %c0_87, %c0_88], %65 {strides = array<i32>} : memref<2x6x6x64xbf16, #tpu.memory_space<vmem>>, vector<2x1x6x64xbf16>,
    %c0_89 = arith.constant 0 : index
    %c1_90 = arith.constant 1 : index
    %c0_91 = arith.constant 0 : index
    %c0_92 = arith.constant 0 : index
    %69 = vector.load %arg13[%c0_89, %c1_90, %c0_91, %c0_92] : memref<2x6x6x64xbf16, #tpu.memory_space<vmem>>, vector<2x4x1x64xbf16>
    tpu.vector_store %arg13[%c0_89, %c1_90, %c0_91, %c0_92], %66 {strides = array<i32>} : memref<2x6x6x64xbf16, #tpu.memory_space<vmem>>, vector<2x4x1x64xbf16>,
    %c0_93 = arith.constant 0 : index
    %c1_94 = arith.constant 1 : index
    %c5_95 = arith.constant 5 : index
    %c0_96 = arith.constant 0 : index
    %70 = vector.load %arg13[%c0_93, %c1_94, %c5_95, %c0_96] : memref<2x6x6x64xbf16, #tpu.memory_space<vmem>>, vector<2x4x1x64xbf16>
    tpu.vector_store %arg13[%c0_93, %c1_94, %c5_95, %c0_96], %66 {strides = array<i32>} : memref<2x6x6x64xbf16, #tpu.memory_space<vmem>>, vector<2x4x1x64xbf16>,
    %71 = vector.shape_cast %64 : vector<32x64xf32> to vector<2x4x4x64xf32>
    %72 = arith.truncf %71 : vector<2x4x4x64xf32> to vector<2x4x4x64xbf16>
    %c0_97 = arith.constant 0 : index
    %c1_98 = arith.constant 1 : index
    %c1_99 = arith.constant 1 : index
    %c0_100 = arith.constant 0 : index
    %73 = vector.load %arg13[%c0_97, %c1_98, %c1_99, %c0_100] : memref<2x6x6x64xbf16, #tpu.memory_space<vmem>>, vector<2x4x4x64xbf16>
    tpu.vector_store %arg13[%c0_97, %c1_98, %c1_99, %c0_100], %72 {strides = array<i32>} : memref<2x6x6x64xbf16, #tpu.memory_space<vmem>>, vector<2x4x4x64xbf16>,
    %c0_101 = arith.constant 0 : index
    %c0_102 = arith.constant 0 : index
    %c0_103 = arith.constant 0 : index
    %c0_104 = arith.constant 0 : index
    %74 = vector.load %arg13[%c0_101, %c0_102, %c0_103, %c0_104] : memref<2x6x6x64xbf16, #tpu.memory_space<vmem>>, vector<2x4x4x64xbf16>
    %75 = vector.shape_cast %74 : vector<2x4x4x64xbf16> to vector<32x64xbf16>
    %c0_105 = arith.constant 0 : index
    %c0_106 = arith.constant 0 : index
    %76 = vector.load %arg14[%c0_105, %c0_106] : memref<32x576xbf16, #tpu.memory_space<vmem>>, vector<32x64xbf16>
    tpu.vector_store %arg14[%c0_105, %c0_106], %75 {strides = array<i32>} : memref<32x576xbf16, #tpu.memory_space<vmem>>, vector<32x64xbf16>,
    %c0_107 = arith.constant 0 : index
    %c0_108 = arith.constant 0 : index
    %c1_109 = arith.constant 1 : index
    %c0_110 = arith.constant 0 : index
    %77 = vector.load %arg13[%c0_107, %c0_108, %c1_109, %c0_110] : memref<2x6x6x64xbf16, #tpu.memory_space<vmem>>, vector<2x4x4x64xbf16>
    %78 = vector.shape_cast %77 : vector<2x4x4x64xbf16> to vector<32x64xbf16>
    %c0_111 = arith.constant 0 : index
    %c64_112 = arith.constant 64 : index
    %79 = vector.load %arg14[%c0_111, %c64_112] : memref<32x576xbf16, #tpu.memory_space<vmem>>, vector<32x64xbf16>
    tpu.vector_store %arg14[%c0_111, %c64_112], %78 {strides = array<i32>} : memref<32x576xbf16, #tpu.memory_space<vmem>>, vector<32x64xbf16>,
    %c0_113 = arith.constant 0 : index
    %c0_114 = arith.constant 0 : index
    %c2_115 = arith.constant 2 : index
    %c0_116 = arith.constant 0 : index
    %80 = vector.load %arg13[%c0_113, %c0_114, %c2_115, %c0_116] : memref<2x6x6x64xbf16, #tpu.memory_space<vmem>>, vector<2x4x4x64xbf16>
    %81 = vector.shape_cast %80 : vector<2x4x4x64xbf16> to vector<32x64xbf16>
    %c0_117 = arith.constant 0 : index
    %c128_118 = arith.constant 128 : index
    %82 = vector.load %arg14[%c0_117, %c128_118] : memref<32x576xbf16, #tpu.memory_space<vmem>>, vector<32x64xbf16>
    tpu.vector_store %arg14[%c0_117, %c128_118], %81 {strides = array<i32>} : memref<32x576xbf16, #tpu.memory_space<vmem>>, vector<32x64xbf16>,
    %c0_119 = arith.constant 0 : index
    %c1_120 = arith.constant 1 : index
    %c0_121 = arith.constant 0 : index
    %c0_122 = arith.constant 0 : index
    %83 = vector.load %arg13[%c0_119, %c1_120, %c0_121, %c0_122] : memref<2x6x6x64xbf16, #tpu.memory_space<vmem>>, vector<2x4x4x64xbf16>
    %84 = vector.shape_cast %83 : vector<2x4x4x64xbf16> to vector<32x64xbf16>
    %c0_123 = arith.constant 0 : index
    %c192_124 = arith.constant 192 : index
    %85 = vector.load %arg14[%c0_123, %c192_124] : memref<32x576xbf16, #tpu.memory_space<vmem>>, vector<32x64xbf16>
    tpu.vector_store %arg14[%c0_123, %c192_124], %84 {strides = array<i32>} : memref<32x576xbf16, #tpu.memory_space<vmem>>, vector<32x64xbf16>,
    %c0_125 = arith.constant 0 : index
    %c1_126 = arith.constant 1 : index
    %c1_127 = arith.constant 1 : index
    %c0_128 = arith.constant 0 : index
    %86 = vector.load %arg13[%c0_125, %c1_126, %c1_127, %c0_128] : memref<2x6x6x64xbf16, #tpu.memory_space<vmem>>, vector<2x4x4x64xbf16>
    %87 = vector.shape_cast %86 : vector<2x4x4x64xbf16> to vector<32x64xbf16>
    %c0_129 = arith.constant 0 : index
    %c256_130 = arith.constant 256 : index
    %88 = vector.load %arg14[%c0_129, %c256_130] : memref<32x576xbf16, #tpu.memory_space<vmem>>, vector<32x64xbf16>
    tpu.vector_store %arg14[%c0_129, %c256_130], %87 {strides = array<i32>} : memref<32x576xbf16, #tpu.memory_space<vmem>>, vector<32x64xbf16>,
    %c0_131 = arith.constant 0 : index
    %c1_132 = arith.constant 1 : index
    %c2_133 = arith.constant 2 : index
    %c0_134 = arith.constant 0 : index
    %89 = vector.load %arg13[%c0_131, %c1_132, %c2_133, %c0_134] : memref<2x6x6x64xbf16, #tpu.memory_space<vmem>>, vector<2x4x4x64xbf16>
    %90 = vector.shape_cast %89 : vector<2x4x4x64xbf16> to vector<32x64xbf16>
    %c0_135 = arith.constant 0 : index
    %c320 = arith.constant 320 : index
    %91 = vector.load %arg14[%c0_135, %c320] : memref<32x576xbf16, #tpu.memory_space<vmem>>, vector<32x64xbf16>
    tpu.vector_store %arg14[%c0_135, %c320], %90 {strides = array<i32>} : memref<32x576xbf16, #tpu.memory_space<vmem>>, vector<32x64xbf16>,
    %c0_136 = arith.constant 0 : index
    %c2_137 = arith.constant 2 : index
    %c0_138 = arith.constant 0 : index
    %c0_139 = arith.constant 0 : index
    %92 = vector.load %arg13[%c0_136, %c2_137, %c0_138, %c0_139] : memref<2x6x6x64xbf16, #tpu.memory_space<vmem>>, vector<2x4x4x64xbf16>
    %93 = vector.shape_cast %92 : vector<2x4x4x64xbf16> to vector<32x64xbf16>
    %c0_140 = arith.constant 0 : index
    %c384 = arith.constant 384 : index
    %94 = vector.load %arg14[%c0_140, %c384] : memref<32x576xbf16, #tpu.memory_space<vmem>>, vector<32x64xbf16>
    tpu.vector_store %arg14[%c0_140, %c384], %93 {strides = array<i32>} : memref<32x576xbf16, #tpu.memory_space<vmem>>, vector<32x64xbf16>,
    %c0_141 = arith.constant 0 : index
    %c2_142 = arith.constant 2 : index
    %c1_143 = arith.constant 1 : index
    %c0_144 = arith.constant 0 : index
    %95 = vector.load %arg13[%c0_141, %c2_142, %c1_143, %c0_144] : memref<2x6x6x64xbf16, #tpu.memory_space<vmem>>, vector<2x4x4x64xbf16>
    %96 = vector.shape_cast %95 : vector<2x4x4x64xbf16> to vector<32x64xbf16>
    %c0_145 = arith.constant 0 : index
    %c448 = arith.constant 448 : index
    %97 = vector.load %arg14[%c0_145, %c448] : memref<32x576xbf16, #tpu.memory_space<vmem>>, vector<32x64xbf16>
    tpu.vector_store %arg14[%c0_145, %c448], %96 {strides = array<i32>} : memref<32x576xbf16, #tpu.memory_space<vmem>>, vector<32x64xbf16>,
    %c0_146 = arith.constant 0 : index
    %c2_147 = arith.constant 2 : index
    %c2_148 = arith.constant 2 : index
    %c0_149 = arith.constant 0 : index
    %98 = vector.load %arg13[%c0_146, %c2_147, %c2_148, %c0_149] : memref<2x6x6x64xbf16, #tpu.memory_space<vmem>>, vector<2x4x4x64xbf16>
    %99 = vector.shape_cast %98 : vector<2x4x4x64xbf16> to vector<32x64xbf16>
    %c0_150 = arith.constant 0 : index
    %c512 = arith.constant 512 : index
    %100 = vector.load %arg14[%c0_150, %c512] : memref<32x576xbf16, #tpu.memory_space<vmem>>, vector<32x64xbf16>
    tpu.vector_store %arg14[%c0_150, %c512], %99 {strides = array<i32>} : memref<32x576xbf16, #tpu.memory_space<vmem>>, vector<32x64xbf16>,
    %c0_151 = arith.constant 0 : index
    %c0_152 = arith.constant 0 : index
    %101 = vector.load %arg14[%c0_151, %c0_152] : memref<32x576xbf16, #tpu.memory_space<vmem>>, vector<32x576xbf16>
    %c0_153 = arith.constant 0 : index
    %c0_154 = arith.constant 0 : index
    %102 = vector.load %arg6[%c0_153, %c0_154] : memref<576x128xbf16, #tpu.memory_space<vmem>>, vector<576x128xbf16>
    %cst_155 = arith.constant dense<0.000000e+00> : vector<32x128xf32>
    %103 = tpu.matmul %101, %102, %cst_155 {dimension_numbers = #tpu.dot_dimension_numbers<[1], [0], [0], [1], [0, 0, 1, 1], [], []>} : vector<32x576xbf16>, vector<576x128xbf16>, vector<32x128xf32> -> vector<32x128xf32>
    %c0_156 = arith.constant 0 : index
    %c0_157 = arith.constant 0 : index
    %104 = vector.load %arg7[%c0_156, %c0_157] : memref<1x128xf32, #tpu.memory_space<vmem>>, vector<1x128xf32>
    %105 = vector.broadcast %104 : vector<1x128xf32> to vector<32x128xf32>
    %106 = arith.addf %103, %105 : vector<32x128xf32>
    %cst_158 = arith.constant 0.000000e+00 : f32
    %107 = vector.broadcast %cst_158 : f32 to vector<32x128xf32>
    %108 = arith.maximumf %106, %107 : vector<32x128xf32>
    %109 = vector.shape_cast %108 : vector<32x128xf32> to vector<4x2x4x128xf32>
    %110 = vector.extract_strided_slice %109 {offsets = [0, 0, 0, 0], sizes = [4, 1, 4, 128], strides = [1, 1, 1, 1]} : vector<4x2x4x128xf32> to vector<4x1x4x128xf32>
    %111 = vector.shape_cast %110 : vector<4x1x4x128xf32> to vector<4x4x128xf32>
    %112 = vector.extract_strided_slice %109 {offsets = [0, 1, 0, 0], sizes = [4, 1, 4, 128], strides = [1, 1, 1, 1]} : vector<4x2x4x128xf32> to vector<4x1x4x128xf32>
    %113 = vector.shape_cast %112 : vector<4x1x4x128xf32> to vector<4x4x128xf32>
    %114 = arith.maximumf %111, %113 : vector<4x4x128xf32>
    %115 = vector.shape_cast %114 : vector<4x4x128xf32> to vector<8x2x128xf32>
    %116 = vector.extract_strided_slice %115 {offsets = [0, 0, 0], sizes = [8, 1, 128], strides = [1, 1, 1]} : vector<8x2x128xf32> to vector<8x1x128xf32>
    %117 = vector.shape_cast %116 : vector<8x1x128xf32> to vector<8x128xf32>
    %118 = vector.extract_strided_slice %115 {offsets = [0, 1, 0], sizes = [8, 1, 128], strides = [1, 1, 1]} : vector<8x2x128xf32> to vector<8x1x128xf32>
    %119 = vector.shape_cast %118 : vector<8x1x128xf32> to vector<8x128xf32>
    %120 = arith.maximumf %117, %119 : vector<8x128xf32>
    %cst_159 = arith.constant 0.000000e+00 : bf16
    %121 = vector.broadcast %cst_159 : bf16 to vector<2x1x4x128xbf16>
    %cst_160 = arith.constant 0.000000e+00 : bf16
    %122 = vector.broadcast %cst_160 : bf16 to vector<2x2x1x128xbf16>
    %c0_161 = arith.constant 0 : index
    %c0_162 = arith.constant 0 : index
    %c0_163 = arith.constant 0 : index
    %c0_164 = arith.constant 0 : index
    %123 = vector.load %arg15[%c0_161, %c0_162, %c0_163, %c0_164] : memref<2x4x4x128xbf16, #tpu.memory_space<vmem>>, vector<2x1x4x128xbf16>
    tpu.vector_store %arg15[%c0_161, %c0_162, %c0_163, %c0_164], %121 {strides = array<i32>} : memref<2x4x4x128xbf16, #tpu.memory_space<vmem>>, vector<2x1x4x128xbf16>,
    %c0_165 = arith.constant 0 : index
    %c3 = arith.constant 3 : index
    %c0_166 = arith.constant 0 : index
    %c0_167 = arith.constant 0 : index
    %124 = vector.load %arg15[%c0_165, %c3, %c0_166, %c0_167] : memref<2x4x4x128xbf16, #tpu.memory_space<vmem>>, vector<2x1x4x128xbf16>
    tpu.vector_store %arg15[%c0_165, %c3, %c0_166, %c0_167], %121 {strides = array<i32>} : memref<2x4x4x128xbf16, #tpu.memory_space<vmem>>, vector<2x1x4x128xbf16>,
    %c0_168 = arith.constant 0 : index
    %c1_169 = arith.constant 1 : index
    %c0_170 = arith.constant 0 : index
    %c0_171 = arith.constant 0 : index
    %125 = vector.load %arg15[%c0_168, %c1_169, %c0_170, %c0_171] : memref<2x4x4x128xbf16, #tpu.memory_space<vmem>>, vector<2x2x1x128xbf16>
    tpu.vector_store %arg15[%c0_168, %c1_169, %c0_170, %c0_171], %122 {strides = array<i32>} : memref<2x4x4x128xbf16, #tpu.memory_space<vmem>>, vector<2x2x1x128xbf16>,
    %c0_172 = arith.constant 0 : index
    %c1_173 = arith.constant 1 : index
    %c3_174 = arith.constant 3 : index
    %c0_175 = arith.constant 0 : index
    %126 = vector.load %arg15[%c0_172, %c1_173, %c3_174, %c0_175] : memref<2x4x4x128xbf16, #tpu.memory_space<vmem>>, vector<2x2x1x128xbf16>
    tpu.vector_store %arg15[%c0_172, %c1_173, %c3_174, %c0_175], %122 {strides = array<i32>} : memref<2x4x4x128xbf16, #tpu.memory_space<vmem>>, vector<2x2x1x128xbf16>,
    %127 = vector.shape_cast %120 : vector<8x128xf32> to vector<2x2x2x128xf32>
    %128 = arith.truncf %127 : vector<2x2x2x128xf32> to vector<2x2x2x128xbf16>
    %c0_176 = arith.constant 0 : index
    %c1_177 = arith.constant 1 : index
    %c1_178 = arith.constant 1 : index
    %c0_179 = arith.constant 0 : index
    %129 = vector.load %arg15[%c0_176, %c1_177, %c1_178, %c0_179] : memref<2x4x4x128xbf16, #tpu.memory_space<vmem>>, vector<2x2x2x128xbf16>
    tpu.vector_store %arg15[%c0_176, %c1_177, %c1_178, %c0_179], %128 {strides = array<i32>} : memref<2x4x4x128xbf16, #tpu.memory_space<vmem>>, vector<2x2x2x128xbf16>,
    %c0_180 = arith.constant 0 : index
    %c0_181 = arith.constant 0 : index
    %c0_182 = arith.constant 0 : index
    %c0_183 = arith.constant 0 : index
    %130 = vector.load %arg15[%c0_180, %c0_181, %c0_182, %c0_183] : memref<2x4x4x128xbf16, #tpu.memory_space<vmem>>, vector<2x2x2x128xbf16>
    %131 = vector.shape_cast %130 : vector<2x2x2x128xbf16> to vector<8x128xbf16>
    %c0_184 = arith.constant 0 : index
    %c0_185 = arith.constant 0 : index
    %132 = vector.load %arg16[%c0_184, %c0_185] : memref<8x1152xbf16, #tpu.memory_space<vmem>>, vector<8x128xbf16>
    tpu.vector_store %arg16[%c0_184, %c0_185], %131 {strides = array<i32>} : memref<8x1152xbf16, #tpu.memory_space<vmem>>, vector<8x128xbf16>,
    %c0_186 = arith.constant 0 : index
    %c0_187 = arith.constant 0 : index
    %c1_188 = arith.constant 1 : index
    %c0_189 = arith.constant 0 : index
    %133 = vector.load %arg15[%c0_186, %c0_187, %c1_188, %c0_189] : memref<2x4x4x128xbf16, #tpu.memory_space<vmem>>, vector<2x2x2x128xbf16>
    %134 = vector.shape_cast %133 : vector<2x2x2x128xbf16> to vector<8x128xbf16>
    %c0_190 = arith.constant 0 : index
    %c128_191 = arith.constant 128 : index
    %135 = vector.load %arg16[%c0_190, %c128_191] : memref<8x1152xbf16, #tpu.memory_space<vmem>>, vector<8x128xbf16>
    tpu.vector_store %arg16[%c0_190, %c128_191], %134 {strides = array<i32>} : memref<8x1152xbf16, #tpu.memory_space<vmem>>, vector<8x128xbf16>,
    %c0_192 = arith.constant 0 : index
    %c0_193 = arith.constant 0 : index
    %c2_194 = arith.constant 2 : index
    %c0_195 = arith.constant 0 : index
    %136 = vector.load %arg15[%c0_192, %c0_193, %c2_194, %c0_195] : memref<2x4x4x128xbf16, #tpu.memory_space<vmem>>, vector<2x2x2x128xbf16>
    %137 = vector.shape_cast %136 : vector<2x2x2x128xbf16> to vector<8x128xbf16>
    %c0_196 = arith.constant 0 : index
    %c256_197 = arith.constant 256 : index
    %138 = vector.load %arg16[%c0_196, %c256_197] : memref<8x1152xbf16, #tpu.memory_space<vmem>>, vector<8x128xbf16>
    tpu.vector_store %arg16[%c0_196, %c256_197], %137 {strides = array<i32>} : memref<8x1152xbf16, #tpu.memory_space<vmem>>, vector<8x128xbf16>,
    %c0_198 = arith.constant 0 : index
    %c1_199 = arith.constant 1 : index
    %c0_200 = arith.constant 0 : index
    %c0_201 = arith.constant 0 : index
    %139 = vector.load %arg15[%c0_198, %c1_199, %c0_200, %c0_201] : memref<2x4x4x128xbf16, #tpu.memory_space<vmem>>, vector<2x2x2x128xbf16>
    %140 = vector.shape_cast %139 : vector<2x2x2x128xbf16> to vector<8x128xbf16>
    %c0_202 = arith.constant 0 : index
    %c384_203 = arith.constant 384 : index
    %141 = vector.load %arg16[%c0_202, %c384_203] : memref<8x1152xbf16, #tpu.memory_space<vmem>>, vector<8x128xbf16>
    tpu.vector_store %arg16[%c0_202, %c384_203], %140 {strides = array<i32>} : memref<8x1152xbf16, #tpu.memory_space<vmem>>, vector<8x128xbf16>,
    %c0_204 = arith.constant 0 : index
    %c1_205 = arith.constant 1 : index
    %c1_206 = arith.constant 1 : index
    %c0_207 = arith.constant 0 : index
    %142 = vector.load %arg15[%c0_204, %c1_205, %c1_206, %c0_207] : memref<2x4x4x128xbf16, #tpu.memory_space<vmem>>, vector<2x2x2x128xbf16>
    %143 = vector.shape_cast %142 : vector<2x2x2x128xbf16> to vector<8x128xbf16>
    %c0_208 = arith.constant 0 : index
    %c512_209 = arith.constant 512 : index
    %144 = vector.load %arg16[%c0_208, %c512_209] : memref<8x1152xbf16, #tpu.memory_space<vmem>>, vector<8x128xbf16>
    tpu.vector_store %arg16[%c0_208, %c512_209], %143 {strides = array<i32>} : memref<8x1152xbf16, #tpu.memory_space<vmem>>, vector<8x128xbf16>,
    %c0_210 = arith.constant 0 : index
    %c1_211 = arith.constant 1 : index
    %c2_212 = arith.constant 2 : index
    %c0_213 = arith.constant 0 : index
    %145 = vector.load %arg15[%c0_210, %c1_211, %c2_212, %c0_213] : memref<2x4x4x128xbf16, #tpu.memory_space<vmem>>, vector<2x2x2x128xbf16>
    %146 = vector.shape_cast %145 : vector<2x2x2x128xbf16> to vector<8x128xbf16>
    %c0_214 = arith.constant 0 : index
    %c640 = arith.constant 640 : index
    %147 = vector.load %arg16[%c0_214, %c640] : memref<8x1152xbf16, #tpu.memory_space<vmem>>, vector<8x128xbf16>
    tpu.vector_store %arg16[%c0_214, %c640], %146 {strides = array<i32>} : memref<8x1152xbf16, #tpu.memory_space<vmem>>, vector<8x128xbf16>,
    %c0_215 = arith.constant 0 : index
    %c2_216 = arith.constant 2 : index
    %c0_217 = arith.constant 0 : index
    %c0_218 = arith.constant 0 : index
    %148 = vector.load %arg15[%c0_215, %c2_216, %c0_217, %c0_218] : memref<2x4x4x128xbf16, #tpu.memory_space<vmem>>, vector<2x2x2x128xbf16>
    %149 = vector.shape_cast %148 : vector<2x2x2x128xbf16> to vector<8x128xbf16>
    %c0_219 = arith.constant 0 : index
    %c768 = arith.constant 768 : index
    %150 = vector.load %arg16[%c0_219, %c768] : memref<8x1152xbf16, #tpu.memory_space<vmem>>, vector<8x128xbf16>
    tpu.vector_store %arg16[%c0_219, %c768], %149 {strides = array<i32>} : memref<8x1152xbf16, #tpu.memory_space<vmem>>, vector<8x128xbf16>,
    %c0_220 = arith.constant 0 : index
    %c2_221 = arith.constant 2 : index
    %c1_222 = arith.constant 1 : index
    %c0_223 = arith.constant 0 : index
    %151 = vector.load %arg15[%c0_220, %c2_221, %c1_222, %c0_223] : memref<2x4x4x128xbf16, #tpu.memory_space<vmem>>, vector<2x2x2x128xbf16>
    %152 = vector.shape_cast %151 : vector<2x2x2x128xbf16> to vector<8x128xbf16>
    %c0_224 = arith.constant 0 : index
    %c896 = arith.constant 896 : index
    %153 = vector.load %arg16[%c0_224, %c896] : memref<8x1152xbf16, #tpu.memory_space<vmem>>, vector<8x128xbf16>
    tpu.vector_store %arg16[%c0_224, %c896], %152 {strides = array<i32>} : memref<8x1152xbf16, #tpu.memory_space<vmem>>, vector<8x128xbf16>,
    %c0_225 = arith.constant 0 : index
    %c2_226 = arith.constant 2 : index
    %c2_227 = arith.constant 2 : index
    %c0_228 = arith.constant 0 : index
    %154 = vector.load %arg15[%c0_225, %c2_226, %c2_227, %c0_228] : memref<2x4x4x128xbf16, #tpu.memory_space<vmem>>, vector<2x2x2x128xbf16>
    %155 = vector.shape_cast %154 : vector<2x2x2x128xbf16> to vector<8x128xbf16>
    %c0_229 = arith.constant 0 : index
    %c1024 = arith.constant 1024 : index
    %156 = vector.load %arg16[%c0_229, %c1024] : memref<8x1152xbf16, #tpu.memory_space<vmem>>, vector<8x128xbf16>
    tpu.vector_store %arg16[%c0_229, %c1024], %155 {strides = array<i32>} : memref<8x1152xbf16, #tpu.memory_space<vmem>>, vector<8x128xbf16>,
    %c0_230 = arith.constant 0 : index
    %c0_231 = arith.constant 0 : index
    %157 = vector.load %arg16[%c0_230, %c0_231] : memref<8x1152xbf16, #tpu.memory_space<vmem>>, vector<8x1152xbf16>
    %c0_232 = arith.constant 0 : index
    %c0_233 = arith.constant 0 : index
    %158 = vector.load %arg8[%c0_232, %c0_233] : memref<1152x128xbf16, #tpu.memory_space<vmem>>, vector<1152x128xbf16>
    %cst_234 = arith.constant dense<0.000000e+00> : vector<8x128xf32>
    %159 = tpu.matmul %157, %158, %cst_234 {dimension_numbers = #tpu.dot_dimension_numbers<[1], [0], [0], [1], [0, 0, 1, 1], [], []>} : vector<8x1152xbf16>, vector<1152x128xbf16>, vector<8x128xf32> -> vector<8x128xf32>
    %c0_235 = arith.constant 0 : index
    %c0_236 = arith.constant 0 : index
    %160 = vector.load %arg9[%c0_235, %c0_236] : memref<1x128xf32, #tpu.memory_space<vmem>>, vector<1x128xf32>
    %161 = vector.broadcast %160 : vector<1x128xf32> to vector<8x128xf32>
    %162 = arith.addf %159, %161 : vector<8x128xf32>
    %cst_237 = arith.constant 0.000000e+00 : f32
    %163 = vector.broadcast %cst_237 : f32 to vector<8x128xf32>
    %164 = arith.maximumf %162, %163 : vector<8x128xf32>
    %165 = vector.shape_cast %164 : vector<8x128xf32> to vector<2x2x2x128xf32>
    %166 = vector.extract_strided_slice %165 {offsets = [0, 0, 0, 0], sizes = [2, 1, 2, 128], strides = [1, 1, 1, 1]} : vector<2x2x2x128xf32> to vector<2x1x2x128xf32>
    %167 = vector.shape_cast %166 : vector<2x1x2x128xf32> to vector<2x2x128xf32>
    %168 = vector.extract_strided_slice %165 {offsets = [0, 1, 0, 0], sizes = [2, 1, 2, 128], strides = [1, 1, 1, 1]} : vector<2x2x2x128xf32> to vector<2x1x2x128xf32>
    %169 = vector.shape_cast %168 : vector<2x1x2x128xf32> to vector<2x2x128xf32>
    %170 = arith.addf %167, %169 : vector<2x2x128xf32>
    %171 = vector.extract_strided_slice %170 {offsets = [0, 0, 0], sizes = [2, 1, 128], strides = [1, 1, 1]} : vector<2x2x128xf32> to vector<2x1x128xf32>
    %172 = vector.shape_cast %171 : vector<2x1x128xf32> to vector<2x128xf32>
    %173 = vector.extract_strided_slice %170 {offsets = [0, 1, 0], sizes = [2, 1, 128], strides = [1, 1, 1]} : vector<2x2x128xf32> to vector<2x1x128xf32>
    %174 = vector.shape_cast %173 : vector<2x1x128xf32> to vector<2x128xf32>
    %175 = arith.addf %172, %174 : vector<2x128xf32>
    %cst_238 = arith.constant 2.500000e-01 : f32
    %176 = vector.broadcast %cst_238 : f32 to vector<2x128xf32>
    %177 = arith.mulf %175, %176 : vector<2x128xf32>
    %178 = vector.shape_cast %177 : vector<2x128xf32> to vector<2x1x128xf32>
    %c0_239 = arith.constant 0 : index
    %c0_240 = arith.constant 0 : index
    %c0_241 = arith.constant 0 : index
    %179 = vector.load %arg10[%c0_239, %c0_240, %c0_241] : memref<2x1x128xf32, #tpu.memory_space<vmem>>, vector<2x1x128xf32>
    tpu.vector_store %arg10[%c0_239, %c0_240, %c0_241], %178 {strides = array<i32>} : memref<2x1x128xf32, #tpu.memory_space<vmem>>, vector<2x1x128xf32>,
    return
  }
  func.func @transform_0(%arg0: i32) -> (i32, i32, i32) {
    %c0_i32 = arith.constant 0 : i32
    %c0_i32_0 = arith.constant 0 : i32
    %c0_i32_1 = arith.constant 0 : i32
    return %arg0, %c0_i32, %c0_i32_0 : i32, i32, i32
  }
  func.func @transform_1(%arg0: i32) -> (i32, i32) {
    %c0_i32 = arith.constant 0 : i32
    %c0_i32_0 = arith.constant 0 : i32
    %c0_i32_1 = arith.constant 0 : i32
    return %c0_i32, %c0_i32_0 : i32, i32
  }
  func.func @transform_2(%arg0: i32) -> (i32, i32) {
    %c0_i32 = arith.constant 0 : i32
    %c0_i32_0 = arith.constant 0 : i32
    %c0_i32_1 = arith.constant 0 : i32
    return %c0_i32, %c0_i32_0 : i32, i32
  }
  func.func @transform_3(%arg0: i32) -> (i32, i32) {
    %c0_i32 = arith.constant 0 : i32
    %c0_i32_0 = arith.constant 0 : i32
    %c0_i32_1 = arith.constant 0 : i32
    return %c0_i32, %c0_i32_0 : i32, i32
  }
  func.func @transform_4(%arg0: i32) -> (i32, i32) {
    %c0_i32 = arith.constant 0 : i32
    %c0_i32_0 = arith.constant 0 : i32
    %c0_i32_1 = arith.constant 0 : i32
    return %c0_i32, %c0_i32_0 : i32, i32
  }
  func.func @transform_5(%arg0: i32) -> (i32, i32) {
    %c0_i32 = arith.constant 0 : i32
    %c0_i32_0 = arith.constant 0 : i32
    %c0_i32_1 = arith.constant 0 : i32
    return %c0_i32, %c0_i32_0 : i32, i32
  }
  func.func @transform_6(%arg0: i32) -> (i32, i32) {
    %c0_i32 = arith.constant 0 : i32
    %c0_i32_0 = arith.constant 0 : i32
    %c0_i32_1 = arith.constant 0 : i32
    return %c0_i32, %c0_i32_0 : i32, i32
  }
  func.func @transform_7(%arg0: i32) -> (i32, i32) {
    %c0_i32 = arith.constant 0 : i32
    %c0_i32_0 = arith.constant 0 : i32
    %c0_i32_1 = arith.constant 0 : i32
    return %c0_i32, %c0_i32_0 : i32, i32
  }
  func.func @transform_8(%arg0: i32) -> (i32, i32) {
    %c0_i32 = arith.constant 0 : i32
    %c0_i32_0 = arith.constant 0 : i32
    %c0_i32_1 = arith.constant 0 : i32
    return %c0_i32, %c0_i32_0 : i32, i32
  }
  func.func @transform_9(%arg0: i32) -> (i32, i32, i32) {
    %c0_i32 = arith.constant 0 : i32
    %c0_i32_0 = arith.constant 0 : i32
    %c0_i32_1 = arith.constant 0 : i32
    return %arg0, %c0_i32, %c0_i32_0 : i32, i32, i32
  }
}

</mosaic_0001>

<bundles_post_ra>
// kernel: encoder1_forward.1
= control target key start
LH: loop header
LB: loop body
LE: loop exit
PB: predicated region body
PF: predicated region fallthrough
CT: control target
= control target key end

     0   :  { %s10210_s0 = inlined_call_operand.vmem [shape: bf16[2,64,256], index: 0, kind: input, shape index: {}]   ;;  %s10211_s1 = inlined_call_operand.vmem [shape: bf16[256,32], index: 1, kind: input, shape index: {}]   ;;  %s10212_s2 = inlined_call_operand.vmem [shape: f32[1,32], index: 2, kind: input, shape index: {}]   ;;  %s10213_s3 = inlined_call_operand.vmem [shape: bf16[288,64], index: 3, kind: input, shape index: {}]   ;;  %s10214_s4 = inlined_call_operand.vmem [shape: f32[1,64], index: 4, kind: input, shape index: {}]   ;;  %s10215_s5 = inlined_call_operand.vmem [shape: bf16[576,128], index: 5, kind: input, shape index: {}]   ;;  %s10216_s6 = inlined_call_operand.vmem [shape: f32[1,128], index: 6, kind: input, shape index: {}]   ;;  %s10217_s7 = inlined_call_operand.vmem [shape: bf16[1152,128], index: 7, kind: input, shape index: {}]   ;;  %s10218_s8 = inlined_call_operand.vmem [shape: f32[1,128], index: 8, kind: input, shape index: {}]   ;;  %s10219_s9 = inlined_call_operand.hbm [shape: f32[2,1,128], index: 9, kind: output, shape index: {}]  }
   0x1   :  { %v8127_v0 = vld [vmem:[%s10211_s1 + $0x40] sm:$0xff]   ;;  %v8129_v2 = vld [vmem:[%s10211_s1 + $0x48] sm:$0xff]   ;;  %v8131_v4 = vld [vmem:[%s10211_s1 + $0x50] sm:$0xff]  }
   0x2   :  { %v8128_v1 = vld [vmem:[%s10211_s1] sm:$0xff]   ;;  %7751 = vmatprep.subr.bf16.mxu0 %v8127_v0  ;;  %v8130_v3 = vld [vmem:[%s10211_s1 + $0x8] sm:$0xff]   ;;  %v8132_v5 = vld [vmem:[%s10211_s1 + $0x10] sm:$0xff]  }
   0x3   :  { %7752 = vmatpush3.bf16.msra.mxu0 %v8128_v1  ;;  %v8133_v6 = vld [vmem:[%s10211_s1 + $0x58] sm:$0xff]   ;;  %v8135_v8 = vld [vmem:[%s10211_s1 + $0x60] sm:$0xff]   ;;  %v8137_v10 = vld [vmem:[%s10211_s1 + $0x68] sm:$0xff]  }
   0x4   :  { %7753 = vmatprep.subr.bf16.mxu0 %v8129_v2  ;;  %v8134_v7 = vld [vmem:[%s10211_s1 + $0x18] sm:$0xff]   ;;  %v8136_v9 = vld [vmem:[%s10211_s1 + $0x20] sm:$0xff]   ;;  %v8138_v12 = vld [vmem:[%s10211_s1 + $0x28] sm:$0xff]  }
   0x5   :  { %v8145_v11 = vld [vmem:[%s10210_s0 + $0x4] ss:$8 sps:$4 sm:$0xff]   ;;  %v8139_v13 = vld [vmem:[%s10211_s1 + $0x70] sm:$0xff]   ;;  %v8141_v15 = vld [vmem:[%s10211_s1 + $0x78] sm:$0xff]  }
   0x6   :  { %297 = vmatprep.mubr.bf16.mxu0 %v8145_v11  ;;  %v8140_v14 = vld [vmem:[%s10211_s1 + $0x30] sm:$0xff]   ;;  %v8142_v16 = vld [vmem:[%s10211_s1 + $0x38] sm:$0xff]   ;;  %v8143_v17 = vld [vmem:[%s10210_s0] ss:$8 sps:$4 sm:$0xff]  }
   0x7   :  { %7754 = vmatpush3.bf16.msra.mxu0 %v8130_v3  ;;  %v8146_v18 = vld [vmem:[%s10210_s0 + $0x14] ss:$8 sps:$4 sm:$0xff]   ;;  %v8148_v19 = vld [vmem:[%s10210_s0 + $0x10] ss:$8 sps:$4 sm:$0xff]   ;;  %v8149_v20 = vld [vmem:[%s10210_s0 + $0x24] ss:$8 sps:$4 sm:$0xff]  }
   0x8   :  { %7755 = vmatprep.subr.bf16.mxu0 %v8131_v4  ;;  %v8151_v21 = vld [vmem:[%s10210_s0 + $0x20] ss:$8 sps:$4 sm:$0xff]   ;;  %v8152_v22 = vld [vmem:[%s10210_s0 + $0x34] ss:$8 sps:$4 sm:$0xff]   ;;  %v8154_v23 = vld [vmem:[%s10210_s0 + $0x30] ss:$8 sps:$4 sm:$0xff]  }
   0x9   :  { %v8155_v24 = vld [vmem:[%s10210_s0 + $0x44] ss:$8 sps:$4 sm:$0xff]   ;;  %v8157_v25 = vld [vmem:[%s10210_s0 + $0x40] ss:$8 sps:$4 sm:$0xff]   ;;  %v8158_v26 = vld [vmem:[%s10210_s0 + $0x54] ss:$8 sps:$4 sm:$0xff]  }
   0xa   :  { %v8160_v27 = vld [vmem:[%s10210_s0 + $0x50] ss:$8 sps:$4 sm:$0xff]   ;;  %v8161_v28 = vld [vmem:[%s10210_s0 + $0x64] ss:$8 sps:$4 sm:$0xff]   ;;  %v8163_v29 = vld [vmem:[%s10210_s0 + $0x60] ss:$8 sps:$4 sm:$0xff]  }
   0xb   :  { %7756 = vmatpush3.bf16.msra.mxu0 %v8132_v5  ;;  %v8164_v30 = vld [vmem:[%s10210_s0 + $0x74] ss:$8 sps:$4 sm:$0xff]   ;;  %v8166_v31 = vld [vmem:[%s10210_s0 + $0x70] ss:$8 sps:$4 sm:$0xff]  }
   0xc   :  { %7757 = vmatprep.subr.bf16.mxu0 %v8133_v6 }
   0xf   :  { %7758 = vmatpush3.bf16.msra.mxu0 %v8134_v7 }
  0x10   :  { %7759 = vmatprep.subr.bf16.mxu0 %v8135_v8 }
  0x13   :  { %7760 = vmatpush3.bf16.msra.mxu0 %v8136_v9 }
  0x14   :  { %7761 = vmatprep.subr.bf16.mxu0 %v8137_v10 }
  0x17   :  { %7762 = vmatpush3.bf16.msra.mxu0 %v8138_v12 }
  0x18   :  { %7763 = vmatprep.subr.bf16.mxu0 %v8139_v13 }
  0x1b   :  { %7764 = vmatpush3.bf16.msra.mxu0 %v8140_v14 }
  0x1c   :  { %7765 = vmatprep.subr.bf16.mxu0 %v8141_v15 }
  0x1f   :  { %7766 = vmatpush3.bf16.msra.mxu0 %v8142_v16 }
  0x22   :  { %298 = vmatmul.mubr.bf16.vlgmr.msra.gmra.mrb[0].mxu0 %v8143_v17 }
  0x23   :  { %305 = vmatprep.mubr.bf16.mxu0 %v8146_v18 }
  0x2a   :  { %306 = vmatmul.mubr.bf16.gmra.mrb[4].mxu0 %v8148_v19 }
  0x2b   :  { %313 = vmatprep.mubr.bf16.mxu0 %v8149_v20 }
  0x32   :  { %314 = vmatmul.mubr.bf16.gmra.mrb[8].mxu0 %v8151_v21 }
  0x33   :  { %321 = vmatprep.mubr.bf16.mxu0 %v8152_v22 }
  0x3a   :  { %322 = vmatmul.mubr.bf16.gmra.mrb[12].mxu0 %v8154_v23 }
  0x3b   :  { %329 = vmatprep.mubr.bf16.mxu0 %v8155_v24 }
  0x42   :  { %330 = vmatmul.mubr.bf16.gmra.mrb[16].mxu0 %v8157_v25 }
  0x43   :  { %337 = vmatprep.mubr.bf16.mxu0 %v8158_v26 }
  0x4a   :  { %338 = vmatmul.mubr.bf16.gmra.mrb[20].mxu0 %v8160_v27 }
  0x4b   :  { %345 = vmatprep.mubr.bf16.mxu0 %v8161_v28 }
  0x52   :  { %346 = vmatmul.mubr.bf16.gmra.mrb[24].mxu0 %v8163_v29 }
  0x53   :  { %353 = vmatprep.mubr.bf16.mxu0 %v8164_v30 }
  0x5a   :  { %354 = vmatmul.mubr.bf16.gmra.mrb[28].mxu0 %v8166_v31 }
  0x5b   :  { %14 = vsyncpa [#allocation9], 0  ;;  %vm380_vm0 = vcmask 253952   ;;  %vm391_vm1 = vsmask.f32 256  ;;  %vm378_vm5 = vcmask 257024  }
  0x5c   :  { %vm441_vm2 = vsmask.f32 7938  ;;  %vm8541_vm3 = vmand %vm380_vm0, %vm391_vm1  ;;  %v393_v33 = vld [vmem:[#allocation2 + $0x8] sm:$0x1]  ;;  %v443_v34 = vld [vmem:[#allocation2 + $0xc] sm:$0x1] }
  0x5d   :  { %v394_v35 = vsel %vm8541_vm3, 0, %v393_v33  ;;  %vm8549_vm4 = vmand %vm380_vm0, %vm441_vm2  ;;  %v396_v38 = vld [vmem:[#allocation2 + $0x10] sm:$0x1]  ;;  %v446_v39 = vld [vmem:[#allocation2 + $0x14] sm:$0x1]  ;;  %v8382_v51 = vmov 0  }
  0x5e   :  { %395 = vst [vmem:[#allocation2 + $0x8] sm:$0x1] %v394_v35  ;;  %v444_v37 = vsel %vm8549_vm4, 0, %v443_v34  ;;  %v397_v40 = vsel %vm8541_vm3, 0, %v396_v38  ;;  %v447_v41 = vsel %vm8549_vm4, 0, %v446_v39  ;;  %vm8561_vm6 = vmand %vm378_vm5, %vm441_vm2  ;;  %vm1266_vm7 = vcmask 1042432  }
  0x5f   :  { %445 = vst [vmem:[#allocation2 + $0xc] sm:$0x1] %v444_v37  ;;  %398 = vst [vmem:[#allocation2 + $0x10] sm:$0x1] %v397_v40  ;;  %v399_v43 = vld [vmem:[#allocation2 + $0x18] sm:$0x1] }
  0x60   :  { %448 = vst [vmem:[#allocation2 + $0x14] sm:$0x1] %v447_v41  ;;  %v449_v44 = vld [vmem:[#allocation2 + $0x1c] sm:$0x1]  ;;  %v400_v45 = vsel %vm8541_vm3, 0, %v399_v43  ;;  %vm1267_vm8 = vcmask 1046532  }
  0x61   :  { %v450_v46 = vsel %vm8549_vm4, 0, %v449_v44  ;;  %401 = vst [vmem:[#allocation2 + $0x18] sm:$0x1] %v400_v45  ;;  %v402_v47 = vld [vmem:[#allocation2 + $0x20] sm:$0x1]  ;;  %vm8648_vm9 = vmor %vm1266_vm7, %vm1267_vm8  ;;  %s8383_s30 = smov 96  }
  0x62   :  { %451 = vst [vmem:[#allocation2 + $0x1c] sm:$0x1] %v450_v46  ;;  %v403_v48 = vsel %vm8541_vm3, 0, %v402_v47  ;;  %v452_v49 = vld [vmem:[#allocation2 + $0x24] sm:$0x1]  ;;  %s8384_s10 = smov 64  }
  0x63   :  { %404 = vst [vmem:[#allocation2 + $0x20] sm:$0x1] %v403_v48  ;;  %v453_v50 = vsel %vm8549_vm4, 0, %v452_v49  ;;  %379 = vst.msk [vmem:[#allocation2] sm:$0xf] %vm378_vm5, %v8382_v51  ;;  %s8385_s15 = smov 32  }
  0x64   :  { %381 = vst.msk [vmem:[#allocation2 + $0x4] sm:$0x1] %vm380_vm0, %v8382_v51  ;;  %383 = vst.msk [vmem:[#allocation2 + $0x54] sm:$0x1] %vm380_vm0, %v8382_v51  ;;  %v405_v52 = vld [vmem:[#allocation2 + $0x28] sm:$0x1] }
  0x65   :  { %382 = vst.msk [vmem:[#allocation2 + $0x50] sm:$0xf] %vm378_vm5, %v8382_v51  ;;  %385 = vst.msk [vmem:[#allocation2 + $0x48] sm:$0xf] %vm378_vm5, %v8382_v51  ;;  %v455_v53 = vld [vmem:[#allocation2 + $0x2c] sm:$0x1] }
  0x66   :  { %386 = vst.msk [vmem:[#allocation2 + $0x4c] sm:$0x1] %vm380_vm0, %v8382_v51  ;;  %388 = vst.msk [vmem:[#allocation2 + $0x9c] sm:$0x1] %vm380_vm0, %v8382_v51  ;;  %v406_v54 = vsel %vm8541_vm3, 0, %v405_v52  ;;  %v456_v55 = vsel %vm8549_vm4, 0, %v455_v53 }
  0x67   :  { %387 = vst.msk [vmem:[#allocation2 + $0x98] sm:$0xf] %vm378_vm5, %v8382_v51  ;;  %5460 = vst [vmem:[#allocation6] sm:$0x3] %v8382_v51  ;;  %v408_v56 = vld [vmem:[#allocation2 + $0x30] sm:$0x1] }
  0x68   :  { %5461 = vst [vmem:[#allocation6 + $0x8] sm:$0x3] %v8382_v51  ;;  %5463 = vst [vmem:[#allocation6 + $0x6] sm:$0x3] %v8382_v51  ;;  %v458_v57 = vld [vmem:[#allocation2 + $0x34] sm:$0x1] }
  0x69   :  { %5464 = vst [vmem:[#allocation6 + $0xe] sm:$0x3] %v8382_v51  ;;  %454 = vst [vmem:[#allocation2 + $0x24] sm:$0x1] %v453_v50  ;;  %v409_v58 = vsel %vm8541_vm3, 0, %v408_v56  ;;  %v459_v59 = vsel %vm8549_vm4, 0, %v458_v57 }
  0x6a   :  { %407 = vst [vmem:[#allocation2 + $0x28] sm:$0x1] %v406_v54  ;;  %457 = vst [vmem:[#allocation2 + $0x2c] sm:$0x1] %v456_v55  ;;  %v411_v60 = vld [vmem:[#allocation2 + $0x38] sm:$0x1] }
  0x6b   :  { %410 = vst [vmem:[#allocation2 + $0x30] sm:$0x1] %v409_v58  ;;  %460 = vst [vmem:[#allocation2 + $0x34] sm:$0x1] %v459_v59  ;;  %v461_v61 = vld [vmem:[#allocation2 + $0x3c] sm:$0x1] }
  0x6c   :  { %v412_v62 = vsel %vm8541_vm3, 0, %v411_v60  ;;  %v462_v63 = vsel %vm8549_vm4, 0, %v461_v61  ;;  %v414_v0 = vld [vmem:[#allocation2 + $0x40] sm:$0x1]  ;;  %v464_v2 = vld [vmem:[#allocation2 + $0x44] sm:$0x1] }
  0x6d   :  { %413 = vst [vmem:[#allocation2 + $0x38] sm:$0x1] %v412_v62  ;;  %463 = vst [vmem:[#allocation2 + $0x3c] sm:$0x1] %v462_v63  ;;  %v415_v1 = vsel %vm8541_vm3, 0, %v414_v0  ;;  %v465_v3 = vsel %vm8549_vm4, 0, %v464_v2 }
  0x6e   :  { %416 = vst [vmem:[#allocation2 + $0x40] sm:$0x1] %v415_v1  ;;  %466 = vst [vmem:[#allocation2 + $0x44] sm:$0x1] %v465_v3  ;;  %v417_v4 = vld [vmem:[#allocation2 + $0x58] sm:$0x1] }
  0x6f   :  { %v467_v5 = vld [vmem:[#allocation2 + $0x5c] sm:$0x1]  ;;  %v418_v6 = vsel %vm8541_vm3, 0, %v417_v4  ;;  %v420_v8 = vld [vmem:[#allocation2 + $0x60] sm:$0x1]  ;;  %vm877_vm13 = vcmask 261120  }
  0x70   :  { %v468_v7 = vsel %vm8549_vm4, 0, %v467_v5  ;;  %419 = vst [vmem:[#allocation2 + $0x58] sm:$0x1] %v418_v6  ;;  %v470_v9 = vld [vmem:[#allocation2 + $0x64] sm:$0x1]  ;;  %v421_v10 = vsel %vm8541_vm3, 0, %v420_v8 }
  0x71   :  { %469 = vst [vmem:[#allocation2 + $0x5c] sm:$0x1] %v468_v7  ;;  %v471_v11 = vsel %vm8549_vm4, 0, %v470_v9  ;;  %422 = vst [vmem:[#allocation2 + $0x60] sm:$0x1] %v421_v10  ;;  %vm1193_vm14 = vcmask 523520  }
  0x72   :  { %472 = vst [vmem:[#allocation2 + $0x64] sm:$0x1] %v471_v11  ;;  %v423_v12 = vld [vmem:[#allocation2 + $0x68] sm:$0x1]  ;;  %v473_v13 = vld [vmem:[#allocation2 + $0x6c] sm:$0x1] }
  0x73   :  { %v424_v14 = vsel %vm8541_vm3, 0, %v423_v12  ;;  %v474_v15 = vsel %vm8549_vm4, 0, %v473_v13  ;;  %v426_v16 = vld [vmem:[#allocation2 + $0x70] sm:$0x1]  ;;  %v476_v17 = vld [vmem:[#allocation2 + $0x74] sm:$0x1] }
  0x74   :  { %425 = vst [vmem:[#allocation2 + $0x68] sm:$0x1] %v424_v14  ;;  %475 = vst [vmem:[#allocation2 + $0x6c] sm:$0x1] %v474_v15  ;;  %v427_v18 = vsel %vm8541_vm3, 0, %v426_v16  ;;  %v477_v19 = vsel %vm8549_vm4, 0, %v476_v17 }
  0x75   :  { %428 = vst [vmem:[#allocation2 + $0x70] sm:$0x1] %v427_v18  ;;  %478 = vst [vmem:[#allocation2 + $0x74] sm:$0x1] %v477_v19  ;;  %v429_v20 = vld [vmem:[#allocation2 + $0x78] sm:$0x1] }
  0x76   :  { %v479_v21 = vld [vmem:[#allocation2 + $0x7c] sm:$0x1]  ;;  %v430_v22 = vsel %vm8541_vm3, 0, %v429_v20  ;;  %v432_v24 = vld [vmem:[#allocation2 + $0x80] sm:$0x1]  ;;  %vm1381_vm15 = vcmask 785920  }
  0x77   :  { %v480_v23 = vsel %vm8549_vm4, 0, %v479_v21  ;;  %431 = vst [vmem:[#allocation2 + $0x78] sm:$0x1] %v430_v22  ;;  %v482_v25 = vld [vmem:[#allocation2 + $0x84] sm:$0x1]  ;;  %v433_v26 = vsel %vm8541_vm3, 0, %v432_v24 }
  0x78   :  { %481 = vst [vmem:[#allocation2 + $0x7c] sm:$0x1] %v480_v23  ;;  %v483_v27 = vsel %vm8549_vm4, 0, %v482_v25  ;;  %434 = vst [vmem:[#allocation2 + $0x80] sm:$0x1] %v433_v26  ;;  %vm1470_vm0 = vcmask 1048320  }
  0x79   :  { %484 = vst [vmem:[#allocation2 + $0x84] sm:$0x1] %v483_v27  ;;  %v435_v28 = vld [vmem:[#allocation2 + $0x88] sm:$0x1]  ;;  %v485_v29 = vld [vmem:[#allocation2 + $0x8c] sm:$0x1] }
  0x7a   :  { %v436_v30 = vsel %vm8541_vm3, 0, %v435_v28  ;;  %v486_v31 = vsel %vm8549_vm4, 0, %v485_v29  ;;  %v438_v33 = vld [vmem:[#allocation2 + $0x90] sm:$0x1]  ;;  %v488_v34 = vld [vmem:[#allocation2 + $0x94] sm:$0x1] }
  0x7b   :  { %437 = vst [vmem:[#allocation2 + $0x88] sm:$0x1] %v436_v30  ;;  %487 = vst [vmem:[#allocation2 + $0x8c] sm:$0x1] %v486_v31  ;;  %v439_v35 = vsel %vm8541_vm3, 0, %v438_v33  ;;  %v489_v37 = vsel %vm8549_vm4, 0, %v488_v34 }
  0x7c   :  { %440 = vst [vmem:[#allocation2 + $0x90] sm:$0x1] %v439_v35  ;;  %490 = vst [vmem:[#allocation2 + $0x94] sm:$0x1] %v489_v37  ;;  %v886_v39 = vld [vmem:[#allocation2] sm:$0xf] }
  0x7d   :  { %v8644_v40 = vld [vmem:[%s10212_s2] ss:$0 sm:$0xff]  ;;  %v1202_v45 = vld [vmem:[#allocation2] sm:$0xe]  ;;  %v1203_v46 = vld [vmem:[#allocation2 + $0x4] sm:$0x1] }
  0x7e   :  { %v922_v48 = vshrl.u32 %v886_v39, 16  ;;  %v925_v36 = vshll.u32 %v886_v39, 16  ;;  %v2062_v52 = vld [vmem:[#allocation2 + $0x48] sm:$0xf]  ;;  %v7254_v53 = vrot.slane %v1202_v45, 9  ;;  %v1271_v54 = vrot.slane %v1203_v46, 5 }
  0x7f   :  { %v902_v58 = vld [vmem:[#allocation2 + $0x50] sm:$0xf]  ;;  %v8652_v59 = vld [vmem:[#allocation2 + $0x4] sm:$0x1]  ;;  %v2179_v62 = vshrl.u32 %v2062_v52, 16  ;;  %v2182_v63 = vshll.u32 %v2062_v52, 16 }
  0x80   :  { %v924_v60 = vrot.slane %v922_v48, 4  ;;  %v927_v61 = vrot.slane %v925_v36, 5  ;;  %v8656_v4 = vsel %vm8648_vm9, %v7254_v53, %v1271_v54  ;;  %v1034_v5 = vshrl.u32 %v902_v58, 16  ;;  %v717_v12 = vld [vmem:[#allocation2 + $0x8] sm:$0xf] }
  0x81   :  { %v1037_v6 = vshll.u32 %v902_v58, 16  ;;  %v931_v11 = vshll.u32 %v8652_v59, 16  ;;  %v720_v13 = vld [vmem:[#allocation2 + $0xc] sm:$0x1]  ;;  %vm918_vm10 = vsmask.f32 3328 }
  0x82   :  { %v928_v15 = vor.u32 %v927_v61, %v924_v60  ;;  %v2181_v16 = vrot.slane %v2179_v62, 4  ;;  %v2184_v17 = vrot.slane %v2182_v63, 5  ;;  %v2063_v22 = vld [vmem:[#allocation2 + $0x4c] sm:$0x1]  ;;  %v723_v24 = vld [vmem:[#allocation2 + $0x10] sm:$0xf] }
  0x83   :  { %v1036_v26 = vrot.slane %v1034_v5, 4  ;;  %v1039_v27 = vrot.slane %v1037_v6, 5  ;;  %v903_v33 = vld [vmem:[#allocation2 + $0x54] sm:$0x1]  ;;  %vm919_vm11 = vsmask.f32 7440 }
  0x84   :  { %v726_v34 = vld [vmem:[#allocation2 + $0x14] sm:$0x1]  ;;  %v2185_v37 = vor.u32 %v2184_v17, %v2181_v16  ;;  %v8665_v36 = vrot.slane %v928_v15, 4  ;;  %v8675_v62 = vrot.slane %v931_v11, 5  ;;  %vm8685_vm12 = vmor %vm918_vm10, %vm919_vm11  ;;  %vm3249_vm2 = vcmask 518144  }
  0x85   :  { %v1040_v58 = vor.u32 %v1039_v27, %v1036_v26  ;;  %vm3282_vm4 = vcmask 518146   ;;  %3250 = vst.msk [vmem:[#allocation4] sm:$0x7] %vm3249_vm2, %v8382_v51  ;;  %3251 = vst.msk [vmem:[#allocation4 + $0x18] sm:$0x7] %vm3249_vm2, %v8382_v51 }
  0x86   :  { %v8677_v63 = vrot.slane %v2185_v37, 4  ;;  %v934_v26 = vsel %vm8685_vm12, %v8665_v36, %v8675_v62  ;;  %3253 = vst.msk [vmem:[#allocation4 + $0x14] sm:$0x7] %vm3249_vm2, %v8382_v51  ;;  %3254 = vst.msk [vmem:[#allocation4 + $0x2c] sm:$0x7] %vm3249_vm2, %v8382_v51 }
  0x87   :  { %v8691_v15 = vrot.slane %v1040_v58, 4  ;;  %vm3706_vm8 = vsmask.f32 1280  ;;  %vm3709_vm10 = vsmask.f32 5392 }
  0x88   :  { %vm3711_vm11 = vsmask.f32 7448 }
  0xf5   :  { %v7767_v38 = vpop.f32.mrb[0].mxu0 }
  0xf6   :  { %v7768_v41 = vpop.f32.mrb[1].mxu0 }
  0xf7   :  { %v7769_v43 = vadd.f32 %v7768_v41, %v7767_v38  ;;  %v7770_v44 = vpop.f32.mrb[2].mxu0  ;;  %v2188_v38 = vshll.u32 %v2063_v22, 16 }
  0xf8   :  { %v7771_v47 = vpop.f32.mrb[3].mxu0 }
  0xf9   :  { %v300_v49 = vadd.f32 %v7769_v43, %v8644_v40  ;;  %v7772_v50 = vadd.f32 %v7771_v47, %v7770_v44 }
  0xfb   :  { %v362_v55 = vmax.f32 %v300_v49, 0.0  ;;  %v303_v56 = vadd.f32 %v7772_v50, %v8644_v40  ;;  %v8667_v49 = vld [vmem:[#allocation2 + $0x50] sm:$0xe]  ;;  %v1043_v50 = vshll.u32 %v903_v33, 16 }
  0xfc   :  { %v7262_v5 = vrot.slane %v8667_v49, 9 }
  0xfd   :  { %v7703_v0 = vpack.c.bf16 %v362_v55, %v362_v55  ;;  %v363_v1 = vmax.f32 %v303_v56, 0.0  ;;  %v7773_v2 = vpop.f32.mrb[4].mxu0  ;;  %v8673_v56 = vld [vmem:[#allocation2 + $0x54] sm:$0x1]  ;;  %v8693_v16 = vrot.slane %v1043_v50, 5 }
  0xfe   :  { %v7774_v3 = vpop.f32.mrb[5].mxu0  ;;  %v1303_v11 = vrot.slane %v8673_v56, 5 }
  0xff   :  { %v556_v7 = vshrl.u32 %v7703_v0, 16  ;;  %v7704_v8 = vpack.c.bf16 %v363_v1, %v363_v1  ;;  %v7775_v9 = vadd.f32 %v7774_v3, %v7773_v2  ;;  %v7776_v10 = vpop.f32.mrb[6].mxu0  ;;  %v559_v19 = vshll.u32 %v7703_v0, 16  ;;  %v729_v0 = vld [vmem:[#allocation2 + $0x18] sm:$0xf] }
 0x100   :  { %v7777_v14 = vpop.f32.mrb[7].mxu0  ;;  %v8680_v3 = vrot.slane %v2188_v38, 5 }
 0x101   :  { %v558_v18 = vrot.slane %v556_v7, 7  ;;  %v564_v20 = vshrl.u32 %v7704_v8, 16  ;;  %v308_v21 = vadd.f32 %v7775_v9, %v8644_v40  ;;  %v567_v23 = vshll.u32 %v7704_v8, 16  ;;  %v732_v8 = vld [vmem:[#allocation2 + $0x1c] sm:$0x1] }
 0x102   :  { %v7778_v25 = vadd.f32 %v7777_v14, %v7776_v10  ;;  %v2191_v27 = vsel %vm8685_vm12, %v8677_v63, %v8680_v3 }
 0x103   :  { %v561_v28 = vor.u32 %v559_v19, %v558_v18  ;;  %v562_v29 = vrot.slane %v558_v18, 4  ;;  %v566_v30 = vrot.slane %v564_v20, 7  ;;  %v364_v31 = vmax.f32 %v308_v21, 0.0  ;;  %v738_v21 = vld [vmem:[#allocation2 + $0x24] sm:$0x1] }
 0x104   :  { %v311_v35 = vadd.f32 %v7778_v25, %v8644_v40 }
 0x105   :  { %v718_v39 = vsel %vm8561_vm6, %v561_v28, %v717_v12  ;;  %v721_v41 = vsel %vm8541_vm3, %v562_v29, %v720_v13  ;;  %v569_v43 = vor.u32 %v567_v23, %v566_v30  ;;  %v570_v44 = vrot.slane %v566_v30, 4  ;;  %v7779_v45 = vpop.f32.mrb[8].mxu0  ;;  %v735_v12 = vld [vmem:[#allocation2 + $0x20] sm:$0xf] }
 0x106   :  { %719 = vst [vmem:[#allocation2 + $0x8] sm:$0xf] %v718_v39  ;;  %722 = vst [vmem:[#allocation2 + $0xc] sm:$0x1] %v721_v41  ;;  %v7705_v46 = vpack.c.bf16 %v364_v31, %v364_v31  ;;  %v365_v47 = vmax.f32 %v311_v35, 0.0  ;;  %v7780_v48 = vpop.f32.mrb[9].mxu0 }
 0x107   :  { %v724_v52 = vsel %vm8561_vm6, %v569_v43, %v723_v24  ;;  %v727_v53 = vsel %vm8541_vm3, %v570_v44, %v726_v34  ;;  %v7781_v54 = vadd.f32 %v7780_v48, %v7779_v45  ;;  %v7782_v55 = vpop.f32.mrb[10].mxu0 }
 0x108   :  { %725 = vst [vmem:[#allocation2 + $0x10] sm:$0xf] %v724_v52  ;;  %728 = vst [vmem:[#allocation2 + $0x14] sm:$0x1] %v727_v53  ;;  %v572_v59 = vshrl.u32 %v7705_v46, 16  ;;  %v7706_v60 = vpack.c.bf16 %v365_v47, %v365_v47  ;;  %v7783_v61 = vpop.f32.mrb[11].mxu0 }
 0x109   :  { %v316_v1 = vadd.f32 %v7781_v54, %v8644_v40  ;;  %v7784_v2 = vadd.f32 %v7783_v61, %v7782_v55  ;;  %v575_v7 = vshll.u32 %v7705_v46, 16  ;;  %v741_v46 = vld [vmem:[#allocation2 + $0x28] sm:$0xf]  ;;  %v744_v47 = vld [vmem:[#allocation2 + $0x2c] sm:$0x1] }
 0x10a   :  { %v574_v6 = vrot.slane %v572_v59, 7  ;;  %v580_v9 = vshrl.u32 %v7706_v60, 16  ;;  %v583_v20 = vshll.u32 %v7706_v60, 16  ;;  %v747_v61 = vld [vmem:[#allocation2 + $0x30] sm:$0xf] }
 0x10b   :  { %v366_v13 = vmax.f32 %v316_v1, 0.0  ;;  %v319_v14 = vadd.f32 %v7784_v2, %v8644_v40 }
 0x10c   :  { %v577_v17 = vor.u32 %v575_v7, %v574_v6  ;;  %v578_v18 = vrot.slane %v574_v6, 4  ;;  %v582_v19 = vrot.slane %v580_v9, 7 }
 0x10d   :  { %v7707_v22 = vpack.c.bf16 %v366_v13, %v366_v13  ;;  %v367_v23 = vmax.f32 %v319_v14, 0.0  ;;  %v7785_v24 = vpop.f32.mrb[12].mxu0  ;;  %v1204_v25 = vld [vmem:[#allocation2 + $0x8] sm:$0xe]  ;;  %v1205_v34 = vld [vmem:[#allocation2 + $0xc] sm:$0x1] }
 0x10e   :  { %v730_v28 = vsel %vm8561_vm6, %v577_v17, %v729_v0  ;;  %v733_v29 = vsel %vm8541_vm3, %v578_v18, %v732_v8  ;;  %v585_v30 = vor.u32 %v583_v20, %v582_v19  ;;  %v586_v31 = vrot.slane %v582_v19, 4  ;;  %v7786_v33 = vpop.f32.mrb[13].mxu0  ;;  %v1775_v35 = vld [vmem:[#allocation2 + $0x8] sm:$0xe]  ;;  %v1776_v60 = vld [vmem:[#allocation2 + $0xc] sm:$0x1] }
 0x10f   :  { %731 = vst [vmem:[#allocation2 + $0x18] sm:$0xf] %v730_v28  ;;  %734 = vst [vmem:[#allocation2 + $0x1c] sm:$0x1] %v733_v29  ;;  %v588_v37 = vshrl.u32 %v7707_v22, 16  ;;  %v591_v38 = vshll.u32 %v7707_v22, 16  ;;  %v7708_v39 = vpack.c.bf16 %v367_v23, %v367_v23  ;;  %v7787_v41 = vadd.f32 %v7786_v33, %v7785_v24 }
 0x110   :  { %v7788_v43 = vpop.f32.mrb[14].mxu0  ;;  %v736_v44 = vsel %vm8561_vm6, %v585_v30, %v735_v12  ;;  %v739_v45 = vsel %vm8541_vm3, %v586_v31, %v738_v21  ;;  %v8167_v50 = vld [vmem:[#allocation2 + $0x8] ss:$8 sps:$4 sm:$0xff]   ;;  %v7255_v52 = vrot.slane %v1204_v25, 9  ;;  %v1275_v53 = vrot.slane %v1205_v34, 5 }
 0x111   :  { %v7789_v48 = vpop.f32.mrb[15].mxu0  ;;  %737 = vst [vmem:[#allocation2 + $0x20] sm:$0xf] %v736_v44  ;;  %740 = vst [vmem:[#allocation2 + $0x24] sm:$0x1] %v739_v45  ;;  %v590_v54 = vrot.slane %v588_v37, 7  ;;  %v324_v59 = vadd.f32 %v7787_v41, %v8644_v40  ;;  %1446 = vrot.lane.b32.xlu1 %v8167_v50, %s8383_s30  ;;  %v8723_v22 = vsel %vm8648_vm9, %v7262_v5, %v1303_v11 }
 0x112   :  { %v596_v55 = vshrl.u32 %v7708_v39, 16  ;;  %v599_v58 = vshll.u32 %v7708_v39, 16  ;;  %v7790_v0 = vadd.f32 %v7789_v48, %v7788_v43  ;;  %v1276_v1 = vsel %vm8648_vm9, %v7255_v52, %v1275_v53  ;;  %v1777_v2 = vld [vmem:[#allocation2 + $0x10] sm:$0xe]  ;;  %v1778_v6 = vld [vmem:[#allocation2 + $0x14] sm:$0x1] }
 0x113   :  { %v7294_v7 = vrot.slane %v1775_v35, 9  ;;  %v1841_v8 = vrot.slane %v1776_v60, 5  ;;  %v593_v9 = vor.u32 %v591_v38, %v590_v54  ;;  %v594_v12 = vrot.slane %v590_v54, 4  ;;  %v750_v17 = vld [vmem:[#allocation2 + $0x34] sm:$0x1] }
 0x114   :  { %v598_v13 = vrot.slane %v596_v55, 7  ;;  %v368_v14 = vmax.f32 %v324_v59, 0.0  ;;  %v327_v18 = vadd.f32 %v7790_v0, %v8644_v40  ;;  %v7270_v19 = vcombine.low %v8656_v4, %v1276_v1  ;;  %v1206_v21 = vld [vmem:[#allocation2 + $0x10] sm:$0xe]  ;;  %v1207_v4 = vld [vmem:[#allocation2 + $0x14] sm:$0x1] }
 0x115   :  { %v7295_v20 = vrot.slane %v1777_v2, 9  ;;  %v742_v23 = vsel %vm8561_vm6, %v593_v9, %v741_v46  ;;  %v745_v24 = vsel %vm8541_vm3, %v594_v12, %v744_v47  ;;  %v7791_v29 = vpop.f32.mrb[16].mxu0  ;;  %v1845_v49 = vrot.slane %v1778_v6, 5  ;;  %v8740_v38 = vld [vmem:[#allocation2 + $0x8] sm:$0xf]  ;;  %v8184_v2 = vld [vmem:[%s10213_s3] sm:$0xff]  }
 0x116   :  { %v601_v25 = vor.u32 %v599_v58, %v598_v13  ;;  %v602_v28 = vrot.slane %v598_v13, 4  ;;  %743 = vst [vmem:[#allocation2 + $0x28] sm:$0xf] %v742_v23  ;;  %746 = vst [vmem:[#allocation2 + $0x2c] sm:$0x1] %v745_v24  ;;  %v7709_v30 = vpack.c.bf16 %v368_v14, %v368_v14  ;;  %v369_v56 = vmax.f32 %v327_v18, 0.0  ;;  %1357 = vrot.lane.b32.xlu0 %v7270_v19, %s8384_s10 }
 0x117   :  { %v1046_v5 = vsel %vm8685_vm12, %v8691_v15, %v8693_v16  ;;  %v1842_v33 = vsel %vm8648_vm9, %v7294_v7, %v1841_v8  ;;  %v7792_v34 = vpop.f32.mrb[17].mxu0  ;;  %v1208_v35 = vld [vmem:[#allocation2 + $0x18] sm:$0xe]  ;;  %v7256_v37 = vrot.slane %v1206_v21, 9  ;;  %v1846_v44 = vsel %vm8648_vm9, %v7295_v20, %v1845_v49  ;;  %v756_v47 = vld [vmem:[#allocation2 + $0x3c] sm:$0x1] }
 0x118   :  { %v748_v11 = vsel %vm8561_vm6, %v601_v25, %v747_v61  ;;  %v751_v31 = vsel %vm8541_vm3, %v602_v28, %v750_v17  ;;  %v604_v39 = vshrl.u32 %v7709_v30, 16  ;;  %v607_v41 = vshll.u32 %v7709_v30, 16  ;;  %v8168_v45 = vld [vmem:[#allocation2 + $0x18] ss:$8 sps:$4 sm:$0xff]   ;;  %v7794_v52 = vpop.f32.mrb[18].mxu0  ;;  %v8185_v30 = vld [vmem:[%s10213_s3 + $0x48] sm:$0xff]  }
 0x119   :  { %749 = vst [vmem:[#allocation2 + $0x30] sm:$0xf] %v748_v11  ;;  %752 = vst [vmem:[#allocation2 + $0x34] sm:$0x1] %v751_v31  ;;  %v7710_v43 = vpack.c.bf16 %v369_v56, %v369_v56  ;;  %v753_v46 = vld [vmem:[#allocation2 + $0x38] sm:$0xf]  ;;  %v7310_v48 = vcombine.low %v1842_v33, %v1846_v44  ;;  %v7793_v50 = vadd.f32 %v7792_v34, %v7791_v29  ;;  %1448 = vrot.lane.b32.xlu1 %v8168_v45, %s8383_s30 }
 0x11a   :  { %v1209_v53 = vld [vmem:[#allocation2 + $0x1c] sm:$0x1]  ;;  %v1279_v54 = vrot.slane %v1207_v4, 5  ;;  %v7257_v55 = vrot.slane %v1208_v35, 9  ;;  %v8183_v58 = vld [vmem:[%s10213_s3 + $0x40] sm:$0xff]   ;;  %v606_v59 = vrot.slane %v604_v39, 7 }
 0x11b   :  { %v612_v60 = vshrl.u32 %v7710_v43, 16  ;;  %v615_v61 = vshll.u32 %v7710_v43, 16  ;;  %v1283_v0 = vrot.slane %v1209_v53, 5  ;;  %v7795_v1 = vpop.f32.mrb[19].mxu0  ;;  %v759_v6 = vld [vmem:[#allocation2 + $0x40] sm:$0xf]  ;;  %1927 = vrot.lane.b32.xlu0 %v7310_v48, %s8385_s15  ;;  %v332_v8 = vadd.f32 %v7793_v50, %v8644_v40  ;;  %7815 = vmatprep.subr.bf16.mxu0 %v8183_v58 }
 0x11c   :  { %v762_v7 = vld [vmem:[#allocation2 + $0x44] sm:$0x1]  ;;  %v1280_v9 = vsel %vm8648_vm9, %v7256_v37, %v1279_v54  ;;  %v7796_v12 = vadd.f32 %v7795_v1, %v7794_v52  ;;  %v889_v13 = vld [vmem:[#allocation2 + $0xc] sm:$0x1]  ;;  %v936_v14 = vshrl.u32 %v8740_v38, 16  ;;  %v609_v17 = vor.u32 %v607_v41, %v606_v59  ;;  %7816 = vmatpush3.bf16.msra.mxu0 %v8184_v2  ;;  %8100 = vmatprep.subr.bf16.mxu1 %v8183_v58 }
 0x11d   :  { %v610_v18 = vrot.slane %v606_v59, 4  ;;  %v614_v19 = vrot.slane %v612_v60, 7  ;;  %v8169_v20 = vld [vmem:[#allocation2 + $0x10] ss:$8 sps:$4 sm:$0xff]   ;;  %v1284_v21 = vsel %vm8648_vm9, %v7257_v55, %v1283_v0  ;;  %v370_v24 = vmax.f32 %v332_v8, 0.0  ;;  %v7797_v4 = vpop.f32.mrb[20].mxu0  ;;  %8108 = vmatpush3.bf16.msra.mxu1 %v8184_v2  ;;  %7817 = vmatprep.subr.bf16.mxu0 %v8185_v30 }
 0x11e   :  { %v1779_v23 = vld [vmem:[#allocation2 + $0x18] sm:$0xe]  ;;  %v7271_v25 = vcombine.low %v1280_v9, %v1284_v21  ;;  %v335_v28 = vadd.f32 %v7796_v12, %v8644_v40  ;;  %v938_v29 = vrot.slane %v936_v14, 4  ;;  %v754_v56 = vsel %vm8561_vm6, %v609_v17, %v753_v46  ;;  %v7798_v33 = vpop.f32.mrb[21].mxu0  ;;  %v1780_v34 = vld [vmem:[#allocation2 + $0x1c] sm:$0x1]  ;;  %8101 = vmatprep.subr.bf16.mxu1 %v8185_v30 }
 0x11f   :  { %v757_v49 = vsel %vm8541_vm3, %v610_v18, %v756_v47  ;;  %v617_v11 = vor.u32 %v615_v61, %v614_v19  ;;  %v618_v31 = vrot.slane %v614_v19, 4  ;;  %v1781_v35 = vld [vmem:[#allocation2 + $0x20] sm:$0xe]  ;;  %755 = vst [vmem:[#allocation2 + $0x38] sm:$0xf] %v754_v56  ;;  %2016 = vrot.lane.b32.xlu0 %v8169_v20, %s8384_s10  ;;  %v7711_v37 = vpack.c.bf16 %v370_v24, %v370_v24  ;;  %v7800_v44 = vpop.f32.mrb[22].mxu0 }
 0x120   :  { %758 = vst [vmem:[#allocation2 + $0x3c] sm:$0x1] %v757_v49  ;;  %1359 = vrot.lane.b32.xlu1 %v7271_v25, %s8384_s10  ;;  %v371_v39 = vmax.f32 %v335_v28, 0.0  ;;  %v939_v41 = vshll.u32 %v8740_v38, 16  ;;  %v945_v43 = vshll.u32 %v889_v13, 16  ;;  %v7799_v47 = vadd.f32 %v7798_v33, %v7797_v4  ;;  %v7801_v52 = vpop.f32.mrb[23].mxu0 }
 0x121   :  { %v760_v45 = vsel %vm8561_vm6, %v617_v11, %v759_v6  ;;  %v763_v46 = vsel %vm8541_vm3, %v618_v31, %v762_v7  ;;  %v8170_v48 = vld [vmem:[#allocation2 + $0x20] ss:$8 sps:$4 sm:$0xff]   ;;  %v7296_v50 = vrot.slane %v1779_v23, 9  ;;  %v620_v53 = vshrl.u32 %v7711_v37, 16  ;;  %v1782_v58 = vld [vmem:[#allocation2 + $0x24] sm:$0x1] }
 0x122   :  { %761 = vst [vmem:[#allocation2 + $0x40] sm:$0xf] %v760_v45  ;;  %764 = vst [vmem:[#allocation2 + $0x44] sm:$0x1] %v763_v46  ;;  %v623_v54 = vshll.u32 %v7711_v37, 16  ;;  %v7712_v55 = vpack.c.bf16 %v371_v39, %v371_v39  ;;  %v941_v38 = vrot.slane %v939_v41, 5  ;;  %v340_v61 = vadd.f32 %v7799_v47, %v8644_v40 }
 0x123   :  { %v8186_v59 = vld [vmem:[%s10213_s3 + $0x8] sm:$0xff]   ;;  %v947_v60 = vrot.slane %v945_v43, 5  ;;  %v1849_v0 = vrot.slane %v1780_v34, 5  ;;  %v7297_v1 = vrot.slane %v1781_v35, 9  ;;  %v8187_v2 = vld [vmem:[%s10213_s3 + $0x50] sm:$0xff]   ;;  %v622_v6 = vrot.slane %v620_v53, 7 }
 0x124   :  { %v628_v7 = vshrl.u32 %v7712_v55, 16  ;;  %v631_v8 = vshll.u32 %v7712_v55, 16  ;;  %v942_v9 = vor.u32 %v941_v38, %v938_v29  ;;  %2018 = vrot.lane.b32.xlu1 %v8170_v48, %s8384_s10  ;;  %v8781_v12 = vld [vmem:[#allocation2 + $0x10] sm:$0xf]  ;;  %7818 = vmatpush3.bf16.msra.mxu0 %v8186_v59  ;;  %v765_v14 = vld [vmem:[#allocation2 + $0x58] sm:$0xf]  ;;  %v7802_v21 = vadd.f32 %v7801_v52, %v7800_v44 }
 0x125   :  { %v8188_v13 = vld [vmem:[%s10213_s3 + $0x10] sm:$0xff]   ;;  %v768_v17 = vld [vmem:[#allocation2 + $0x5c] sm:$0x1]  ;;  %v372_v18 = vmax.f32 %v340_v61, 0.0  ;;  %v8788_v19 = vsel %vm8648_vm9, %v7296_v50, %v1849_v0  ;;  %v1853_v20 = vrot.slane %v1782_v58, 5  ;;  %7819 = vmatprep.subr.bf16.mxu0 %v8187_v2  ;;  %8109 = vmatpush3.bf16.msra.mxu1 %v8186_v59  ;;  %v625_v23 = vor.u32 %v623_v54, %v622_v6  ;;  %v8790_v4 = vpop.f32.mrb[24].mxu0 }
 0x126   :  { %v626_v24 = vrot.slane %v622_v6, 4  ;;  %v630_v25 = vrot.slane %v628_v7, 7  ;;  %v943_v28 = vrot.slane %v942_v9, 4  ;;  %v8171_v29 = vld [vmem:[#allocation2 + $0x28] ss:$8 sps:$4 sm:$0xff]   ;;  %8102 = vmatprep.subr.bf16.mxu1 %v8187_v2  ;;  %v343_v31 = vadd.f32 %v7802_v21, %v8644_v40  ;;  %v8798_v34 = vpop.f32.mrb[25].mxu0 }
 0x127   :  { %v771_v30 = vld [vmem:[#allocation2 + $0x60] sm:$0xf]  ;;  %v774_v56 = vld [vmem:[#allocation2 + $0x64] sm:$0x1]  ;;  %v7713_v49 = vpack.c.bf16 %v372_v18, %v372_v18  ;;  %v8794_v11 = vsel %vm8648_vm9, %v7297_v1, %v1853_v20  ;;  %v950_v33 = vshrl.u32 %v8781_v12, 16  ;;  %v766_v35 = vsel %vm8561_vm6, %v625_v23, %v765_v14  ;;  %v8805_v44 = vpop.f32.mrb[26].mxu0 }
 0x128   :  { %v769_v37 = vsel %vm8541_vm3, %v626_v24, %v768_v17  ;;  %v633_v39 = vor.u32 %v631_v8, %v630_v25  ;;  %v634_v41 = vrot.slane %v630_v25, 4  ;;  %1450 = vrot.lane.b32.xlu1 %v8171_v29, %s8383_s30  ;;  %v891_v43 = vld [vmem:[#allocation2 + $0x14] sm:$0x1]  ;;  %7820 = vmatpush3.bf16.msra.mxu0 %v8188_v13  ;;  %767 = vst [vmem:[#allocation2 + $0x58] sm:$0xf] %v766_v35  ;;  %v373_v59 = vmax.f32 %v343_v31, 0.0 }
 0x129   :  { %770 = vst [vmem:[#allocation2 + $0x5c] sm:$0x1] %v769_v37  ;;  %v948_v45 = vsel %vm8685_vm12, %v943_v28, %v947_v60  ;;  %v636_v46 = vshrl.u32 %v7713_v49, 16  ;;  %v639_v47 = vshll.u32 %v7713_v49, 16  ;;  %v7311_v48 = vcombine.low %v8788_v19, %v8794_v11  ;;  %v892_v50 = vld [vmem:[#allocation2 + $0x18] sm:$0xf]  ;;  %8110 = vmatpush3.bf16.msra.mxu1 %v8188_v13 }
 0x12a   :  { %v893_v52 = vld [vmem:[#allocation2 + $0x1c] sm:$0x1]  ;;  %v772_v53 = vsel %vm8561_vm6, %v633_v39, %v771_v30  ;;  %v775_v54 = vsel %vm8541_vm3, %v634_v41, %v774_v56  ;;  %v7246_v55 = vcombine.low %v934_v26, %v948_v45  ;;  %v777_v38 = vld [vmem:[#allocation2 + $0x68] sm:$0xf]  ;;  %v780_v58 = vld [vmem:[#allocation2 + $0x6c] sm:$0x1]  ;;  %v7714_v7 = vpack.c.bf16 %v373_v59, %v373_v59 }
 0x12b   :  { %v8820_v60 = vpop.f32.mrb[27].mxu0  ;;  %773 = vst [vmem:[#allocation2 + $0x60] sm:$0xf] %v772_v53  ;;  %776 = vst [vmem:[#allocation2 + $0x64] sm:$0x1] %v775_v54  ;;  %v638_v61 = vrot.slane %v636_v46, 7  ;;  %v7805_v39 = vadd.f32 %v8798_v34, %v8790_v4 }
 0x12c   :  { %v952_v0 = vrot.slane %v950_v33, 4  ;;  %v953_v1 = vshll.u32 %v8781_v12, 16  ;;  %v959_v2 = vshll.u32 %v891_v43, 16  ;;  %v1210_v6 = vld [vmem:[#allocation2 + $0x20] sm:$0xe]  ;;  %1169 = vrot.lane.b32.xlu0 %v7246_v55, %s8385_s15  ;;  %v964_v8 = vshrl.u32 %v892_v50, 16 }
 0x12d   :  { %v967_v9 = vshll.u32 %v892_v50, 16  ;;  %v973_v36 = vshll.u32 %v893_v52, 16  ;;  %v1211_v62 = vld [vmem:[#allocation2 + $0x24] sm:$0x1]  ;;  %v8190_v26 = vld [vmem:[%s10213_s3 + $0x58] sm:$0xff]   ;;  %v641_v13 = vor.u32 %v639_v47, %v638_v61  ;;  %v642_v14 = vrot.slane %v638_v61, 4 }
 0x12e   :  { %v955_v17 = vrot.slane %v953_v1, 5  ;;  %v961_v18 = vrot.slane %v959_v2, 5  ;;  %v1212_v19 = vld [vmem:[#allocation2 + $0x28] sm:$0xe]  ;;  %v8191_v12 = vld [vmem:[%s10213_s3 + $0x18] sm:$0xff]   ;;  %v644_v20 = vshrl.u32 %v7714_v7, 16  ;;  %7821 = vmatprep.subr.bf16.mxu0 %v8190_v26  ;;  %8103 = vmatprep.subr.bf16.mxu1 %v8190_v26 }
 0x12f   :  { %v647_v21 = vshll.u32 %v7714_v7, 16  ;;  %v966_v23 = vrot.slane %v964_v8, 4  ;;  %v969_v24 = vrot.slane %v967_v9, 5  ;;  %v1213_v25 = vld [vmem:[#allocation2 + $0x2c] sm:$0x1]  ;;  %v778_v28 = vsel %vm8561_vm6, %v641_v13, %v777_v38  ;;  %v8834_v33 = vpop.f32.mrb[28].mxu0  ;;  %7822 = vmatpush3.bf16.msra.mxu0 %v8191_v12  ;;  %8111 = vmatpush3.bf16.msra.mxu1 %v8191_v12 }
 0x130   :  { %v781_v29 = vsel %vm8541_vm3, %v642_v14, %v780_v58  ;;  %v783_v30 = vld [vmem:[#allocation2 + $0x70] sm:$0xf]  ;;  %v786_v56 = vld [vmem:[#allocation2 + $0x74] sm:$0x1]  ;;  %v956_v49 = vor.u32 %v955_v17, %v952_v0  ;;  %v975_v11 = vrot.slane %v973_v36, 5  ;;  %1929 = vrot.lane.b32.xlu0 %v7311_v48, %s8385_s15  ;;  %v646_v35 = vrot.slane %v644_v20, 7 }
 0x131   :  { %v2048_v31 = vld [vmem:[#allocation2 + $0x10] sm:$0xf]  ;;  %779 = vst [vmem:[#allocation2 + $0x68] sm:$0xf] %v778_v28  ;;  %782 = vst [vmem:[#allocation2 + $0x6c] sm:$0x1] %v781_v29  ;;  %v970_v37 = vor.u32 %v969_v24, %v966_v23  ;;  %v348_v58 = vadd.f32 %v7805_v39, %v8644_v40 }
 0x132   :  { %v7258_v41 = vrot.slane %v1210_v6, 9  ;;  %v8839_v43 = vpop.f32.mrb[29].mxu0  ;;  %v8192_v45 = vld [vmem:[%s10213_s3 + $0x60] sm:$0xff]   ;;  %v957_v46 = vrot.slane %v956_v49, 4  ;;  %v1287_v47 = vrot.slane %v1211_v62, 5  ;;  %v7259_v50 = vrot.slane %v1212_v19, 9 }
 0x133   :  { %v1291_v52 = vrot.slane %v1213_v25, 5  ;;  %v2049_v53 = vld [vmem:[#allocation2 + $0x14] sm:$0x1]  ;;  %v2050_v54 = vld [vmem:[#allocation2 + $0x18] sm:$0xf]  ;;  %v649_v55 = vor.u32 %v647_v21, %v646_v35  ;;  %v650_v48 = vrot.slane %v646_v35, 4  ;;  %7823 = vmatprep.subr.bf16.mxu0 %v8192_v45  ;;  %8104 = vmatprep.subr.bf16.mxu1 %v8192_v45 }
 0x134   :  { %v971_v38 = vrot.slane %v970_v37, 4  ;;  %v962_v4 = vsel %vm8685_vm12, %v957_v46, %v961_v18  ;;  %v1288_v34 = vsel %vm8648_vm9, %v7258_v41, %v1287_v47  ;;  %v2051_v61 = vld [vmem:[#allocation2 + $0x1c] sm:$0x1]  ;;  %v2081_v0 = vshrl.u32 %v2048_v31, 16  ;;  %v8851_v1 = vpop.f32.mrb[30].mxu0  ;;  %v8193_v21 = vld [vmem:[%s10213_s3 + $0x20] sm:$0xff]  }
 0x135   :  { %v1292_v59 = vsel %vm8648_vm9, %v7259_v50, %v1291_v52  ;;  %v784_v2 = vsel %vm8561_vm6, %v649_v55, %v783_v30  ;;  %v787_v6 = vsel %vm8541_vm3, %v650_v48, %v786_v56  ;;  %v374_v8 = vmax.f32 %v348_v58, 0.0  ;;  %v894_v9 = vld [vmem:[#allocation2 + $0x20] sm:$0xf]  ;;  %v8859_v36 = vpop.f32.mrb[31].mxu0  ;;  %v895_v20 = vld [vmem:[#allocation2 + $0x24] sm:$0x1]  ;;  %7824 = vmatpush3.bf16.msra.mxu0 %v8193_v21  ;;  %8112 = vmatpush3.bf16.msra.mxu1 %v8193_v21 }
 0x136   :  { %v976_v7 = vsel %vm8685_vm12, %v971_v38, %v975_v11  ;;  %785 = vst [vmem:[#allocation2 + $0x70] sm:$0xf] %v784_v2  ;;  %788 = vst [vmem:[#allocation2 + $0x74] sm:$0x1] %v787_v6  ;;  %v7272_v26 = vcombine.low %v1288_v34, %v1292_v59  ;;  %v2083_v13 = vrot.slane %v2081_v0, 4  ;;  %v2084_v14 = vshll.u32 %v2048_v31, 16 }
 0x137   :  { %v7247_v62 = vcombine.low %v962_v4, %v976_v7  ;;  %v7715_v17 = vpack.c.bf16 %v374_v8, %v374_v8  ;;  %v2090_v18 = vshll.u32 %v2049_v53, 16  ;;  %v2095_v19 = vshrl.u32 %v2050_v54, 16  ;;  %v896_v25 = vld [vmem:[#allocation2 + $0x28] sm:$0xf]  ;;  %v897_v31 = vld [vmem:[#allocation2 + $0x2c] sm:$0x1] }
 0x138   :  { %v2098_v12 = vshll.u32 %v2050_v54, 16  ;;  %1361 = vrot.lane.b32.xlu1 %v7272_v26, %s8384_s10  ;;  %v2086_v23 = vrot.slane %v2084_v14, 5  ;;  %v2104_v24 = vshll.u32 %v2051_v61, 16  ;;  %v978_v28 = vshrl.u32 %v894_v9, 16  ;;  %v789_v35 = vld [vmem:[#allocation2 + $0x78] sm:$0xf] }
 0x139   :  { %1171 = vrot.lane.b32.xlu0 %v7247_v62, %s8385_s15  ;;  %v981_v29 = vshll.u32 %v894_v9, 16  ;;  %v652_v30 = vshrl.u32 %v7715_v17, 16  ;;  %v655_v56 = vshll.u32 %v7715_v17, 16  ;;  %v2092_v49 = vrot.slane %v2090_v18, 5  ;;  %v8195_v46 = vld [vmem:[%s10213_s3 + $0x68] sm:$0xff]   ;;  %v8197_v14 = vld [vmem:[%s10213_s3 + $0x70] sm:$0xff]  }
 0x13a   :  { %v2097_v11 = vrot.slane %v2095_v19, 4  ;;  %v2087_v37 = vor.u32 %v2086_v23, %v2083_v13  ;;  %v2100_v39 = vrot.slane %v2098_v12, 5  ;;  %v2106_v41 = vrot.slane %v2104_v24, 5  ;;  %v792_v50 = vld [vmem:[#allocation2 + $0x7c] sm:$0x1]  ;;  %7825 = vmatprep.subr.bf16.mxu0 %v8195_v46  ;;  %v8196_v34 = vld [vmem:[%s10213_s3 + $0x28] sm:$0xff]   ;;  %8105 = vmatprep.subr.bf16.mxu1 %v8195_v46 }
 0x13b   :  { %v980_v45 = vrot.slane %v978_v28, 4  ;;  %v654_v47 = vrot.slane %v652_v30, 7  ;;  %v983_v52 = vrot.slane %v981_v29, 5  ;;  %v987_v53 = vshll.u32 %v895_v20, 16  ;;  %v1783_v4 = vld [vmem:[#allocation2 + $0x28] sm:$0xe]  ;;  %7826 = vmatpush3.bf16.msra.mxu0 %v8196_v34  ;;  %8113 = vmatpush3.bf16.msra.mxu1 %v8196_v34 }
 0x13c   :  { %v992_v54 = vshrl.u32 %v896_v25, 16  ;;  %v2088_v55 = vrot.slane %v2087_v37, 4  ;;  %v2101_v48 = vor.u32 %v2100_v39, %v2097_v11  ;;  %v995_v38 = vshll.u32 %v896_v25, 16  ;;  %v1784_v6 = vld [vmem:[#allocation2 + $0x2c] sm:$0x1]  ;;  %7827 = vmatprep.subr.bf16.mxu0 %v8197_v14  ;;  %8106 = vmatprep.subr.bf16.mxu1 %v8197_v14 }
 0x13d   :  { %v1001_v58 = vshll.u32 %v897_v31, 16  ;;  %v657_v59 = vor.u32 %v655_v56, %v654_v47  ;;  %v658_v61 = vrot.slane %v654_v47, 4  ;;  %v984_v0 = vor.u32 %v983_v52, %v980_v45  ;;  %v1785_v7 = vld [vmem:[#allocation2 + $0x30] sm:$0xe]  ;;  %v1786_v13 = vld [vmem:[#allocation2 + $0x34] sm:$0x1] }
 0x13e   :  { %v989_v2 = vrot.slane %v987_v53, 5  ;;  %v2093_v8 = vsel %vm8685_vm12, %v2088_v55, %v2092_v49  ;;  %v2102_v9 = vrot.slane %v2101_v48, 4  ;;  %v994_v62 = vrot.slane %v992_v54, 4  ;;  %v2052_v25 = vld [vmem:[#allocation2 + $0x20] sm:$0xf]  ;;  %v8198_v45 = vld [vmem:[%s10213_s3 + $0x30] sm:$0xff]  }
 0x13f   :  { %v997_v26 = vrot.slane %v995_v38, 5  ;;  %v790_v17 = vsel %vm8561_vm6, %v657_v59, %v789_v35  ;;  %v793_v18 = vsel %vm8541_vm3, %v658_v61, %v792_v50  ;;  %v985_v19 = vrot.slane %v984_v0, 4  ;;  %v2053_v28 = vld [vmem:[#allocation2 + $0x24] sm:$0x1]  ;;  %v2054_v39 = vld [vmem:[#allocation2 + $0x28] sm:$0xf]  ;;  %7828 = vmatpush3.bf16.msra.mxu0 %v8198_v45  ;;  %8114 = vmatpush3.bf16.msra.mxu1 %v8198_v45 }
 0x140   :  { %v1003_v12 = vrot.slane %v1001_v58, 5  ;;  %791 = vst [vmem:[#allocation2 + $0x78] sm:$0xf] %v790_v17  ;;  %794 = vst [vmem:[#allocation2 + $0x7c] sm:$0x1] %v793_v18  ;;  %v2107_v20 = vsel %vm8685_vm12, %v2102_v9, %v2106_v41  ;;  %v7298_v23 = vrot.slane %v1783_v4, 9  ;;  %v7808_v35 = vadd.f32 %v8820_v60, %v8805_v44 }
 0x141   :  { %v998_v21 = vor.u32 %v997_v26, %v994_v62  ;;  %v1857_v24 = vrot.slane %v1784_v6, 5  ;;  %v7326_v29 = vcombine.low %v2093_v8, %v2107_v20  ;;  %v990_v30 = vsel %vm8685_vm12, %v985_v19, %v989_v2  ;;  %v2055_v41 = vld [vmem:[#allocation2 + $0x2c] sm:$0x1]  ;;  %v1214_v53 = vld [vmem:[#allocation2 + $0x30] sm:$0xe]  ;;  %v8200_v44 = vld [vmem:[%s10213_s3 + $0x78] sm:$0xff]  }
 0x142   :  { %v7299_v56 = vrot.slane %v1785_v7, 9  ;;  %v1861_v49 = vrot.slane %v1786_v13, 5  ;;  %v7811_v37 = vadd.f32 %v8839_v43, %v8834_v33  ;;  %v2109_v47 = vshrl.u32 %v2052_v25, 16  ;;  %v1215_v55 = vld [vmem:[#allocation2 + $0x34] sm:$0x1]  ;;  %7829 = vmatprep.subr.bf16.mxu0 %v8200_v44  ;;  %v8201_v59 = vld [vmem:[%s10213_s3 + $0x38] sm:$0xff]   ;;  %8107 = vmatprep.subr.bf16.mxu1 %v8200_v44 }
 0x143   :  { %v999_v11 = vrot.slane %v998_v21, 4  ;;  %v1858_v31 = vsel %vm8648_vm9, %v7298_v23, %v1857_v24  ;;  %2328 = vrot.lane.b32.xlu0 %v7326_v29, %s8383_s30  ;;  %v2112_v50 = vshll.u32 %v2052_v25, 16  ;;  %v2118_v52 = vshll.u32 %v2053_v28, 16  ;;  %v1216_v34 = vld [vmem:[#allocation2 + $0x38] sm:$0xe]  ;;  %v8202_v17 = vld [vmem:[%s10213_s3 + $0x80] sm:$0xff]   ;;  %7830 = vmatpush3.bf16.msra.mxu0 %v8201_v59 }
 0x144   :  { %v1862_v46 = vsel %vm8648_vm9, %v7299_v56, %v1861_v49  ;;  %v351_v43 = vadd.f32 %v7808_v35, %v8644_v40  ;;  %v356_v54 = vadd.f32 %v7811_v37, %v8644_v40  ;;  %v2111_v38 = vrot.slane %v2109_v47, 4  ;;  %v1217_v7 = vld [vmem:[#allocation2 + $0x3c] sm:$0x1]  ;;  %v8172_v40 = vld [vmem:[#allocation2 + $0x40] ss:$8 sps:$4 sm:$0xff]   ;;  %8048 = vmatprep.subr.bf16.mxu0 %v8202_v17  ;;  %8115 = vmatpush3.bf16.msra.mxu1 %v8201_v59 }
 0x145   :  { %v1004_v60 = vsel %vm8685_vm12, %v999_v11, %v1003_v12  ;;  %v7312_v33 = vcombine.low %v1858_v31, %v1862_v46  ;;  %v2114_v58 = vrot.slane %v2112_v50, 5  ;;  %v8904_v4 = vrot.slane %v2118_v52, 5  ;;  %v8173_v8 = vld [vmem:[#allocation2 + $0x30] ss:$8 sps:$4 sm:$0xff]   ;;  %v1788_v21 = vld [vmem:[#allocation2 + $0x3c] sm:$0x1] }
 0x146   :  { %v7248_v48 = vcombine.low %v990_v30, %v1004_v60  ;;  %v375_v61 = vmax.f32 %v351_v43, 0.0  ;;  %v376_v0 = vmax.f32 %v356_v54, 0.0  ;;  %v2123_v2 = vshrl.u32 %v2054_v39, 16  ;;  %v1787_v14 = vld [vmem:[#allocation2 + $0x38] sm:$0xe] }
 0x147   :  { %v2126_v6 = vshll.u32 %v2054_v39, 16  ;;  %1931 = vrot.lane.b32.xlu0 %v7312_v33, %s8385_s15  ;;  %v2115_v9 = vor.u32 %v2114_v58, %v2111_v38  ;;  %v2132_v62 = vshll.u32 %v2055_v41, 16  ;;  %v7260_v26 = vrot.slane %v1214_v53, 9  ;;  %v1789_v23 = vld [vmem:[#allocation2 + $0x40] sm:$0xe] }
 0x148   :  { %1173 = vrot.lane.b32.xlu1 %v7248_v48, %s8385_s15  ;;  %v1295_v13 = vrot.slane %v1215_v55, 5  ;;  %v7716_v18 = vpack.c.bf16 %v375_v61, %v375_v61  ;;  %v7717_v19 = vpack.c.bf16 %v376_v0, %v376_v0  ;;  %v2125_v12 = vrot.slane %v2123_v2, 4  ;;  %v1790_v30 = vld [vmem:[#allocation2 + $0x44] sm:$0x1]  ;;  %v795_v35 = vld [vmem:[#allocation2 + $0x80] sm:$0xf] }
 0x149   :  { %v2128_v20 = vrot.slane %v2126_v6, 5  ;;  %v2116_v24 = vrot.slane %v2115_v9, 4  ;;  %v2134_v25 = vrot.slane %v2132_v62, 5  ;;  %v7261_v29 = vrot.slane %v1216_v34, 9  ;;  %v798_v37 = vld [vmem:[#allocation2 + $0x84] sm:$0x1] }
 0x14a   :  { %v1296_v28 = vsel %vm8648_vm9, %v7260_v26, %v1295_v13  ;;  %v660_v56 = vshrl.u32 %v7716_v18, 16  ;;  %v663_v49 = vshll.u32 %v7716_v18, 16  ;;  %v668_v11 = vshrl.u32 %v7717_v19, 16  ;;  %v801_v52 = vld [vmem:[#allocation2 + $0x88] sm:$0xf] }
 0x14b   :  { %v671_v31 = vshll.u32 %v7717_v19, 16  ;;  %2020 = vrot.lane.b32.xlu0 %v8173_v8, %s8384_s10  ;;  %v2121_v39 = vsel %vm8685_vm12, %v2116_v24, %v8904_v4  ;;  %v2129_v41 = vor.u32 %v2128_v20, %v2125_v12  ;;  %v1299_v45 = vrot.slane %v1217_v7, 5  ;;  %v804_v60 = vld [vmem:[#allocation2 + $0x8c] sm:$0x1]  ;;  %v8174_v33 = vld [vmem:[#allocation2 + $0x38] ss:$8 sps:$4 sm:$0xff]  }
 0x14c   :  { %2022 = vrot.lane.b32.xlu1 %v8172_v40, %s8384_s10  ;;  %v7300_v46 = vrot.slane %v1787_v14, 9  ;;  %v662_v47 = vrot.slane %v660_v56, 7  ;;  %v670_v50 = vrot.slane %v668_v11, 7  ;;  %v1865_v53 = vrot.slane %v1788_v21, 5  ;;  %v898_v59 = vld [vmem:[#allocation2 + $0x30] sm:$0xf] }
 0x14d   :  { %v7301_v44 = vrot.slane %v1789_v23, 9  ;;  %v2130_v43 = vrot.slane %v2129_v41, 4  ;;  %v1300_v54 = vsel %vm8648_vm9, %v7261_v29, %v1299_v45  ;;  %v1869_v55 = vrot.slane %v1790_v30, 5  ;;  %v899_v7 = vld [vmem:[#allocation2 + $0x34] sm:$0x1] }
 0x14e   :  { %v7814_v48 = vadd.f32 %v8859_v36, %v8851_v1  ;;  %v665_v38 = vor.u32 %v663_v49, %v662_v47  ;;  %v666_v58 = vrot.slane %v662_v47, 4  ;;  %v673_v4 = vor.u32 %v671_v31, %v670_v50  ;;  %v900_v40 = vld [vmem:[#allocation2 + $0x38] sm:$0xf]  ;;  %v901_v1 = vld [vmem:[#allocation2 + $0x3c] sm:$0x1] }
 0x14f   :  { %v674_v34 = vrot.slane %v670_v50, 4  ;;  %v2135_v61 = vsel %vm8685_vm12, %v2130_v43, %v2134_v25  ;;  %v7273_v0 = vcombine.low %v1296_v28, %v1300_v54  ;;  %v1866_v2 = vsel %vm8648_vm9, %v7300_v46, %v1865_v53  ;;  %v2056_v26 = vld [vmem:[#allocation2 + $0x30] sm:$0xf]  ;;  %v8344_v17 = vld [vmem:[%s10212_s2] ss:$0 sm:$0xff] }
 0x150   :  { %1452 = vrot.lane.b32.xlu1 %v8174_v33, %s8383_s30  ;;  %v1870_v6 = vsel %vm8648_vm9, %v7301_v44, %v1869_v55  ;;  %v796_v36 = vsel %vm8561_vm6, %v665_v38, %v795_v35  ;;  %v799_v8 = vsel %vm8541_vm3, %v666_v58, %v798_v37  ;;  %v802_v9 = vsel %vm8561_vm6, %v673_v4, %v801_v52  ;;  %v2057_v24 = vld [vmem:[#allocation2 + $0x34] sm:$0x1]  ;;  %v2058_v30 = vld [vmem:[#allocation2 + $0x38] sm:$0xf]  ;;  %v2059_v50 = vld [vmem:[#allocation2 + $0x3c] sm:$0x1] }
 0x151   :  { %v805_v62 = vsel %vm8541_vm3, %v674_v34, %v804_v60  ;;  %797 = vst [vmem:[#allocation2 + $0x80] sm:$0xf] %v796_v36  ;;  %800 = vst [vmem:[#allocation2 + $0x84] sm:$0x1] %v799_v8  ;;  %v7327_v13 = vcombine.low %v2121_v39, %v2135_v61  ;;  %v7313_v14 = vcombine.low %v1866_v2, %v1870_v6  ;;  %v1006_v19 = vshrl.u32 %v898_v59, 16 }
 0x152   :  { %803 = vst [vmem:[#allocation2 + $0x88] sm:$0xf] %v802_v9  ;;  %806 = vst [vmem:[#allocation2 + $0x8c] sm:$0x1] %v805_v62  ;;  %v359_v18 = vadd.f32 %v8344_v17, %v7814_v48  ;;  %v1009_v12 = vshll.u32 %v898_v59, 16  ;;  %v1015_v20 = vshll.u32 %v899_v7, 16 }
 0x153   :  { %v1020_v21 = vshrl.u32 %v900_v40, 16  ;;  %v1023_v23 = vshll.u32 %v900_v40, 16  ;;  %2330 = vrot.lane.b32.xlu0 %v7327_v13, %s8383_s30  ;;  %v1008_v28 = vrot.slane %v1006_v19, 4  ;;  %v1029_v29 = vshll.u32 %v901_v1, 16  ;;  %v1791_v44 = vld [vmem:[#allocation2 + $0x58] sm:$0xe] }
 0x154   :  { %1363 = vrot.lane.b32.xlu1 %v7273_v0, %s8384_s10  ;;  %v377_v25 = vmax.f32 %v359_v18, 0.0  ;;  %v2137_v56 = vshrl.u32 %v2056_v26, 16  ;;  %v1011_v49 = vrot.slane %v1009_v12, 5  ;;  %v1017_v11 = vrot.slane %v1015_v20, 5  ;;  %v1792_v55 = vld [vmem:[#allocation2 + $0x5c] sm:$0x1] }
 0x155   :  { %v1022_v31 = vrot.slane %v1020_v21, 4  ;;  %v1025_v35 = vrot.slane %v1023_v23, 5  ;;  %v1031_v39 = vrot.slane %v1029_v29, 5  ;;  %v2140_v45 = vshll.u32 %v2056_v26, 16  ;;  %v807_v48 = vld [vmem:[#allocation2 + $0x90] sm:$0xf] }
 0x156   :  { %v7718_v37 = vpack.c.bf16 %v377_v25, %v377_v25  ;;  %v2139_v41 = vrot.slane %v2137_v56, 4  ;;  %v1012_v46 = vor.u32 %v1011_v49, %v1008_v28  ;;  %v2146_v52 = vshll.u32 %v2057_v24, 16  ;;  %v810_v38 = vld [vmem:[#allocation2 + $0x94] sm:$0x1]  ;;  %v1793_v61 = vld [vmem:[#allocation2 + $0x60] sm:$0xe] }
 0x157   :  { %v1026_v47 = vor.u32 %v1025_v35, %v1022_v31  ;;  %v2151_v53 = vshrl.u32 %v2058_v30, 16  ;;  %1933 = vrot.lane.b32.xlu0 %v7313_v14, %s8385_s15  ;;  %v2142_v43 = vrot.slane %v2140_v45, 5  ;;  %v2154_v54 = vshll.u32 %v2058_v30, 16  ;;  %v1794_v40 = vld [vmem:[#allocation2 + $0x64] sm:$0x1] }
 0x158   :  { %v676_v60 = vshrl.u32 %v7718_v37, 16  ;;  %v679_v33 = vshll.u32 %v7718_v37, 16  ;;  %v1013_v58 = vrot.slane %v1012_v46, 4  ;;  %v2148_v34 = vrot.slane %v2146_v52, 5  ;;  %v2060_v62 = vld [vmem:[#allocation2 + $0x40] sm:$0xf] }
 0x159   :  { %v1027_v4 = vrot.slane %v1026_v47, 4  ;;  %v2153_v59 = vrot.slane %v2151_v53, 4  ;;  %v2143_v2 = vor.u32 %v2142_v43, %v2139_v41  ;;  %v2156_v6 = vrot.slane %v2154_v54, 5  ;;  %v2061_v26 = vld [vmem:[#allocation2 + $0x44] sm:$0x1] }
 0x15a   :  { %v678_v0 = vrot.slane %v676_v60, 7  ;;  %v2160_v7 = vshll.u32 %v2059_v50, 16  ;;  %v1018_v1 = vsel %vm8685_vm12, %v1013_v58, %v1017_v11  ;;  %v7302_v8 = vrot.slane %v1791_v44, 9  ;;  %v1220_v19 = vld [vmem:[#allocation2 + $0x58] sm:$0xe] }
 0x15b   :  { %v1032_v36 = vsel %vm8685_vm12, %v1027_v4, %v1031_v39  ;;  %v1873_v9 = vrot.slane %v1792_v55, 5  ;;  %v2144_v18 = vrot.slane %v2143_v2, 4  ;;  %v1221_v12 = vld [vmem:[#allocation2 + $0x5c] sm:$0x1]  ;;  %v2157_v20 = vor.u32 %v2156_v6, %v2153_v59  ;;  %v1795_v25 = vld [vmem:[#allocation2 + $0x68] sm:$0xe] }
 0x15c   :  { %v681_v13 = vor.u32 %v679_v33, %v678_v0  ;;  %v682_v14 = vrot.slane %v678_v0, 4  ;;  %v7249_v17 = vcombine.low %v1018_v1, %v1032_v36  ;;  %v2162_v21 = vrot.slane %v2160_v7, 5  ;;  %v1796_v28 = vld [vmem:[#allocation2 + $0x6c] sm:$0x1]  ;;  %v8175_v49 = vld [vmem:[#allocation2 + $0x58] ss:$8 sps:$4 sm:$0xff]  }
 0x15d   :  { %v1874_v23 = vsel %vm8648_vm9, %v7302_v8, %v1873_v9  ;;  %v7303_v24 = vrot.slane %v1793_v61, 9  ;;  %v2149_v56 = vsel %vm8685_vm12, %v2144_v18, %v2148_v34  ;;  %v1877_v11 = vrot.slane %v1794_v40, 5  ;;  %v1797_v31 = vld [vmem:[#allocation2 + $0x70] sm:$0xe]  ;;  %v1798_v35 = vld [vmem:[#allocation2 + $0x74] sm:$0x1] }
 0x15e   :  { %v808_v29 = vsel %vm8561_vm6, %v681_v13, %v807_v48  ;;  %v811_v30 = vsel %vm8541_vm3, %v682_v14, %v810_v38  ;;  %1175 = vrot.lane.b32.xlu1 %v7249_v17, %s8385_s15  ;;  %v2158_v37 = vrot.slane %v2157_v20, 4  ;;  %v2165_v39 = vshrl.u32 %v2060_v62, 16  ;;  %v904_v42 = vld [vmem:[#allocation2 + $0x58] sm:$0xf]  ;;  %v905_v33 = vld [vmem:[#allocation2 + $0x5c] sm:$0x1] }
 0x15f   :  { %809 = vst [vmem:[#allocation2 + $0x90] sm:$0xf] %v808_v29  ;;  %812 = vst [vmem:[#allocation2 + $0x94] sm:$0x1] %v811_v30  ;;  %v2168_v41 = vshll.u32 %v2060_v62, 16  ;;  %v2174_v45 = vshll.u32 %v2061_v26, 16  ;;  %v1878_v32 = vsel %vm8648_vm9, %v7303_v24, %v1877_v11 }
 0x160   :  { %v7263_v46 = vrot.slane %v1220_v19, 9  ;;  %v1307_v47 = vrot.slane %v1221_v12, 5  ;;  %v7304_v50 = vrot.slane %v1795_v25, 9  ;;  %v2163_v52 = vsel %vm8685_vm12, %v2158_v37, %v2162_v21  ;;  %v2064_v38 = vld [vmem:[#allocation2 + $0x60] sm:$0xf] }
 0x161   :  { %v7314_v53 = vcombine.low %v1874_v23, %v1878_v32  ;;  %v2167_v44 = vrot.slane %v2165_v39, 4  ;;  %v2170_v60 = vrot.slane %v2168_v41, 5  ;;  %v7328_v43 = vcombine.low %v2149_v56, %v2163_v52  ;;  %v2065_v61 = vld [vmem:[#allocation2 + $0x64] sm:$0x1]  ;;  %v2066_v0 = vld [vmem:[#allocation2 + $0x68] sm:$0xf] }
 0x162   :  { %1454 = vrot.lane.b32.xlu1 %v8175_v49, %s8383_s30  ;;  %v2176_v54 = vrot.slane %v2174_v45, 5  ;;  %v8966_v55 = vsel %vm8648_vm9, %v7263_v46, %v1307_v47  ;;  %v1881_v48 = vrot.slane %v1796_v28, 5  ;;  %v7305_v34 = vrot.slane %v1797_v31, 9  ;;  %v2067_v1 = vld [vmem:[#allocation2 + $0x6c] sm:$0x1] }
 0x163   :  { %v2171_v58 = vor.u32 %v2170_v60, %v2167_v44  ;;  %v7274_v4 = vcombine.low %v8723_v22, %v8966_v55  ;;  %v1885_v59 = vrot.slane %v1798_v35, 5  ;;  %2332 = vrot.lane.b32.xlu0 %v7328_v43, %s8383_s30  ;;  %v1048_v6 = vshrl.u32 %v904_v42, 16  ;;  %v1222_v62 = vld [vmem:[#allocation2 + $0x60] sm:$0xe]  ;;  %v1223_v18 = vld [vmem:[#allocation2 + $0x64] sm:$0x1] }
 0x164   :  { %v8973_v2 = vsel %vm8648_vm9, %v7304_v50, %v1881_v48  ;;  %v1051_v7 = vshll.u32 %v904_v42, 16  ;;  %v1057_v40 = vshll.u32 %v905_v33, 16  ;;  %v2193_v9 = vshrl.u32 %v2064_v38, 16  ;;  %v1224_v23 = vld [vmem:[#allocation2 + $0x68] sm:$0xe] }
 0x165   :  { %v2172_v36 = vrot.slane %v2171_v58, 4  ;;  %v1886_v8 = vsel %vm8648_vm9, %v7305_v34, %v1885_v59  ;;  %v2196_v22 = vshll.u32 %v2064_v38, 16  ;;  %v1050_v13 = vrot.slane %v1048_v6, 4  ;;  %v8176_v25 = vld [vmem:[#allocation2 + $0x60] ss:$8 sps:$4 sm:$0xff]  }
 0x166   :  { %v7315_v26 = vcombine.low %v8973_v2, %v1886_v8  ;;  %v1053_v14 = vrot.slane %v1051_v7, 5  ;;  %v1059_v17 = vrot.slane %v1057_v40, 5  ;;  %v2195_v12 = vrot.slane %v2193_v9, 4  ;;  %v1225_v56 = vld [vmem:[#allocation2 + $0x6c] sm:$0x1] }
 0x167   :  { %v2177_v19 = vsel %vm8685_vm12, %v2172_v36, %v2176_v54  ;;  %v2198_v20 = vrot.slane %v2196_v22, 5  ;;  %v2202_v21 = vshll.u32 %v2065_v61, 16  ;;  %1935 = vrot.lane.b32.xlu0 %v7314_v53, %s8385_s15  ;;  %v2207_v29 = vshrl.u32 %v2066_v0, 16  ;;  %v1799_v49 = vld [vmem:[#allocation2 + $0x78] sm:$0xe] }
 0x168   :  { %v7329_v24 = vcombine.low %v2177_v19, %v2191_v27  ;;  %v1054_v28 = vor.u32 %v1053_v14, %v1050_v13  ;;  %v2210_v30 = vshll.u32 %v2066_v0, 16  ;;  %v2216_v35 = vshll.u32 %v2067_v1, 16  ;;  %v1800_v39 = vld [vmem:[#allocation2 + $0x7c] sm:$0x1]  ;;  %v1801_v46 = vld [vmem:[#allocation2 + $0x80] sm:$0xe] }
 0x169   :  { %v2199_v11 = vor.u32 %v2198_v20, %v2195_v12  ;;  %v2204_v31 = vrot.slane %v2202_v21, 5  ;;  %v7264_v37 = vrot.slane %v1222_v62, 9  ;;  %v2209_v45 = vrot.slane %v2207_v29, 4  ;;  %v1802_v50 = vld [vmem:[#allocation2 + $0x84] sm:$0x1] }
 0x16a   :  { %2334 = vrot.lane.b32.xlu1 %v7329_v24, %s8383_s30  ;;  %v1055_v41 = vrot.slane %v1054_v28, 4  ;;  %v2212_v42 = vrot.slane %v2210_v30, 5  ;;  %v1311_v32 = vrot.slane %v1223_v18, 5  ;;  %v2218_v3 = vrot.slane %v2216_v35, 5  ;;  %v906_v33 = vld [vmem:[#allocation2 + $0x60] sm:$0xf] }
 0x16b   :  { %v2200_v63 = vrot.slane %v2199_v11, 4  ;;  %v7265_v27 = vrot.slane %v1224_v23, 9  ;;  %v1315_v47 = vrot.slane %v1225_v56, 5  ;;  %2024 = vrot.lane.b32.xlu0 %v8176_v25, %s8384_s10  ;;  %v7306_v60 = vrot.slane %v1799_v49, 9  ;;  %v907_v43 = vld [vmem:[#allocation2 + $0x64] sm:$0x1] }
 0x16c   :  { %v1060_v52 = vsel %vm8685_vm12, %v1055_v41, %v1059_v17  ;;  %v2213_v53 = vor.u32 %v2212_v42, %v2209_v45  ;;  %v8992_v44 = vsel %vm8648_vm9, %v7264_v37, %v1311_v32  ;;  %v1889_v38 = vrot.slane %v1800_v39, 5  ;;  %v908_v58 = vld [vmem:[#allocation2 + $0x68] sm:$0xf]  ;;  %v909_v16 = vld [vmem:[#allocation2 + $0x6c] sm:$0x1] }
 0x16d   :  { %v7250_v54 = vcombine.low %v1046_v5, %v1060_v52  ;;  %v2205_v55 = vsel %vm8685_vm12, %v2200_v63, %v2204_v31  ;;  %v9003_v48 = vsel %vm8648_vm9, %v7265_v27, %v1315_v47  ;;  %v7307_v61 = vrot.slane %v1801_v46, 9  ;;  %v8177_v7 = vld [vmem:[#allocation2 + $0x70] ss:$8 sps:$4 sm:$0xff]   ;;  %v2069_v9 = vld [vmem:[#allocation2 + $0x74] sm:$0x1] }
 0x16e   :  { %1365 = vrot.lane.b32.xlu1 %v7274_v4, %s8384_s10  ;;  %v2214_v34 = vrot.slane %v2213_v53, 4  ;;  %v7275_v59 = vcombine.low %v8992_v44, %v9003_v48  ;;  %v1893_v0 = vrot.slane %v1802_v50, 5  ;;  %v9010_v15 = vsel %vm8648_vm9, %v7306_v60, %v1889_v38  ;;  %v2068_v8 = vld [vmem:[#allocation2 + $0x70] sm:$0xf]  ;;  %v2070_v17 = vld [vmem:[#allocation2 + $0x78] sm:$0xf] }
 0x16f   :  { %v1062_v5 = vshrl.u32 %v906_v33, 16  ;;  %v1065_v2 = vshll.u32 %v906_v33, 16  ;;  %v1071_v6 = vshll.u32 %v907_v43, 16  ;;  %1937 = vrot.lane.b32.xlu0 %v7315_v26, %s8385_s15  ;;  %v1076_v1 = vshrl.u32 %v908_v58, 16  ;;  %v2071_v26 = vld [vmem:[#allocation2 + $0x7c] sm:$0x1] }
 0x170   :  { %v2219_v4 = vsel %vm8685_vm12, %v2214_v34, %v2218_v3  ;;  %v9017_v40 = vsel %vm8648_vm9, %v7307_v61, %v1893_v0  ;;  %v1079_v36 = vshll.u32 %v908_v58, 16  ;;  %v8178_v18 = vld [vmem:[#allocation2 + $0x68] ss:$8 sps:$4 sm:$0xff]   ;;  %v1085_v21 = vshll.u32 %v909_v16, 16  ;;  %v1227_v24 = vld [vmem:[#allocation2 + $0x74] sm:$0x1] }
 0x171   :  { %v7330_v22 = vcombine.low %v2205_v55, %v2219_v4  ;;  %v7316_v62 = vcombine.low %v9010_v15, %v9017_v40  ;;  %v1064_v13 = vrot.slane %v1062_v5, 4  ;;  %v1067_v14 = vrot.slane %v1065_v2, 5  ;;  %v1226_v23 = vld [vmem:[#allocation2 + $0x70] sm:$0xe]  ;;  %v1228_v56 = vld [vmem:[#allocation2 + $0x78] sm:$0xe] }
 0x172   :  { %1177 = vrot.lane.b32.xlu1 %v7250_v54, %s8385_s15  ;;  %v1073_v19 = vrot.slane %v1071_v6, 5  ;;  %v1078_v12 = vrot.slane %v1076_v1, 4  ;;  %v1081_v20 = vrot.slane %v1079_v36, 5  ;;  %v2221_v28 = vshrl.u32 %v2068_v8, 16  ;;  %v1229_v37 = vld [vmem:[#allocation2 + $0x7c] sm:$0x1] }
 0x173   :  { %v1068_v25 = vor.u32 %v1067_v14, %v1064_v13  ;;  %v2224_v29 = vshll.u32 %v2068_v8, 16  ;;  %v2230_v30 = vshll.u32 %v2069_v9, 16  ;;  %2026 = vrot.lane.b32.xlu0 %v8177_v7, %s8384_s10  ;;  %v1087_v11 = vrot.slane %v1085_v21, 5  ;;  %v1803_v27 = vld [vmem:[#allocation2 + $0x88] sm:$0xe] }
 0x174   :  { %v1082_v49 = vor.u32 %v1081_v20, %v1078_v12  ;;  %v2235_v31 = vshrl.u32 %v2070_v17, 16  ;;  %v2238_v35 = vshll.u32 %v2070_v17, 16  ;;  %v2223_v41 = vrot.slane %v2221_v28, 4  ;;  %v1804_v60 = vld [vmem:[#allocation2 + $0x8c] sm:$0x1] }
 0x175   :  { %v1069_v39 = vrot.slane %v1068_v25, 4  ;;  %v2226_v45 = vrot.slane %v2224_v29, 5  ;;  %v2232_v42 = vrot.slane %v2230_v30, 5  ;;  %v2244_v3 = vshll.u32 %v2071_v26, 16  ;;  %v1805_v33 = vld [vmem:[#allocation2 + $0x90] sm:$0xe] }
 0x176   :  { %1456 = vrot.lane.b32.xlu1 %v8178_v18, %s8383_s30  ;;  %v1083_v32 = vrot.slane %v1082_v49, 4  ;;  %v2237_v46 = vrot.slane %v2235_v31, 4  ;;  %v2240_v63 = vrot.slane %v2238_v35, 5  ;;  %v7266_v52 = vrot.slane %v1226_v23, 9  ;;  %v1806_v58 = vld [vmem:[#allocation2 + $0x94] sm:$0x1] }
 0x177   :  { %v1074_v47 = vsel %vm8685_vm12, %v1069_v39, %v1073_v19  ;;  %v2227_v50 = vor.u32 %v2226_v45, %v2223_v41  ;;  %v1319_v53 = vrot.slane %v1227_v24, 5  ;;  %2336 = vrot.lane.b32.xlu0 %v7330_v22, %s8383_s30  ;;  %v2246_v55 = vrot.slane %v2244_v3, 5  ;;  %v910_v34 = vld [vmem:[#allocation2 + $0x70] sm:$0xf]  ;;  %v911_v2 = vld [vmem:[#allocation2 + $0x74] sm:$0x1] }
 0x178   :  { %v1088_v43 = vsel %vm8685_vm12, %v1083_v32, %v1087_v11  ;;  %v2241_v54 = vor.u32 %v2240_v63, %v2237_v46  ;;  %v7267_v38 = vrot.slane %v1228_v56, 9  ;;  %v1323_v5 = vrot.slane %v1229_v37, 5  ;;  %v912_v36 = vld [vmem:[#allocation2 + $0x78] sm:$0xf]  ;;  %v913_v13 = vld [vmem:[#allocation2 + $0x7c] sm:$0x1] }
 0x179   :  { %v7251_v61 = vcombine.low %v1074_v47, %v1088_v43  ;;  %v2228_v0 = vrot.slane %v2227_v50, 4  ;;  %v9031_v16 = vsel %vm8648_vm9, %v7266_v52, %v1319_v53  ;;  %v7308_v7 = vrot.slane %v1803_v27, 9  ;;  %v8179_v44 = vld [vmem:[#allocation2 + $0x80] ss:$8 sps:$4 sm:$0xff]   ;;  %v2075_v29 = vld [vmem:[#allocation2 + $0x8c] sm:$0x1] }
 0x17a   :  { %1367 = vrot.lane.b32.xlu1 %v7275_v59, %s8384_s10  ;;  %v2242_v6 = vrot.slane %v2241_v54, 4  ;;  %v1897_v4 = vrot.slane %v1804_v60, 5  ;;  %v7309_v1 = vrot.slane %v1805_v33, 9  ;;  %v9041_v9 = vsel %vm8648_vm9, %v7267_v38, %v1323_v5  ;;  %v2072_v18 = vld [vmem:[#allocation2 + $0x80] sm:$0xf] }
 0x17b   :  { %v2233_v8 = vsel %vm8685_vm12, %v2228_v0, %v2232_v42  ;;  %v1901_v22 = vrot.slane %v1806_v58, 5  ;;  %v1090_v14 = vshrl.u32 %v910_v34, 16  ;;  %1939 = vrot.lane.b32.xlu0 %v7316_v62, %s8385_s15  ;;  %v7276_v59 = vcombine.low %v9031_v16, %v9041_v9  ;;  %v2073_v62 = vld [vmem:[#allocation2 + $0x84] sm:$0x1]  ;;  %v2074_v20 = vld [vmem:[#allocation2 + $0x88] sm:$0xf] }
 0x17c   :  { %v2247_v48 = vsel %vm8685_vm12, %v2242_v6, %v2246_v55  ;;  %v9053_v17 = vsel %vm8648_vm9, %v7308_v7, %v1897_v4  ;;  %v1093_v26 = vshll.u32 %v910_v34, 16  ;;  %v1099_v40 = vshll.u32 %v911_v2, 16  ;;  %v8180_v21 = vld [vmem:[#allocation2 + $0x78] ss:$8 sps:$4 sm:$0xff]   ;;  %v1231_v35 = vld [vmem:[#allocation2 + $0x84] sm:$0x1] }
 0x17d   :  { %v7331_v19 = vcombine.low %v2233_v8, %v2247_v48  ;;  %v9057_v12 = vsel %vm8648_vm9, %v7309_v1, %v1901_v22  ;;  %v1092_v15 = vrot.slane %v1090_v14, 4  ;;  %v1104_v25 = vshrl.u32 %v912_v36, 16  ;;  %v1230_v30 = vld [vmem:[#allocation2 + $0x80] sm:$0xe]  ;;  %v1232_v42 = vld [vmem:[#allocation2 + $0x88] sm:$0xe] }
 0x17e   :  { %1179 = vrot.lane.b32.xlu1 %v7251_v61, %s8385_s15  ;;  %v7317_v23 = vcombine.low %v9053_v17, %v9057_v12  ;;  %v1095_v24 = vrot.slane %v1093_v26, 5  ;;  %v1107_v28 = vshll.u32 %v912_v36, 16  ;;  %v1101_v56 = vrot.slane %v1099_v40, 5  ;;  %v1233_v32 = vld [vmem:[#allocation2 + $0x8c] sm:$0x1] }
 0x17f   :  { %v1113_v49 = vshll.u32 %v913_v13, 16  ;;  %v2249_v11 = vshrl.u32 %v2072_v18, 16  ;;  %v2252_v31 = vshll.u32 %v2072_v18, 16  ;;  %2028 = vrot.lane.b32.xlu0 %v8179_v44, %s8384_s10  ;;  %v1106_v39 = vrot.slane %v1104_v25, 4  ;;  %v8189_v47 = vld [vmem:[#allocation2] ss:$8 sps:$4 sm:$0xff]  }
 0x180   :  { %v1096_v37 = vor.u32 %v1095_v24, %v1092_v15  ;;  %v1109_v41 = vrot.slane %v1107_v28, 5  ;;  %v2258_v45 = vshll.u32 %v2073_v62, 16  ;;  %v2263_v27 = vshrl.u32 %v2074_v20, 16  ;;  %v914_v33 = vld [vmem:[#allocation2 + $0x80] sm:$0xf]  ;;  %878 = vst.msk [vmem:[#allocation3] sm:$0xff] %vm877_vm13, %v8189_v47 }
 0x181   :  { %v1115_v46 = vrot.slane %v1113_v49, 5  ;;  %v2251_v63 = vrot.slane %v2249_v11, 4  ;;  %v2254_v3 = vrot.slane %v2252_v31, 5  ;;  %v2266_v60 = vshll.u32 %v2074_v20, 16  ;;  %v915_v58 = vld [vmem:[#allocation2 + $0x84] sm:$0x1] }
 0x182   :  { %1458 = vrot.lane.b32.xlu1 %v8180_v21, %s8383_s30  ;;  %v1097_v50 = vrot.slane %v1096_v37, 4  ;;  %v1110_v52 = vor.u32 %v1109_v41, %v1106_v39  ;;  %v2260_v53 = vrot.slane %v2258_v45, 5  ;;  %v2265_v54 = vrot.slane %v2263_v27, 4  ;;  %v916_v5 = vld [vmem:[#allocation2 + $0x88] sm:$0xf] }
 0x183   :  { %v2255_v43 = vor.u32 %v2254_v3, %v2251_v63  ;;  %v2272_v55 = vshll.u32 %v2075_v29, 16  ;;  %v7268_v38 = vrot.slane %v1230_v30, 9  ;;  %2338 = vrot.lane.b32.xlu0 %v7331_v19, %s8383_s30  ;;  %v2268_v0 = vrot.slane %v2266_v60, 5  ;;  %v917_v2 = vld [vmem:[#allocation2 + $0x8c] sm:$0x1] }
 0x184   :  { %v1102_v34 = vsel %vm8685_vm12, %v1097_v50, %v1101_v56  ;;  %v1111_v61 = vrot.slane %v1110_v52, 4  ;;  %v1327_v16 = vrot.slane %v1231_v35, 5  ;;  %v7269_v4 = vrot.slane %v1232_v42, 9  ;;  %v2076_v36 = vld [vmem:[#allocation2 + $0x90] sm:$0xf] }
 0x185   :  { %v2256_v6 = vrot.slane %v2255_v43, 4  ;;  %v2274_v7 = vrot.slane %v2272_v55, 5  ;;  %v1331_v1 = vrot.slane %v1233_v32, 5  ;;  %v2269_v9 = vor.u32 %v2268_v0, %v2265_v54  ;;  %v2077_v26 = vld [vmem:[#allocation2 + $0x94] sm:$0x1] }
 0x186   :  { %1369 = vrot.lane.b32.xlu1 %v7276_v59, %s8384_s10  ;;  %v1116_v8 = vsel %vm8685_vm12, %v1111_v61, %v1115_v46  ;;  %v1328_v22 = vsel %vm8648_vm9, %v7268_v38, %v1327_v16  ;;  %v1118_v13 = vshrl.u32 %v914_v33, 16  ;;  %v1121_v17 = vshll.u32 %v914_v33, 16  ;;  %v8194_v18 = vld [vmem:[#allocation2 + $0x10] ss:$8 sps:$4 sm:$0xff]   ;;  %v8199_v24 = vld [vmem:[#allocation2 + $0x20] ss:$8 sps:$4 sm:$0xff]  }
 0x187   :  { %v7252_v14 = vcombine.low %v1102_v34, %v1116_v8  ;;  %v2261_v44 = vsel %vm8685_vm12, %v2256_v6, %v2260_v53  ;;  %v1332_v48 = vsel %vm8648_vm9, %v7269_v4, %v1331_v1  ;;  %1941 = vrot.lane.b32.xlu0 %v7317_v23, %s8385_s15  ;;  %v2270_v59 = vrot.slane %v2269_v9, 4  ;;  %879 = vst.msk [vmem:[#allocation3 + $0x18] sm:$0xff] %vm877_vm13, %v8194_v18  ;;  %v2078_v29 = vld [vmem:[#allocation2 + $0x98] sm:$0xf]  ;;  %v2079_v35 = vld [vmem:[#allocation2 + $0x9c] sm:$0x1] }
 0x188   :  { %v7277_v19 = vcombine.low %v1328_v22, %v1332_v48  ;;  %v1120_v12 = vrot.slane %v1118_v13, 4  ;;  %v1127_v15 = vshll.u32 %v915_v58, 16  ;;  %v1123_v40 = vrot.slane %v1121_v17, 5  ;;  %880 = vst.msk [vmem:[#allocation3 + $0x30] sm:$0xff] %vm877_vm13, %v8199_v24  ;;  %v1479_v3 = vld [vmem:[#allocation2 + $0x8] sm:$0xf]  ;;  %v9085_v52 = vpop.permute.xlu0 %1357 }
 0x189   :  { %v1132_v62 = vshrl.u32 %v916_v5, 16  ;;  %v1135_v20 = vshll.u32 %v916_v5, 16  ;;  %v1141_v21 = vshll.u32 %v917_v2, 16  ;;  %v2275_v25 = vsel %vm8685_vm12, %v2270_v59, %v2274_v7  ;;  %v1480_v53 = vld [vmem:[#allocation2 + $0xc] sm:$0x1] }
 0x18a   :  { %1181 = vrot.lane.b32.xlu1 %v7252_v14, %s8385_s15  ;;  %v1129_v28 = vrot.slane %v1127_v15, 5  ;;  %v2277_v30 = vshrl.u32 %v2076_v36, 16  ;;  %v2280_v23 = vshll.u32 %v2076_v36, 16  ;;  %v7332_v56 = vcombine.low %v2261_v44, %v2275_v25  ;;  %v1481_v60 = vld [vmem:[#allocation2 + $0x10] sm:$0xf] }
 0x18b   :  { %v1124_v49 = vor.u32 %v1123_v40, %v1120_v12  ;;  %v1134_v11 = vrot.slane %v1132_v62, 4  ;;  %v1137_v31 = vrot.slane %v1135_v20, 5  ;;  %v1143_v37 = vrot.slane %v1141_v21, 5  ;;  %v8181_v33 = vld [vmem:[#allocation2 + $0x90] ss:$8 sps:$4 sm:$0xff]   ;;  %v9097_v62 = vpop.permute.xlu1 %1446 }
 0x18c   :  { %v2279_v39 = vrot.slane %v2277_v30, 4  ;;  %v2282_v41 = vrot.slane %v2280_v23, 5  ;;  %v2286_v45 = vshll.u32 %v2077_v26, 16  ;;  %2340 = vrot.lane.b32.xlu0 %v7332_v56, %s8383_s30  ;;  %v2291_v46 = vshrl.u32 %v2078_v29, 16  ;;  %v1482_v2 = vld [vmem:[#allocation2 + $0x14] sm:$0x1] }
 0x18d   :  { %v1125_v42 = vrot.slane %v1124_v49, 4  ;;  %v1138_v32 = vor.u32 %v1137_v31, %v1134_v11  ;;  %v2294_v63 = vshll.u32 %v2078_v29, 16  ;;  %v2300_v50 = vshll.u32 %v2079_v35, 16  ;;  %v1483_v4 = vld [vmem:[#allocation2 + $0x18] sm:$0xf]  ;;  %v1928_v12 = vpop.permute.xlu0 %1927 }
 0x18e   :  { %1371 = vrot.lane.b32.xlu1 %v7277_v19, %s8384_s10  ;;  %v2283_v27 = vor.u32 %v2282_v41, %v2279_v39  ;;  %v2288_v47 = vrot.slane %v2286_v45, 5  ;;  %v2293_v55 = vrot.slane %v2291_v46, 4  ;;  %v1512_v61 = vshrl.u32 %v1479_v3, 16  ;;  %v1484_v9 = vld [vmem:[#allocation2 + $0x1c] sm:$0x1] }
 0x18f   :  { %v1130_v43 = vsel %vm8685_vm12, %v1125_v42, %v1129_v28  ;;  %v1139_v54 = vrot.slane %v1138_v32, 4  ;;  %v2296_v38 = vrot.slane %v2294_v63, 5  ;;  %v2302_v34 = vrot.slane %v2300_v50, 5  ;;  %v1485_v22 = vld [vmem:[#allocation2 + $0x20] sm:$0xf]  ;;  %v9103_v46 = vpop.permute.xlu1 %1448 }
 0x190   :  { %v2284_v58 = vrot.slane %v2283_v27, 4  ;;  %v1515_v0 = vshll.u32 %v1479_v3, 16  ;;  %2030 = vrot.lane.b32.xlu0 %v8181_v33, %s8384_s10  ;;  %v1521_v6 = vshll.u32 %v1480_v53, 16  ;;  %v1526_v7 = vshrl.u32 %v1481_v60, 16  ;;  %v1486_v17 = vld [vmem:[#allocation2 + $0x24] sm:$0x1] }
 0x191   :  { %v1144_v16 = vsel %vm8685_vm12, %v1139_v54, %v1143_v37  ;;  %v2297_v5 = vor.u32 %v2296_v38, %v2293_v55  ;;  %v1514_v36 = vrot.slane %v1512_v61, 4  ;;  %v1529_v48 = vshll.u32 %v1481_v60, 16  ;;  %v8182_v26 = vld [vmem:[#allocation2 + $0x88] ss:$8 sps:$4 sm:$0xff]   ;;  %v1488_v25 = vld [vmem:[#allocation2 + $0x2c] sm:$0x1]  ;;  %v2017_v50 = vpop.permute.xlu0 %2016 }
 0x192   :  { %v7253_v1 = vcombine.low %v1130_v43, %v1144_v16  ;;  %v1517_v8 = vrot.slane %v1515_v0, 5  ;;  %v2289_v13 = vsel %vm8685_vm12, %v2284_v58, %v2288_v47  ;;  %v1528_v44 = vrot.slane %v1526_v7, 4  ;;  %v1487_v15 = vld [vmem:[#allocation2 + $0x28] sm:$0xf]  ;;  %v1489_v56 = vld [vmem:[#allocation2 + $0x30] sm:$0xf] }
 0x193   :  { %v2298_v14 = vrot.slane %v2297_v5, 4  ;;  %v1523_v59 = vrot.slane %v1521_v6, 5  ;;  %v1535_v19 = vshll.u32 %v1482_v2, 16  ;;  %v1531_v20 = vrot.slane %v1529_v48, 5  ;;  %v1490_v42 = vld [vmem:[#allocation2 + $0x34] sm:$0x1] }
 0x194   :  { %1183 = vrot.lane.b32.xlu1 %v7253_v1, %s8385_s15  ;;  %v1518_v18 = vor.u32 %v1517_v8, %v1514_v36  ;;  %v1540_v21 = vshrl.u32 %v1483_v4, 16  ;;  %v1543_v24 = vshll.u32 %v1483_v4, 16  ;;  %v1549_v23 = vshll.u32 %v1484_v9, 16  ;;  %v8204_v47 = vld [vmem:[#allocation2 + $0x30] ss:$8 sps:$4 sm:$0xff]  }
 0x195   :  { %v2303_v40 = vsel %vm8685_vm12, %v2298_v14, %v2302_v34  ;;  %v1537_v30 = vrot.slane %v1535_v19, 5  ;;  %v1532_v49 = vor.u32 %v1531_v20, %v1528_v44  ;;  %v1554_v35 = vshrl.u32 %v1485_v22, 16  ;;  %v2360_v54 = vld [vmem:[#allocation2 + $0x10] sm:$0xe]  ;;  %v2361_v61 = vld [vmem:[#allocation2 + $0x14] sm:$0x1] }
 0x196   :  { %v7333_v28 = vcombine.low %v2289_v13, %v2303_v40  ;;  %v1519_v29 = vrot.slane %v1518_v18, 4  ;;  %v1542_v11 = vrot.slane %v1540_v21, 4  ;;  %v1545_v31 = vrot.slane %v1543_v24, 5  ;;  %881 = vst.msk [vmem:[#allocation3 + $0x48] sm:$0xff] %vm877_vm13, %v8204_v47  ;;  %v2362_v6 = vld [vmem:[#allocation2 + $0x18] sm:$0xe] }
 0x197   :  { %v1551_v39 = vrot.slane %v1549_v23, 5  ;;  %v1557_v41 = vshll.u32 %v1485_v22, 16  ;;  %v1563_v45 = vshll.u32 %v1486_v17, 16  ;;  %v1533_v32 = vrot.slane %v1532_v49, 4  ;;  %v2363_v7 = vld [vmem:[#allocation2 + $0x1c] sm:$0x1]  ;;  %v9114_v17 = vpop.permute.xlu1 %1359 }
 0x198   :  { %2342 = vrot.lane.b32.xlu0 %v7333_v28, %s8383_s30  ;;  %1460 = vrot.lane.b32.xlu1 %v8182_v26, %s8383_s30  ;;  %v1524_v37 = vsel %vm8685_vm12, %v1519_v29, %v1523_v59  ;;  %v1546_v63 = vor.u32 %v1545_v31, %v1542_v11  ;;  %v1556_v3 = vrot.slane %v1554_v35, 4  ;;  %v1568_v27 = vshrl.u32 %v1487_v15, 16  ;;  %v1491_v9 = vld [vmem:[#allocation2 + $0x38] sm:$0xf]  ;;  %v1492_v48 = vld [vmem:[#allocation2 + $0x3c] sm:$0x1] }
 0x199   :  { %v1559_v53 = vrot.slane %v1557_v41, 5  ;;  %v1565_v60 = vrot.slane %v1563_v45, 5  ;;  %v1571_v33 = vshll.u32 %v1487_v15, 16  ;;  %v1577_v43 = vshll.u32 %v1488_v25, 16  ;;  %v1493_v15 = vld [vmem:[#allocation2 + $0x40] sm:$0xf] }
 0x19a   :  { %v1538_v55 = vsel %vm8685_vm12, %v1533_v32, %v1537_v30  ;;  %v1547_v38 = vrot.slane %v1546_v63, 4  ;;  %v1570_v58 = vrot.slane %v1568_v27, 4  ;;  %v1582_v34 = vshrl.u32 %v1489_v56, 16  ;;  %v1494_v25 = vld [vmem:[#allocation2 + $0x44] sm:$0x1] }
 0x19b   :  { %v7286_v0 = vcombine.low %v1524_v37, %v1538_v55  ;;  %v1560_v16 = vor.u32 %v1559_v53, %v1556_v3  ;;  %v1573_v5 = vrot.slane %v1571_v33, 5  ;;  %v9108_v2 = vrot.slane %v1577_v43, 5  ;;  %v2365_v49 = vld [vmem:[#allocation2 + $0x24] sm:$0x1]  ;;  %v2366_v11 = vld [vmem:[#allocation2 + $0x28] sm:$0xe]  ;;  %v2019_v43 = vpop.permute.xlu1 %2018 }
 0x19c   :  { %v1552_v4 = vsel %vm8685_vm12, %v1547_v38, %v1551_v39  ;;  %v1584_v1 = vrot.slane %v1582_v34, 4  ;;  %v1585_v36 = vshll.u32 %v1489_v56, 16  ;;  %v1591_v8 = vshll.u32 %v1490_v42, 16  ;;  %v2367_v41 = vld [vmem:[#allocation2 + $0x2c] sm:$0x1] }
 0x19d   :  { %1767 = vst.msk [vmem:[#allocation3 + $0x8] sm:$0xff] %vm877_vm13, %v7286_v0  ;;  %v1561_v22 = vrot.slane %v1560_v16, 4  ;;  %v1574_v13 = vor.u32 %v1573_v5, %v1570_v58  ;;  %v7334_v14 = vrot.slane %v2360_v54, 9  ;;  %v2426_v44 = vrot.slane %v2361_v61, 5  ;;  %v2368_v45 = vld [vmem:[#allocation2 + $0x30] sm:$0xe] }
 0x19e   :  { %1951 = vst.msk [vmem:[#allocation3 + $0x8] sm:$0xff] %vm1193_vm14, %v1928_v12  ;;  %v1587_v26 = vrot.slane %v1585_v36, 5  ;;  %v1593_v18 = vrot.slane %v1591_v8, 5  ;;  %v7335_v59 = vrot.slane %v2362_v6, 9  ;;  %v2430_v19 = vrot.slane %v2363_v7, 5  ;;  %v1170_v40 = vpop.permute.xlu0 %1169 }
 0x19f   :  { %2040 = vst.msk [vmem:[#allocation3 + $0x8] sm:$0xff] %vm1381_vm15, %v2017_v50  ;;  %v1566_v20 = vsel %vm8685_vm12, %v1561_v22, %v1565_v60  ;;  %v1575_v21 = vrot.slane %v1574_v13, 4  ;;  %v2427_v24 = vsel %vm8648_vm9, %v7334_v14, %v2426_v44  ;;  %v1596_v28 = vshrl.u32 %v1491_v9, 16  ;;  %v2364_v12 = vld [vmem:[#allocation2 + $0x20] sm:$0xe] }
 0x1a0   :  { %1194 = vst.msk [vmem:[#allocation3] sm:$0xff] %vm1193_vm14, %v1170_v40  ;;  %v7287_v29 = vcombine.low %v1552_v4, %v1566_v20  ;;  %v1588_v30 = vor.u32 %v1587_v26, %v1584_v1  ;;  %v2431_v23 = vsel %vm8648_vm9, %v7335_v59, %v2430_v19  ;;  %v1599_v56 = vshll.u32 %v1491_v9, 16  ;;  %v2369_v27 = vld [vmem:[#allocation2 + $0x34] sm:$0x1]  ;;  %v2370_v33 = vld [vmem:[#allocation2 + $0x38] sm:$0xe] }
 0x1a1   :  { %1382 = vst.msk [vmem:[#allocation3] sm:$0xff] %vm1381_vm15, %v9085_v52  ;;  %v1580_v31 = vsel %vm8685_vm12, %v1575_v21, %v9108_v2  ;;  %v7350_v35 = vcombine.low %v2427_v24, %v2431_v23  ;;  %v1598_v37 = vrot.slane %v1596_v28, 4  ;;  %v1605_v39 = vshll.u32 %v1492_v48, 16  ;;  %v2371_v58 = vld [vmem:[#allocation2 + $0x3c] sm:$0x1] }
 0x1a2   :  { %1471 = vst.msk [vmem:[#allocation3] sm:$0xff] %vm1470_vm0, %v9097_v62  ;;  %v1589_v42 = vrot.slane %v1588_v30, 4  ;;  %v1601_v32 = vrot.slane %v1599_v56, 5  ;;  %v1610_v63 = vshrl.u32 %v1493_v15, 16  ;;  %v1613_v3 = vshll.u32 %v1493_v15, 16  ;;  %v1930_v52 = vpop.permute.xlu0 %1929 }
 0x1a3   :  { %1768 = vst.msk [vmem:[#allocation3 + $0x20] sm:$0xff] %vm877_vm13, %v7287_v29  ;;  %2520 = vst.msk [vmem:[#allocation3 + $0x10] sm:$0xff] %vm877_vm13, %v7350_v35  ;;  %v1607_v47 = vrot.slane %v1605_v39, 5  ;;  %v1619_v50 = vshll.u32 %v1494_v25, 16  ;;  %v7336_v53 = vrot.slane %v2364_v12, 9  ;;  %v2434_v60 = vrot.slane %v2365_v49, 5 }
 0x1a4   :  { %1952 = vst.msk [vmem:[#allocation3 + $0x20] sm:$0xff] %vm1193_vm14, %v1930_v52  ;;  %v1594_v62 = vsel %vm8685_vm12, %v1589_v42, %v1593_v18  ;;  %v1602_v54 = vor.u32 %v1601_v32, %v1598_v37  ;;  %v1612_v55 = vrot.slane %v1610_v63, 4  ;;  %v1615_v38 = vrot.slane %v1613_v3, 5  ;;  %v1495_v34 = vld [vmem:[#allocation2 + $0x58] sm:$0xf]  ;;  %v9156_v52 = vpop.permute.xlu1 %1450 }
 0x1a5   :  { %2041 = vst.msk [vmem:[#allocation3 + $0x20] sm:$0xff] %vm1381_vm15, %v2019_v43  ;;  %v7288_v61 = vcombine.low %v1580_v31, %v1594_v62  ;;  %v1621_v0 = vrot.slane %v1619_v50, 5  ;;  %v2435_v16 = vsel %vm8648_vm9, %v7336_v53, %v2434_v60  ;;  %v7337_v5 = vrot.slane %v2366_v11, 9  ;;  %v1496_v2 = vld [vmem:[#allocation2 + $0x5c] sm:$0x1] }
 0x1a6   :  { %v1603_v6 = vrot.slane %v1602_v54, 4  ;;  %v1616_v7 = vor.u32 %v1615_v38, %v1612_v55  ;;  %v2438_v4 = vrot.slane %v2367_v41, 5  ;;  %v7338_v1 = vrot.slane %v2368_v45, 9  ;;  %v1497_v36 = vld [vmem:[#allocation2 + $0x60] sm:$0xf] }
 0x1a7   :  { %v1498_v8 = vld [vmem:[#allocation2 + $0x64] sm:$0x1]  ;;  %1769 = vst.msk [vmem:[#allocation3 + $0x38] sm:$0xff] %vm877_vm13, %v7288_v61  ;;  %v2442_v9 = vrot.slane %v2369_v27, 5  ;;  %v7339_v22 = vrot.slane %v2370_v33, 9  ;;  %v2446_v13 = vrot.slane %v2371_v58, 5 }
 0x1a8   :  { %v1624_v14 = vshrl.u32 %v1495_v34, 16  ;;  %v2372_v44 = vld [vmem:[#allocation2 + $0x40] sm:$0xe]  ;;  %v1608_v48 = vsel %vm8685_vm12, %v1603_v6, %v1607_v47  ;;  %v1617_v26 = vrot.slane %v1616_v7, 4  ;;  %v2439_v18 = vsel %vm8648_vm9, %v7337_v5, %v2438_v4  ;;  %v2373_v19 = vld [vmem:[#allocation2 + $0x44] sm:$0x1] }
 0x1a9   :  { %v1627_v59 = vshll.u32 %v1495_v34, 16  ;;  %v2374_v15 = vld [vmem:[#allocation2 + $0x48] sm:$0xe]  ;;  %v7351_v40 = vcombine.low %v2435_v16, %v2439_v18  ;;  %v2443_v20 = vsel %vm8648_vm9, %v7338_v1, %v2442_v9  ;;  %v2447_v21 = vsel %vm8648_vm9, %v7339_v22, %v2446_v13  ;;  %v2375_v25 = vld [vmem:[#allocation2 + $0x4c] sm:$0x1]  ;;  %v2528_v57 = vld [vmem:[#allocation3] sm:$0xff] }
 0x1aa   :  { %v1626_v24 = vrot.slane %v1624_v14, 4  ;;  %v2376_v28 = vld [vmem:[#allocation2 + $0x60] sm:$0xe]  ;;  %v1622_v29 = vsel %vm8685_vm12, %v1617_v26, %v1621_v0  ;;  %v7352_v30 = vcombine.low %v2443_v20, %v2447_v21  ;;  %v1633_v56 = vshll.u32 %v1496_v2, 16  ;;  %v2377_v49 = vld [vmem:[#allocation2 + $0x64] sm:$0x1] }
 0x1ab   :  { %v1172_v12 = vpop.permute.xlu0 %1171  ;;  %v1629_v23 = vrot.slane %v1627_v59, 5  ;;  %v2378_v11 = vld [vmem:[#allocation2 + $0x68] sm:$0xe]  ;;  %v8205_v31 = vld [vmem:[#allocation2 + $0x50] ss:$8 sps:$4 sm:$0xff]   ;;  %v7289_v35 = vcombine.low %v1608_v48, %v1622_v29  ;;  %2521 = vst.msk [vmem:[#allocation3 + $0x28] sm:$0xff] %vm877_vm13, %v7351_v40 }
 0x1ac   :  { %1195 = vst.msk [vmem:[#allocation3 + $0x18] sm:$0xff] %vm1193_vm14, %v1172_v12  ;;  %v1638_v37 = vshrl.u32 %v1497_v36, 16  ;;  %v1641_v39 = vshll.u32 %v1497_v36, 16  ;;  %v1647_v41 = vshll.u32 %v1498_v8, 16  ;;  %v2379_v45 = vld [vmem:[#allocation2 + $0x6c] sm:$0x1] }
 0x1ad   :  { %1383 = vst.msk [vmem:[#allocation3 + $0x18] sm:$0xff] %vm1381_vm15, %v9114_v17  ;;  %v1630_v42 = vor.u32 %v1629_v23, %v1626_v24  ;;  %v1635_v32 = vrot.slane %v1633_v56, 5  ;;  %v7340_v63 = vrot.slane %v2372_v44, 9  ;;  %v2450_v3 = vrot.slane %v2373_v19, 5  ;;  %v1499_v27 = vld [vmem:[#allocation2 + $0x68] sm:$0xf]  ;;  %v1362_v19 = vpop.permute.xlu1 %1361 }
 0x1ae   :  { %2522 = vst.msk [vmem:[#allocation3 + $0x40] sm:$0xff] %vm877_vm13, %v7352_v30  ;;  %882 = vst.msk [vmem:[#allocation3 + $0x60] sm:$0xff] %vm877_vm13, %v8205_v31  ;;  %v1640_v47 = vrot.slane %v1638_v37, 4  ;;  %v1643_v50 = vrot.slane %v1641_v39, 5  ;;  %v1649_v53 = vrot.slane %v1647_v41, 5  ;;  %v7341_v17 = vrot.slane %v2374_v15, 9 }
 0x1af   :  { %1472 = vst.msk [vmem:[#allocation3 + $0x18] sm:$0xff] %vm1470_vm0, %v9103_v46  ;;  %v1500_v60 = vld [vmem:[#allocation2 + $0x6c] sm:$0x1]  ;;  %v1631_v33 = vrot.slane %v1630_v42, 4  ;;  %v2451_v43 = vsel %vm8648_vm9, %v7340_v63, %v2450_v3  ;;  %v2454_v62 = vrot.slane %v2375_v25, 5  ;;  %v7342_v54 = vrot.slane %v2376_v28, 9 }
 0x1b0   :  { %1770 = vst.msk [vmem:[#allocation3 + $0x50] sm:$0xff] %vm877_vm13, %v7289_v35  ;;  %v1501_v55 = vld [vmem:[#allocation2 + $0x70] sm:$0xf]  ;;  %v1644_v38 = vor.u32 %v1643_v50, %v1640_v47  ;;  %v2458_v58 = vrot.slane %v2377_v49, 5  ;;  %v7343_v34 = vrot.slane %v2378_v11, 9  ;;  %v2462_v61 = vrot.slane %v2379_v45, 5 }
 0x1b1   :  { %v1502_v0 = vld [vmem:[#allocation2 + $0x74] sm:$0x1]  ;;  %v1636_v46 = vsel %vm8685_vm12, %v1631_v33, %v1635_v32  ;;  %v2455_v16 = vsel %vm8648_vm9, %v7341_v17, %v2454_v62  ;;  %v1652_v5 = vshrl.u32 %v1499_v27, 16  ;;  %v1655_v2 = vshll.u32 %v1499_v27, 16  ;;  %v2380_v6 = vld [vmem:[#allocation2 + $0x70] sm:$0xe] }
 0x1b2   :  { %v2381_v7 = vld [vmem:[#allocation2 + $0x74] sm:$0x1]  ;;  %v1645_v4 = vrot.slane %v1644_v38, 4  ;;  %v7353_v1 = vcombine.low %v2451_v43, %v2455_v16  ;;  %v2459_v36 = vsel %vm8648_vm9, %v7342_v54, %v2458_v58  ;;  %v2463_v8 = vsel %vm8648_vm9, %v7343_v34, %v2462_v61  ;;  %v2382_v9 = vld [vmem:[#allocation2 + $0x78] sm:$0xe] }
 0x1b3   :  { %v2383_v22 = vld [vmem:[#allocation2 + $0x7c] sm:$0x1]  ;;  %v2384_v13 = vld [vmem:[#allocation2 + $0x80] sm:$0xe]  ;;  %v7354_v14 = vcombine.low %v2459_v36, %v2463_v8  ;;  %v1654_v44 = vrot.slane %v1652_v5, 4  ;;  %v1657_v48 = vrot.slane %v1655_v2, 5 }
 0x1b4   :  { %v1661_v26 = vshll.u32 %v1500_v60, 16  ;;  %v2385_v18 = vld [vmem:[#allocation2 + $0x84] sm:$0x1]  ;;  %v2386_v59 = vld [vmem:[#allocation2 + $0x88] sm:$0xe]  ;;  %v1650_v15 = vsel %vm8685_vm12, %v1645_v4, %v1649_v53  ;;  %2523 = vst.msk [vmem:[#allocation3 + $0x58] sm:$0xff] %vm877_vm13, %v7353_v1 }
 0x1b5   :  { %v1666_v40 = vshrl.u32 %v1501_v55, 16  ;;  %v1669_v20 = vshll.u32 %v1501_v55, 16  ;;  %v1675_v21 = vshll.u32 %v1502_v0, 16  ;;  %v2387_v24 = vld [vmem:[#allocation2 + $0x8c] sm:$0x1]  ;;  %v7290_v25 = vcombine.low %v1636_v46, %v1650_v15  ;;  %2524 = vst.msk [vmem:[#allocation3 + $0x70] sm:$0xff] %vm877_vm13, %v7354_v14  ;;  %v2329_v56 = vpop.permute.xlu0 %2328 }
 0x1b6   :  { %v1658_v28 = vor.u32 %v1657_v48, %v1654_v44  ;;  %v1663_v12 = vrot.slane %v1661_v26, 5  ;;  %v7344_v29 = vrot.slane %v2380_v6, 9  ;;  %v2388_v30 = vld [vmem:[#allocation2 + $0x90] sm:$0xe]  ;;  %v2389_v23 = vld [vmem:[#allocation2 + $0x94] sm:$0x1] }
 0x1b7   :  { %v1668_v49 = vrot.slane %v1666_v40, 4  ;;  %v1671_v11 = vrot.slane %v1669_v20, 5  ;;  %v1677_v31 = vrot.slane %v1675_v21, 5  ;;  %v2466_v35 = vrot.slane %v2381_v7, 5  ;;  %v2390_v37 = vld [vmem:[#allocation2 + $0x98] sm:$0xe] }
 0x1b8   :  { %v2391_v39 = vld [vmem:[#allocation2 + $0x9c] sm:$0x1]  ;;  %2352 = vst.msk [vmem:[#allocation3 + $0x8] sm:$0xff] %vm1470_vm0, %v2329_v56  ;;  %v1659_v41 = vrot.slane %v1658_v28, 4  ;;  %v7345_v45 = vrot.slane %v2382_v9, 9  ;;  %v2470_v42 = vrot.slane %v2383_v22, 5 }
 0x1b9   :  { %1771 = vst.msk [vmem:[#allocation3 + $0x68] sm:$0xff] %vm877_vm13, %v7290_v25  ;;  %v7346_v32 = vrot.slane %v2384_v13, 9  ;;  %v1672_v63 = vor.u32 %v1671_v11, %v1668_v49  ;;  %v2467_v3 = vsel %vm8648_vm9, %v7344_v29, %v2466_v35  ;;  %v2474_v27 = vrot.slane %v2385_v18, 5  ;;  %v1503_v50 = vld [vmem:[#allocation2 + $0x78] sm:$0xf]  ;;  %v1932_v38 = vpop.permute.xlu0 %1931  ;;  %v8203_v1 = vld [vmem:[%s10213_s3 + $0x88] sm:$0xff]  }
 0x1ba   :  { %v7347_v47 = vrot.slane %v2386_v59, 9  ;;  %v8206_v53 = vld [vmem:[#allocation2 + $0x60] ss:$8 sps:$4 sm:$0xff]   ;;  %v1664_v17 = vsel %vm8685_vm12, %v1659_v41, %v1663_v12  ;;  %v2471_v60 = vsel %vm8648_vm9, %v7345_v45, %v2470_v42  ;;  %v2478_v33 = vrot.slane %v2387_v24, 5  ;;  %v1504_v62 = vld [vmem:[#allocation2 + $0x7c] sm:$0x1]  ;;  %v1174_v55 = vpop.permute.xlu1 %1173 }
 0x1bb   :  { %v7348_v43 = vrot.slane %v2388_v30, 9  ;;  %v1505_v54 = vld [vmem:[#allocation2 + $0x80] sm:$0xf]  ;;  %v1673_v58 = vrot.slane %v1672_v63, 4  ;;  %v7355_v34 = vcombine.low %v2467_v3, %v2471_v60  ;;  %v2475_v61 = vsel %vm8648_vm9, %v7346_v32, %v2474_v27  ;;  %v1506_v46 = vld [vmem:[#allocation2 + $0x84] sm:$0x1] }
 0x1bc   :  { %v2482_v0 = vrot.slane %v2389_v23, 5  ;;  %883 = vst.msk [vmem:[#allocation3 + $0x78] sm:$0xff] %vm877_vm13, %v8206_v53  ;;  %v1507_v16 = vld [vmem:[#allocation2 + $0x88] sm:$0xf]  ;;  %v2479_v5 = vsel %vm8648_vm9, %v7347_v47, %v2478_v33  ;;  %v7349_v2 = vrot.slane %v2390_v37, 9  ;;  %v2486_v6 = vrot.slane %v2391_v39, 5 }
 0x1bd   :  { %1196 = vst.msk [vmem:[#allocation3 + $0x30] sm:$0xff] %vm1193_vm14, %v1174_v55  ;;  %1953 = vst.msk [vmem:[#allocation3 + $0x38] sm:$0xff] %vm1193_vm14, %v1932_v38  ;;  %v1680_v7 = vshrl.u32 %v1503_v50, 16  ;;  %v1508_v4 = vld [vmem:[#allocation2 + $0x8c] sm:$0x1]  ;;  %v1678_v36 = vsel %vm8685_vm12, %v1673_v58, %v1677_v31  ;;  %v7356_v8 = vcombine.low %v2475_v61, %v2479_v5  ;;  %v1683_v22 = vshll.u32 %v1503_v50, 16 }
 0x1be   :  { %1384 = vst.msk [vmem:[#allocation3 + $0x30] sm:$0xff] %vm1381_vm15, %v1362_v19  ;;  %v2483_v9 = vsel %vm8648_vm9, %v7348_v43, %v2482_v0  ;;  %v8207_v13 = vld [vmem:[#allocation2 + $0x70] ss:$8 sps:$4 sm:$0xff]   ;;  %v7291_v14 = vcombine.low %v1664_v17, %v1678_v36  ;;  %v2487_v44 = vsel %vm8648_vm9, %v7349_v2, %v2486_v6  ;;  %v1689_v26 = vshll.u32 %v1504_v62, 16  ;;  %v8208_v18 = vld [vmem:[#allocation2 + $0x80] ss:$8 sps:$4 sm:$0xff]   ;;  %v9203_v59 = vpop.permute.xlu1 %2022  ;;  %v2021_v19 = vpop.permute.xlu0 %2020 }
 0x1bf   :  { %2525 = vst.msk [vmem:[#allocation3 + $0x88] sm:$0xff] %vm877_vm13, %v7355_v34  ;;  %v1682_v48 = vrot.slane %v1680_v7, 4  ;;  %v2529_v15 = vld [vmem:[#allocation3 + $0x8] sm:$0xff]  ;;  %2526 = vst.msk [vmem:[#allocation3 + $0xa0] sm:$0xff] %vm877_vm13, %v7356_v8  ;;  %v7357_v40 = vcombine.low %v2483_v9, %v2487_v44  ;;  %v1685_v20 = vrot.slane %v1683_v22, 5  ;;  %v1694_v21 = vshrl.u32 %v1505_v54, 16 }
 0x1c0   :  { %1473 = vst.msk [vmem:[#allocation3 + $0x30] sm:$0xff] %vm1470_vm0, %v9156_v52  ;;  %v1697_v24 = vshll.u32 %v1505_v54, 16  ;;  %v1509_v25 = vld [vmem:[#allocation2 + $0x90] sm:$0xf]  ;;  %2759 = vmatprep.mubr.bf16.mxu0 %v2529_v15  ;;  %v1691_v52 = vrot.slane %v1689_v26, 5  ;;  %v1703_v28 = vshll.u32 %v1506_v46, 16 }
 0x1c1   :  { %884 = vst.msk [vmem:[#allocation3 + $0x90] sm:$0xff] %vm877_vm13, %v8207_v13  ;;  %1772 = vst.msk [vmem:[#allocation3 + $0x80] sm:$0xff] %vm877_vm13, %v7291_v14  ;;  %v1708_v12 = vshrl.u32 %v1507_v16, 16  ;;  %v1711_v29 = vshll.u32 %v1507_v16, 16  ;;  %2760 = vmatmul.mubr.bf16.vlgmr.msra.gmra.mrb[32].mxu0 %v2528_v57  ;;  %v2530_v30 = vld [vmem:[#allocation3 + $0x10] sm:$0xff]  ;;  %v1686_v23 = vor.u32 %v1685_v20, %v1682_v48  ;;  %v1696_v56 = vrot.slane %v1694_v21, 4 }
 0x1c2   :  { %2042 = vst.msk [vmem:[#allocation3 + $0x38] sm:$0xff] %vm1381_vm15, %v2021_v19  ;;  %v1699_v49 = vrot.slane %v1697_v24, 5  ;;  %v1510_v11 = vld [vmem:[#allocation2 + $0x94] sm:$0x1]  ;;  %v1717_v31 = vshll.u32 %v1508_v4, 16  ;;  %v8345_v35 = vld [vmem:[%s10213_s3 + $0x80] sm:$0xff]   ;;  %8052 = vmatprep.mubr.msk.bf16.mxu0 %vm877_vm13, %v2530_v30  ;;  %v1453_v50 = vpop.permute.xlu1 %1452 }
 0x1c3   :  { %885 = vst.msk [vmem:[#allocation3 + $0xa8] sm:$0xff] %vm877_vm13, %v8208_v18  ;;  %2527 = vst.msk [vmem:[#allocation3 + $0xb8] sm:$0xff] %vm877_vm13, %v7357_v40  ;;  %8049 = vmatpush3.bf16.msra.mxu0 %v8345_v35  ;;  %v1710_v37 = vrot.slane %v1708_v12, 4  ;;  %v1713_v39 = vrot.slane %v1711_v29, 5  ;;  %v1722_v41 = vshrl.u32 %v1509_v25, 16  ;;  %v1687_v45 = vrot.slane %v1686_v23, 4 }
 0x1c4   :  { %8050 = vmatprep.subr.bf16.mxu0 %v8203_v1  ;;  %v1700_v42 = vor.u32 %v1699_v49, %v1696_v56  ;;  %v1705_v32 = vrot.slane %v1703_v28, 5  ;;  %v1725_v63 = vshll.u32 %v1509_v25, 16  ;;  %v1731_v47 = vshll.u32 %v1510_v11, 16  ;;  %v2533_v58 = vld [vmem:[#allocation3 + $0x28] sm:$0xff]  ;;  %v2536_v61 = vld [vmem:[#allocation3 + $0x40] sm:$0xff]  ;;  %v2531_v4 = vld [vmem:[#allocation3 + $0x18] sm:$0xff] }
 0x1c5   :  { %v1714_v3 = vor.u32 %v1713_v39, %v1710_v37  ;;  %v1724_v27 = vrot.slane %v1722_v41, 4  ;;  %v1692_v53 = vsel %vm8685_vm12, %v1687_v45, %v1691_v52  ;;  %v1719_v60 = vrot.slane %v1717_v31, 5  ;;  %v2331_v62 = vpop.permute.xlu0 %2330  ;;  %v2542_v8 = vld [vmem:[#allocation3 + $0x70] sm:$0xff] }
 0x1c6   :  { %v1701_v17 = vrot.slane %v1700_v42, 4  ;;  %v1727_v33 = vrot.slane %v1725_v63, 5  ;;  %v1733_v38 = vrot.slane %v1731_v47, 5  ;;  %2353 = vst.msk [vmem:[#allocation3 + $0x20] sm:$0xff] %vm1470_vm0, %v2331_v62  ;;  %v1364_v16 = vpop.permute.xlu1 %1363  ;;  %v2545_v22 = vld [vmem:[#allocation3 + $0x88] sm:$0xff]  ;;  %v2548_v13 = vld [vmem:[#allocation3 + $0xa0] sm:$0xff] }
 0x1c7   :  { %8051 = vmatpush3.bf16.msra.mxu0 %v8203_v1  ;;  %v1715_v43 = vrot.slane %v1714_v3, 4  ;;  %v2539_v1 = vld [vmem:[#allocation3 + $0x58] sm:$0xff]  ;;  %v2534_v18 = vld [vmem:[#allocation3 + $0x30] sm:$0xff]  ;;  %vm3256_vm3 = vcmask 516096   ;;  %vm3283_vm6 = vsmask.f32 7946 }
 0x1c8   :  { %v1706_v54 = vsel %vm8685_vm12, %v1701_v17, %v1705_v32  ;;  %v1728_v55 = vor.u32 %v1727_v33, %v1724_v27  ;;  %v3258_v17 = vld [vmem:[#allocation4 + $0x4] sm:$0x1]  ;;  %vm9266_vm5 = vmand %vm3256_vm3, %vm391_vm1  ;;  %v3285_v33 = vld [vmem:[#allocation4 + $0x4] sm:$0x4]  ;;  %vm3707_vm9 = vsmask.f32 3336 }
 0x1c9   :  { %v7292_v34 = vcombine.low %v1692_v53, %v1706_v54  ;;  %v1720_v0 = vsel %vm8685_vm12, %v1715_v43, %v1719_v60  ;;  %v1934_v5 = vpop.permute.xlu0 %1933  ;;  %v3259_v43 = vsel %vm9266_vm5, 0, %v3258_v17  ;;  %vm9280_vm7 = vmand %vm3282_vm4, %vm3283_vm6  ;;  %vm3948_vm3 = vcmask 1040384  }
 0x1ca   :  { %8053 = vmatmul.mubr.msk.bf16.vlgmr.msra.gmra.mrb[36].mxu0 %vm877_vm13, %v2533_v58  ;;  %v1729_v46 = vrot.slane %v1728_v55, 4  ;;  %1954 = vst.msk [vmem:[#allocation3 + $0x50] sm:$0xff] %vm1193_vm14, %v1934_v5  ;;  %3260 = vst [vmem:[#allocation4 + $0x4] sm:$0x1] %v3259_v43  ;;  %v3286_v54 = vsel %vm9280_vm7, 0, %v3285_v33  ;;  %vm3953_vm6 = vcmask 1046534  }
 0x1cb   :  { %8056 = vmatprep.mubr.msk.bf16.mxu0 %vm877_vm13, %v2536_v61  ;;  %1773 = vst.msk [vmem:[#allocation3 + $0x98] sm:$0xff] %vm877_vm13, %v7292_v34  ;;  %3287 = vst [vmem:[#allocation4 + $0x4] sm:$0x4] %v3286_v54  ;;  %v3261_v55 = vld [vmem:[#allocation4 + $0x8] sm:$0x1] }
 0x1cc   :  { %v1734_v2 = vsel %vm8685_vm12, %v1729_v46, %v1733_v38  ;;  %2043 = vst.msk [vmem:[#allocation3 + $0x50] sm:$0xff] %vm1381_vm15, %v9203_v59  ;;  %v2551_v59 = vld [vmem:[#allocation3 + $0xb8] sm:$0xff]  ;;  %v3288_v38 = vld [vmem:[#allocation4 + $0x8] sm:$0x4]  ;;  %v3262_v58 = vsel %vm9266_vm5, 0, %v3261_v55  ;;  %vm3471_vm12 = vcmask 1042434  }
 0x1cd   :  { %v7293_v6 = vcombine.low %v1720_v0, %v1734_v2  ;;  %v2532_v7 = vld [vmem:[#allocation3 + $0x20] sm:$0xff]  ;;  %v3289_v51 = vsel %vm9280_vm7, 0, %v3288_v38  ;;  %3263 = vst [vmem:[#allocation4 + $0x8] sm:$0x1] %v3262_v58  ;;  %v3264_v34 = vld [vmem:[#allocation4 + $0xc] sm:$0x1] }
 0x1ce   :  { %2767 = vmatprep.mubr.bf16.mxu1 %v2532_v7  ;;  %3290 = vst [vmem:[#allocation4 + $0x8] sm:$0x4] %v3289_v51  ;;  %v3291_v61 = vld [vmem:[#allocation4 + $0xc] sm:$0x4]  ;;  %v3265_v0 = vsel %vm9266_vm5, 0, %v3264_v34 }
 0x1cf   :  { %1774 = vst.msk [vmem:[#allocation3 + $0xb0] sm:$0xff] %vm877_vm13, %v7293_v6  ;;  %2768 = vmatmul.mubr.bf16.vlgmr.msra.gmra.mrb[0].mxu1 %v2531_v4  ;;  %v3292_v46 = vsel %vm9280_vm7, 0, %v3291_v61  ;;  %3266 = vst [vmem:[#allocation4 + $0xc] sm:$0x1] %v3265_v0  ;;  %v3294_v5 = vld [vmem:[#allocation4 + $0x10] sm:$0x4] }
 0x1d0   :  { %v1176_v36 = vpop.permute.xlu1 %1175  ;;  %3293 = vst [vmem:[#allocation4 + $0xc] sm:$0x4] %v3292_v46  ;;  %v3295_v6 = vsel %vm9280_vm7, 0, %v3294_v5  ;;  %v3270_v7 = vld [vmem:[#allocation4 + $0x1c] sm:$0x1] }
 0x1d1   :  { %1197 = vst.msk [vmem:[#allocation3 + $0x48] sm:$0xff] %vm1193_vm14, %v1176_v36  ;;  %3296 = vst [vmem:[#allocation4 + $0x10] sm:$0x4] %v3295_v6  ;;  %v3297_v4 = vld [vmem:[#allocation4 + $0x1c] sm:$0x4] }
 0x1d2   :  { %8057 = vmatmul.mubr.msk.bf16.gmra.mrb[40].mxu0 %vm877_vm13, %v2539_v1  ;;  %1385 = vst.msk [vmem:[#allocation3 + $0x48] sm:$0xff] %vm1381_vm15, %v1364_v16  ;;  %v3267_v16 = vld [vmem:[#allocation4 + $0x10] sm:$0x1]  ;;  %v3271_v1 = vsel %vm9266_vm5, 0, %v3270_v7  ;;  %v3298_v36 = vsel %vm9280_vm7, 0, %v3297_v4 }
 0x1d3   :  { %8060 = vmatprep.mubr.msk.bf16.mxu0 %vm877_vm13, %v2542_v8  ;;  %1474 = vst.msk [vmem:[#allocation3 + $0x48] sm:$0xff] %vm1470_vm0, %v1453_v50  ;;  %v3268_v2 = vsel %vm9266_vm5, 0, %v3267_v16  ;;  %3272 = vst [vmem:[#allocation4 + $0x1c] sm:$0x1] %v3271_v1  ;;  %v3273_v8 = vld [vmem:[#allocation4 + $0x20] sm:$0x1] }
 0x1d4   :  { %v1455_v9 = vpop.permute.xlu1 %1454  ;;  %3269 = vst [vmem:[#allocation4 + $0x10] sm:$0x1] %v3268_v2  ;;  %3299 = vst [vmem:[#allocation4 + $0x1c] sm:$0x4] %v3298_v36 }
 0x1d5   :  { %v2333_v10 = vpop.permute.xlu0 %2332 }
 0x1d6   :  { %2354 = vst.msk [vmem:[#allocation3 + $0x38] sm:$0xff] %vm1470_vm0, %v2333_v10  ;;  %v3300_v10 = vld [vmem:[#allocation4 + $0x20] sm:$0x4] }
 0x1d9   :  { %v1936_v14 = vpop.permute.xlu0 %1935 }
 0x1da   :  { %8061 = vmatmul.mubr.msk.bf16.gmra.mrb[44].mxu0 %vm877_vm13, %v2545_v22  ;;  %1955 = vst.msk [vmem:[#allocation3 + $0x68] sm:$0xff] %vm1193_vm14, %v1936_v14  ;;  %v2537_v24 = vld [vmem:[#allocation3 + $0x48] sm:$0xff]  ;;  %v3301_v22 = vsel %vm9280_vm7, 0, %v3300_v10  ;;  %v3303_v14 = vld [vmem:[#allocation4 + $0x24] sm:$0x4] }
 0x1db   :  { %8064 = vmatprep.mubr.msk.bf16.mxu0 %vm877_vm13, %v2548_v13  ;;  %3302 = vst [vmem:[#allocation4 + $0x20] sm:$0x4] %v3301_v22  ;;  %v3276_v13 = vld [vmem:[#allocation4 + $0x24] sm:$0x1] }
 0x1dc   :  { %v2335_v44 = vpop.permute.xlu1 %2334  ;;  %v7453_v22 = vld.sshfl [vmem:[#allocation4 + $0x18] sm:$0x13 pattern:$0x76325410] }
 0x1dd   :  { %2355 = vst.msk [vmem:[#allocation3 + $0x50] sm:$0xff] %vm1470_vm0, %v2335_v44  ;;  %v2025_v48 = vpop.permute.xlu0 %2024  ;;  %v2535_v26 = vld [vmem:[#allocation3 + $0x38] sm:$0xff]  ;;  %v3277_v44 = vsel %vm9266_vm5, 0, %v3276_v13 }
 0x1de   :  { %2044 = vst.msk [vmem:[#allocation3 + $0x68] sm:$0xff] %vm1381_vm15, %v2025_v48  ;;  %2775 = vmatprep.mubr.bf16.mxu1 %v2535_v26  ;;  %v3304_v48 = vsel %vm9280_vm7, 0, %v3303_v14  ;;  %3278 = vst [vmem:[#allocation4 + $0x24] sm:$0x1] %v3277_v44  ;;  %v3279_v26 = vld [vmem:[#allocation4 + $0x28] sm:$0x1] }
 0x1df   :  { %2776 = vmatmul.mubr.bf16.gmra.mrb[4].mxu1 %v2534_v18  ;;  %3305 = vst [vmem:[#allocation4 + $0x24] sm:$0x4] %v3304_v48  ;;  %v3306_v18 = vld [vmem:[#allocation4 + $0x28] sm:$0x4]  ;;  %v3681_v48 = vcombine.high %v7453_v22, %v7453_v22 }
 0x1e0   :  { %v1366_v19 = vpop.permute.xlu1 %1365 }
 0x1e1   :  { %v1938_v15 = vpop.permute.xlu0 %1937 }
 0x1e2   :  { %8065 = vmatmul.mubr.msk.bf16.gmra.mrb[48].mxu0 %vm877_vm13, %v2551_v59  ;;  %1956 = vst.msk [vmem:[#allocation3 + $0x80] sm:$0xff] %vm1193_vm14, %v1938_v15  ;;  %v3280_v59 = vsel %vm9266_vm5, 0, %v3279_v26  ;;  %v8213_v26 = vld [vmem:[%s10215_s5 + $0x40] sm:$0xff]   ;;  %vm3474_vm13 = vcmask 1043459  }
 0x1e3   :  { %3281 = vst [vmem:[#allocation4 + $0x28] sm:$0x1] %v3280_v59  ;;  %v8215_v59 = vld [vmem:[%s10215_s5 + $0x48] sm:$0xff]   ;;  %7889 = vmatprep.subr.bf16.mxu1 %v8213_v26 }
 0x1e4   :  { %v1178_v40 = vpop.permute.xlu1 %1177  ;;  %v2538_v20 = vld [vmem:[#allocation3 + $0x50] sm:$0xff] }
 0x1e5   :  { %1198 = vst.msk [vmem:[#allocation3 + $0x60] sm:$0xff] %vm1193_vm14, %v1178_v40  ;;  %2783 = vmatprep.mubr.bf16.mxu1 %v2538_v20  ;;  %v2027_v21 = vpop.permute.xlu0 %2026 }
 0x1e6   :  { %1386 = vst.msk [vmem:[#allocation3 + $0x60] sm:$0xff] %vm1381_vm15, %v1366_v19  ;;  %2045 = vst.msk [vmem:[#allocation3 + $0x80] sm:$0xff] %vm1381_vm15, %v2027_v21  ;;  %v3307_v19 = vsel %vm9280_vm7, 0, %v3306_v18  ;;  %v8214_v18 = vld [vmem:[%s10215_s5] sm:$0xff]  }
 0x1e7   :  { %1475 = vst.msk [vmem:[#allocation3 + $0x60] sm:$0xff] %vm1470_vm0, %v1455_v9  ;;  %2784 = vmatmul.mubr.bf16.gmra.mrb[8].mxu1 %v2537_v24  ;;  %v3274_v9 = vsel %vm9266_vm5, 0, %v3273_v8  ;;  %3308 = vst [vmem:[#allocation4 + $0x28] sm:$0x4] %v3307_v19 }
 0x1e8   :  { %v1457_v25 = vpop.permute.xlu1 %1456  ;;  %3275 = vst [vmem:[#allocation4 + $0x20] sm:$0x1] %v3274_v9  ;;  %7890 = vmatpush3.bf16.msra.mxu1 %v8214_v18  ;;  %v8221_v18 = vld [vmem:[%s10215_s5 + $0x58] sm:$0xff]  }
 0x1e9   :  { %v2337_v57 = vpop.permute.xlu0 %2336  ;;  %7891 = vmatprep.subr.bf16.mxu1 %v8215_v59 }
 0x1ea   :  { %2356 = vst.msk [vmem:[#allocation3 + $0x68] sm:$0xff] %vm1470_vm0, %v2337_v57  ;;  %v9317_v57 = vld [vmem:[%s10214_s4] ss:$0 sm:$0xff] }
 0x1ec   :  { %v1368_v52 = vpop.permute.xlu1 %1367 }
 0x1ed   :  { %v1940_v28 = vpop.permute.xlu0 %1939 }
 0x1ee   :  { %1957 = vst.msk [vmem:[#allocation3 + $0x98] sm:$0xff] %vm1193_vm14, %v1940_v28  ;;  %v2540_v23 = vld [vmem:[#allocation3 + $0x60] sm:$0xff] }
 0x1f0   :  { %v1180_v12 = vpop.permute.xlu1 %1179 }
 0x1f1   :  { %1199 = vst.msk [vmem:[#allocation3 + $0x78] sm:$0xff] %vm1193_vm14, %v1180_v12  ;;  %v2029_v29 = vpop.permute.xlu0 %2028  ;;  %v2541_v30 = vld [vmem:[#allocation3 + $0x68] sm:$0xff]  ;;  %v2957_v12 = vlaneseq }
 0x1f2   :  { %1387 = vst.msk [vmem:[#allocation3 + $0x78] sm:$0xff] %vm1381_vm15, %v1368_v52  ;;  %2046 = vst.msk [vmem:[#allocation3 + $0x98] sm:$0xff] %vm1381_vm15, %v2029_v29  ;;  %2791 = vmatprep.mubr.bf16.mxu1 %v2541_v30  ;;  %v8386_v52 = vmov 1983009808  }
 0x1f3   :  { %1476 = vst.msk [vmem:[#allocation3 + $0x78] sm:$0xff] %vm1470_vm0, %v1457_v25  ;;  %2792 = vmatmul.mubr.bf16.gmra.mrb[12].mxu1 %v2540_v23  ;;  %v2955_v28 = vunpack.c.l.s4 %v8386_v52  ;;  %v7449_v29 = vld.sshfl [vmem:[#allocation4] sm:$0x13 pattern:$0x76325410] }
 0x1f4   :  { %v1459_v56 = vpop.permute.xlu1 %1458 }
 0x1f5   :  { %v2339_v49 = vpop.permute.xlu0 %2338 }
 0x1f6   :  { %2357 = vst.msk [vmem:[#allocation3 + $0x80] sm:$0xff] %vm1470_vm0, %v2339_v49  ;;  %v3714_v49 = vshrl.u32 %v7449_v29, 16 }
 0x1f8   :  { %v1370_v11 = vpop.permute.xlu1 %1369 }
 0x1f9   :  { %v1942_v31 = vpop.permute.xlu0 %1941 }
 0x1fa   :  { %1958 = vst.msk [vmem:[#allocation3 + $0xb0] sm:$0xff] %vm1193_vm14, %v1942_v31  ;;  %v2543_v41 = vld [vmem:[#allocation3 + $0x78] sm:$0xff] }
 0x1fc   :  { %v1182_v35 = vpop.permute.xlu1 %1181 }
 0x1fd   :  { %1200 = vst.msk [vmem:[#allocation3 + $0x90] sm:$0xff] %vm1193_vm14, %v1182_v35  ;;  %v2544_v37 = vld [vmem:[#allocation3 + $0x80] sm:$0xff] }
 0x1fe   :  { %1388 = vst.msk [vmem:[#allocation3 + $0x90] sm:$0xff] %vm1381_vm15, %v1370_v11  ;;  %v2341_v39 = vpop.permute.xlu0 %2340  ;;  %2799 = vmatprep.mubr.bf16.mxu1 %v2544_v37  ;;  %v3717_v11 = vshll.u32 %v7449_v29, 16 }
 0x1ff   :  { %1477 = vst.msk [vmem:[#allocation3 + $0x90] sm:$0xff] %vm1470_vm0, %v1459_v56  ;;  %2358 = vst.msk [vmem:[#allocation3 + $0x98] sm:$0xff] %vm1470_vm0, %v2341_v39  ;;  %2800 = vmatmul.mubr.bf16.gmra.mrb[16].mxu1 %v2543_v41  ;;  %v2956_v39 = vunpack.c.0.s8 %v2955_v28  ;;  %v9325_v41 = vshrl.u32 %v2957_v12, 7  ;;  %v3770_v28 = vshrl.u32 %v7453_v22, 16  ;;  %v3773_v12 = vshll.u32 %v7453_v22, 16 }
 0x200   :  { %v1372_v45 = vpop.permute.xlu1 %1371 }
 0x201   :  { %v9328_v60 = vsub.s32 %v2956_v39, %v9325_v41  ;;  %v8223_v39 = vld [vmem:[%s10215_s5 + $0xc8] sm:$0xff]  }
 0x202   :  { %v2031_v42 = vpop.permute.xlu0 %2030 }
 0x203   :  { %2047 = vst.msk [vmem:[#allocation3 + $0xb0] sm:$0xff] %vm1381_vm15, %v2031_v42 }
 0x206   :  { %v1184_v32 = vpop.permute.xlu1 %1183  ;;  %v2546_v63 = vld [vmem:[#allocation3 + $0x90] sm:$0xff]  ;;  %v2547_v3 = vld [vmem:[#allocation3 + $0x98] sm:$0xff] }
 0x207   :  { %1201 = vst.msk [vmem:[#allocation3 + $0xa8] sm:$0xff] %vm1193_vm14, %v1184_v32  ;;  %2807 = vmatprep.mubr.bf16.mxu1 %v2547_v3  ;;  %v3649_v32 = vcombine.high %v7449_v29, %v7449_v29  ;;  %v3716_v3 = vrot.slane %v3714_v49, 6  ;;  %vm9365_vm14 = vmor %vm3706_vm8, %vm3707_vm9  ;;  %v8219_v29 = vld [vmem:[%s10215_s5 + $0xc0] sm:$0xff]  }
 0x208   :  { %1389 = vst.msk [vmem:[#allocation3 + $0xa8] sm:$0xff] %vm1381_vm15, %v1372_v45  ;;  %2808 = vmatmul.mubr.bf16.gmra.mrb[20].mxu1 %v2546_v63  ;;  %v7500_v45 = vld.sshfl [vmem:[#allocation4 + $0x14] sm:$0x13 pattern:$0x76325410]  ;;  %vm3477_vm15 = vcmask 1044484   ;;  %vm9393_vm4 = vmor %vm9365_vm14, %vm3709_vm10  ;;  %7917 = vmatprep.subr.bf16.mxu0 %v8219_v29 }
 0x209   :  { %v9330_v33 = vshll.u32 %v3649_v32, 16  ;;  %v4569_v43 = vcombine.high %v7500_v45, %v7500_v45  ;;  %vm9420_vm5 = vmor %vm9393_vm4, %vm3711_vm11  ;;  %vm3623_vm10 = vcmask 523264   ;;  %vm3865_vm11 = vcmask 1048064  }
 0x20a   :  { %v2343_v27 = vpop.permute.xlu0 %2342  ;;  %v1461_v47 = vpop.permute.xlu1 %1460  ;;  %vm5479_vm14 = vcmask 1041409   ;;  %vm5679_vm4 = vsmask.f32 1282 }
 0x20b   :  { %2359 = vst.msk [vmem:[#allocation3 + $0xb0] sm:$0xff] %vm1470_vm0, %v2343_v27  ;;  %1478 = vst.msk [vmem:[#allocation3 + $0xa8] sm:$0xff] %vm1470_vm0, %v1461_v47  ;;  %v3719_v27 = vrot.slane %v3717_v11, 7  ;;  %v4645_v47 = vshrl.u32 %v7500_v45, 16  ;;  %v3725_v4 = vrot.slane %v9330_v33, 7  ;;  %v9346_v1 = vshll.u32 %v4569_v43, 16 }
 0x20c   :  { %vm3545_vm0 = vsmask.f32 2306 }
 0x20d   :  { %v3720_v51 = vor.u32 %v3719_v27, %v3716_v3  ;;  %v9336_v34 = vrot.slane %v4645_v47, 6  ;;  %vm9478_vm7 = vmand %vm3249_vm2, %vm3545_vm0 }
 0x20e   :  { %vm9495_vm2 = vmor %vm3948_vm3, %vm3471_vm12 }
 0x20f   :  { %v9350_v14 = vrot.slane %v3720_v51, 2  ;;  %vm9515_vm8 = vmor %vm9495_vm2, %vm3477_vm15  ;;  %vm5769_vm2 = vsmask.f32 2312 }
 0x210   :  { %vm9528_vm9 = vmor %vm9515_vm8, %vm3953_vm6 }
 0x212   :  { %v2550_v50 = vld [vmem:[#allocation3 + $0xb0] sm:$0xff]  ;;  %v2549_v53 = vld [vmem:[#allocation3 + $0xa8] sm:$0xff] }
 0x213   :  { %2815 = vmatprep.mubr.bf16.mxu1 %v2550_v50  ;;  %v4648_v50 = vshll.u32 %v7500_v45, 16 }
 0x214   :  { %2816 = vmatmul.mubr.bf16.gmra.mrb[24].mxu1 %v2549_v53 }
 0x215   :  { %v9338_v61 = vrot.slane %v4648_v50, 7 }
 0x217   :  { %v4651_v44 = vor.u32 %v9338_v61, %v9336_v34  ;;  %v8222_v61 = vld [vmem:[%s10215_s5 + $0x18] sm:$0xff]  }
 0x294   :  { %v7831_v15 = vpop.f32.mrb[32].mxu0 }
 0x295   :  { %v7832_v40 = vpop.f32.mrb[33].mxu0 }
 0x296   :  { %v7833_v20 = vadd.f32 %v7832_v40, %v7831_v15  ;;  %v7834_v21 = vpop.f32.mrb[34].mxu0 }
 0x297   :  { %v7835_v24 = vpop.f32.mrb[35].mxu0 }
 0x298   :  { %v7836_v25 = vadd.f32 %v7835_v24, %v7834_v21  ;;  %v2762_v23 = vadd.f32 %v7833_v20, %v9317_v57  ;;  %v9369_v24 = vld.sshfl [vmem:[#allocation4 + $0x2c] sm:$0x13 pattern:$0x76325410] }
 0x299   :  { %v4701_v3 = vshrl.u32 %v9369_v24, 16  ;;  %v4704_v27 = vshll.u32 %v9369_v24, 16 }
 0x29a   :  { %v2765_v37 = vadd.f32 %v7836_v25, %v9317_v57 }
 0x29b   :  { %v9433_v26 = vrot.slane %v4704_v27, 7 }
 0x29d   :  { %v9319_v30 = vpop.f32.mrb[36].mxu0 }
 0x29e   :  { %v2858_v56 = vpop.f32.mrb[37].mxu0 }
 0x29f   :  { %v2859_v31 = vadd.f32 %v2858_v56, %v2762_v23  ;;  %v9322_v35 = vpop.f32.mrb[38].mxu0  ;;  %v8220_v23 = vld [vmem:[%s10215_s5 + $0x80] sm:$0xff]  }
 0x2a0   :  { %v2861_v42 = vpop.f32.mrb[39].mxu0  ;;  %7918 = vmatpush3.bf16.msra.mxu0 %v8220_v23 }
 0x2a1   :  { %v2862_v63 = vadd.f32 %v2861_v42, %v2765_v37  ;;  %v2921_v53 = vmax.f32 %v2859_v31, 0.0  ;;  %7919 = vmatprep.subr.bf16.mxu0 %v8223_v39  ;;  %v8225_v39 = vld [vmem:[%s10215_s5 + $0x60] sm:$0xff]  }
 0x2a2   :  { %v7837_v54 = vpop.f32.mrb[0].mxu1 }
 0x2a3   :  { %v2922_v17 = vmax.f32 %v2862_v63, 0.0  ;;  %v7838_v38 = vpop.f32.mrb[1].mxu1  ;;  %v4656_v63 = vrot.slane %v9346_v1, 7 }
 0x2a4   :  { %v7839_v16 = vadd.f32 %v7838_v38, %v7837_v54  ;;  %v7840_v5 = vpop.f32.mrb[2].mxu1 }
 0x2a5   :  { %v2937_v62 = vmax.f32 %v2921_v53, %v2922_v17  ;;  %v9332_v55 = vpop.f32.mrb[40].mxu0  ;;  %v7841_v6 = vpop.f32.mrb[3].mxu1 }
 0x2a6   :  { %v9334_v58 = vpop.f32.mrb[41].mxu0  ;;  %v2770_v9 = vadd.f32 %v7839_v16, %v9317_v57  ;;  %v7842_v13 = vadd.f32 %v7841_v6, %v7840_v5  ;;  %v8227_v16 = vld [vmem:[%s10215_s5 + $0xd0] sm:$0xff]  }
 0x2a7   :  { %v2953_v0 = vcombine.high %v2937_v62, %v2937_v62  ;;  %v2960_v46 = vrot.slane %v2937_v62, %v9328_v60  ;;  %v9341_v2 = vpop.f32.mrb[42].mxu0  ;;  %v8224_v62 = vld [vmem:[%s10215_s5 + $0x88] sm:$0xff]  }
 0x2a8   :  { %v9343_v7 = vpop.f32.mrb[43].mxu0  ;;  %v2867_v25 = vadd.f32 %v9319_v30, %v2770_v9  ;;  %v2773_v52 = vadd.f32 %v7842_v13, %v9317_v57  ;;  %v8216_v30 = vld [vmem:[%s10215_s5 + $0x8] sm:$0xff]   ;;  %v8218_v9 = vld [vmem:[%s10215_s5 + $0x10] sm:$0xff]   ;;  %v4601_v13 = vcombine.high %v9369_v24, %v9369_v24  ;;  %7920 = vmatpush3.bf16.msra.mxu0 %v8224_v62 }
 0x2a9   :  { %v2967_v36 = vrot.slane %v2953_v0, %v9328_v60  ;;  %v2968_v8 = vcombine.high %v2960_v46, %v2960_v46  ;;  %v7385_v10 = vrot.slane %v2960_v46, 9  ;;  %v9410_v0 = vrot.slane %v3770_v28, 6  ;;  %7892 = vmatpush3.bf16.msra.mxu1 %v8216_v30  ;;  %7921 = vmatprep.subr.bf16.mxu0 %v8227_v16  ;;  %v8231_v28 = vld [vmem:[%s10215_s5 + $0xd8] sm:$0xff]  }
 0x2aa   :  { %v2870_v45 = vadd.f32 %v9322_v35, %v2773_v52  ;;  %v8217_v35 = vld [vmem:[%s10215_s5 + $0x50] sm:$0xff]   ;;  %v2923_v54 = vmax.f32 %v2867_v25, 0.0  ;;  %v9447_v25 = vsel %vm9420_vm5, %v9350_v14, %v3725_v4  ;;  %v9452_v52 = vrot.slane %v4651_v44, 2 }
 0x2ab   :  { %v2969_v19 = vcombine.high %v2967_v36, %v2967_v36  ;;  %v7386_v15 = vrot.slane %v2968_v8, 9  ;;  %v7387_v40 = vrot.slane %v2967_v36, 9  ;;  %v3217_v20 = vmax.f32 %v2960_v46, %v7385_v10  ;;  %7893 = vmatprep.subr.bf16.mxu1 %v8217_v35 }
 0x2ac   :  { %v2924_v38 = vmax.f32 %v2870_v45, 0.0  ;;  %v9412_v46 = vshll.u32 %v3681_v48, 16  ;;  %v9424_v10 = vrot.slane %v3773_v12, 7  ;;  %v9431_v48 = vrot.slane %v4701_v3, 6  ;;  %v3547_v3 = vld [vmem:[#allocation4 + $0x4] sm:$0x7] }
 0x2ad   :  { %v7388_v56 = vrot.slane %v2969_v19, 9  ;;  %v3218_v49 = vmax.f32 %v2968_v8, %v7386_v15  ;;  %v3219_v11 = vmax.f32 %v2967_v36, %v7387_v40  ;;  %v7719_v31 = vpack.c.bf16 %v3217_v20, %v3217_v20  ;;  %v9379_v37 = vpop.f32.mrb[44].mxu0  ;;  %v8228_v20 = vld [vmem:[%s10215_s5 + $0x90] sm:$0xff]   ;;  %7894 = vmatpush3.bf16.msra.mxu1 %v8218_v9 }
 0x2ae   :  { %v9388_v42 = vpop.f32.mrb[45].mxu0  ;;  %v2938_v22 = vmax.f32 %v2923_v54, %v2924_v38  ;;  %v9457_v12 = vld.sshfl [vmem:[#allocation4] sm:$0x12 pattern:$0x76325410]  ;;  %v3776_v4 = vor.u32 %v9424_v10, %v9410_v0  ;;  %v3781_v34 = vrot.slane %v9412_v46, 7  ;;  %7895 = vmatprep.subr.bf16.mxu1 %v8221_v18  ;;  %7922 = vmatpush3.bf16.msra.mxu0 %v8228_v20 }
 0x2af   :  { %v3220_v47 = vmax.f32 %v2969_v19, %v7388_v56  ;;  %v7720_v50 = vpack.c.bf16 %v3218_v49, %v3218_v49  ;;  %v7721_v53 = vpack.c.bf16 %v3219_v11, %v3219_v11  ;;  %v3437_v17 = vunpack.c.l.b16 %v7719_v31  ;;  %v9403_v43 = vpop.f32.mrb[46].mxu0  ;;  %7923 = vmatprep.subr.bf16.mxu0 %v8231_v28 }
 0x2b0   :  { %v9408_v51 = vpop.f32.mrb[47].mxu0  ;;  %v2970_v21 = vcombine.high %v2938_v22, %v2938_v22  ;;  %v2977_v24 = vrot.slane %v2938_v22, %v9328_v60  ;;  %v8226_v22 = vld [vmem:[%s10215_s5 + $0x20] sm:$0xff]  }
 0x2b1   :  { %v7722_v5 = vpack.c.bf16 %v3220_v47, %v3220_v47  ;;  %v3438_v6 = vunpack.c.l.b16 %v7720_v50  ;;  %v3439_v36 = vunpack.c.l.b16 %v7721_v53  ;;  %v3469_v19 = vrot.slane %v3437_v17, 7  ;;  %v8232_v17 = vld [vmem:[%s10215_s5 + $0x98] sm:$0xff]   ;;  %7896 = vmatpush3.bf16.msra.mxu1 %v8222_v61 }
 0x2b2   :  { %v7843_v23 = vpop.f32.mrb[4].mxu1  ;;  %v2984_v44 = vrot.slane %v2970_v21, %v9328_v60  ;;  %v2985_v49 = vcombine.high %v2977_v24, %v2977_v24  ;;  %v7389_v11 = vrot.slane %v2977_v24, 9  ;;  %v4707_v50 = vor.u32 %v9433_v26, %v9431_v48  ;;  %7897 = vmatprep.subr.bf16.mxu1 %v8225_v39  ;;  %7924 = vmatpush3.bf16.msra.mxu0 %v8232_v17 }
 0x2b3   :  { %v3440_v59 = vunpack.c.l.b16 %v7722_v5  ;;  %v3470_v15 = vrot.slane %v3438_v6, 6  ;;  %v3473_v40 = vrot.slane %v3439_v36, 5  ;;  %v7844_v31 = vpop.f32.mrb[5].mxu1  ;;  %v9486_v53 = vshll.u32 %v4601_v13, 16 }
 0x2b4   :  { %v7845_v27 = vadd.f32 %v7844_v31, %v7843_v23  ;;  %v7846_v35 = vpop.f32.mrb[6].mxu1  ;;  %v2986_v54 = vcombine.high %v2984_v44, %v2984_v44  ;;  %v7390_v38 = vrot.slane %v2985_v49, 9  ;;  %v7391_v0 = vrot.slane %v2984_v44, 9 }
 0x2b5   :  { %v3472_v29 = vsel %vm3471_vm12, %v3470_v15, %v3469_v19  ;;  %v3476_v33 = vrot.slane %v3440_v59, 4  ;;  %v9460_v56 = vpop.f32.mrb[48].mxu0  ;;  %v7847_v16 = vpop.f32.mrb[7].mxu1  ;;  %v3221_v36 = vmax.f32 %v2977_v24, %v7389_v11  ;;  %v3891_v13 = vcombine.high %v9457_v12, %v9457_v12  ;;  %v8229_v19 = vld [vmem:[%s10215_s5 + $0x68] sm:$0xff]   ;;  %7898 = vmatpush3.bf16.msra.mxu1 %v8226_v22 }
 0x2b6   :  { %v3475_v14 = vsel %vm3474_vm13, %v3473_v40, %v3472_v29  ;;  %v9470_v30 = vpop.f32.mrb[49].mxu0  ;;  %v2778_v10 = vadd.f32 %v7845_v27, %v9317_v57  ;;  %v7848_v9 = vadd.f32 %v7847_v16, %v7846_v35  ;;  %v7392_v26 = vrot.slane %v2986_v54, 9  ;;  %7899 = vmatprep.subr.bf16.mxu1 %v8229_v19 }
 0x2b7   :  { %v3478_v45 = vsel %vm3477_vm15, %v3476_v33, %v3475_v14  ;;  %v9482_v47 = vpop.f32.mrb[50].mxu0  ;;  %v3222_v18 = vmax.f32 %v2985_v49, %v7390_v38  ;;  %v3223_v59 = vmax.f32 %v2984_v44, %v7391_v0  ;;  %v7723_v15 = vpack.c.bf16 %v3221_v36, %v3221_v36 }
 0x2b8   :  { %v3528_v62 = vpack.c.b16 %v3478_v45, %v3478_v45  ;;  %v9491_v5 = vpop.f32.mrb[51].mxu0  ;;  %v2875_v40 = vadd.f32 %v9334_v58, %v2778_v10  ;;  %v2781_v20 = vadd.f32 %v7848_v9, %v9317_v57  ;;  %v3777_v21 = vrot.slane %v3776_v4, 2  ;;  %v8230_v4 = vld [vmem:[%s10215_s5 + $0x28] sm:$0xff]  }
 0x2b9   :  { %v3224_v28 = vmax.f32 %v2986_v54, %v7392_v26  ;;  %v7724_v29 = vpack.c.bf16 %v3222_v18, %v3222_v18  ;;  %v7725_v33 = vpack.c.bf16 %v3223_v59, %v3223_v59  ;;  %v4712_v23 = vrot.slane %v9486_v53, 7  ;;  %7900 = vmatpush3.bf16.msra.mxu1 %v8230_v4  ;;  %v3550_v18 = vld [vmem:[#allocation4 + $0x8] sm:$0x7] }
 0x2ba   :  { %v3548_v48 = vsel %vm9478_vm7, %v3528_v62, %v3547_v3  ;;  %v3441_v61 = vunpack.c.l.b16 %v7723_v15  ;;  %v2878_v14 = vadd.f32 %v9343_v7, %v2781_v20  ;;  %v7849_v58 = vpop.f32.mrb[8].mxu1  ;;  %v4708_v44 = vrot.slane %v4707_v50, 2 }
 0x2bb   :  { %3549 = vst [vmem:[#allocation4 + $0x4] sm:$0x7] %v3548_v48  ;;  %v7465_v49 = vrot.slane %v9457_v12, 9  ;;  %v7726_v11 = vpack.c.bf16 %v3224_v28, %v3224_v28  ;;  %v3442_v31 = vunpack.c.l.b16 %v7724_v29  ;;  %v3443_v39 = vunpack.c.l.b16 %v7725_v33  ;;  %v7850_v45 = vpop.f32.mrb[9].mxu1 }
 0x2bc   :  { %v3957_v3 = vrot.slane %v3891_v13, 7  ;;  %v2925_v27 = vmax.f32 %v2875_v40, 0.0  ;;  %v2926_v35 = vmax.f32 %v2878_v14, 0.0  ;;  %v7851_v50 = vadd.f32 %v7850_v45, %v7849_v58  ;;  %v7852_v53 = vpop.f32.mrb[10].mxu1 }
 0x2bd   :  { %v9537_v12 = vsel %vm9420_vm5, %v9452_v52, %v4656_v63  ;;  %v3444_v17 = vunpack.c.l.b16 %v7726_v11  ;;  %v3479_v62 = vrot.slane %v3441_v61, 7  ;;  %v3480_v54 = vrot.slane %v3442_v31, 6  ;;  %v7853_v0 = vpop.f32.mrb[11].mxu1 }
 0x2be   :  { %v3482_v38 = vrot.slane %v3443_v39, 5  ;;  %v2939_v16 = vmax.f32 %v2925_v27, %v2926_v35  ;;  %v2786_v6 = vadd.f32 %v7851_v50, %v9317_v57  ;;  %v7854_v36 = vadd.f32 %v7853_v0, %v7852_v53 }
 0x2bf   :  { %v9544_v10 = vsel %vm9420_vm5, %v3777_v21, %v3781_v34  ;;  %v3481_v1 = vsel %vm3471_vm12, %v3480_v54, %v3479_v62  ;;  %v3484_v63 = vrot.slane %v3444_v17, 4  ;;  %v9549_v52 = vsel %vm9420_vm5, %v4708_v44, %v4712_v23 }
 0x2c0   :  { %v9553_v9 = vsel %vm9528_vm9, %v7465_v49, %v3957_v3  ;;  %v3483_v22 = vsel %vm3474_vm13, %v3482_v38, %v3481_v1  ;;  %v2987_v13 = vcombine.high %v2939_v16, %v2939_v16  ;;  %v2994_v46 = vrot.slane %v2939_v16, %v9328_v60 }
 0x2c1   :  { %v2883_v34 = vadd.f32 %v9332_v55, %v2786_v6  ;;  %v3485_v26 = vsel %vm3477_vm15, %v3484_v63, %v3483_v22  ;;  %v2789_v59 = vadd.f32 %v7854_v36, %v9317_v57 }
 0x2c2   :  { %v7450_v48 = vld.sshfl [vmem:[#allocation4 + $0x4] sm:$0x13 pattern:$0x76325410]  ;;  %v3529_v40 = vpack.c.b16 %v3485_v26, %v3485_v26  ;;  %v3001_v20 = vrot.slane %v2987_v13, %v9328_v60  ;;  %v3002_v21 = vcombine.high %v2994_v46, %v2994_v46  ;;  %v7393_v24 = vrot.slane %v2994_v46, 9 }
 0x2c3   :  { %v3657_v19 = vcombine.high %v7450_v48, %v7450_v48  ;;  %v3728_v15 = vshrl.u32 %v7450_v48, 16  ;;  %v9561_v28 = vld.sshfl [vmem:[#allocation4 + $0x4] sm:$0x12 pattern:$0x76325410]  ;;  %v2927_v29 = vmax.f32 %v2883_v34, 0.0  ;;  %v2886_v33 = vadd.f32 %v9341_v2, %v2789_v59 }
 0x2c4   :  { %v3731_v55 = vshll.u32 %v7450_v48, 16  ;;  %v3551_v61 = vsel %vm9478_vm7, %v3529_v40, %v3550_v18  ;;  %v3003_v14 = vcombine.high %v3001_v20, %v3001_v20  ;;  %v7394_v58 = vrot.slane %v3002_v21, 9 }
 0x2c5   :  { %v3730_v23 = vrot.slane %v3728_v15, 6  ;;  %v7395_v44 = vrot.slane %v3001_v20, 9  ;;  %3552 = vst [vmem:[#allocation4 + $0x8] sm:$0x7] %v3551_v61  ;;  %v3225_v4 = vmax.f32 %v2994_v46, %v7393_v24  ;;  %v2928_v49 = vmax.f32 %v2886_v33, 0.0 }
 0x2c6   :  { %v3733_v11 = vrot.slane %v3731_v55, 7  ;;  %v3737_v31 = vshll.u32 %v3657_v19, 16  ;;  %v7396_v39 = vrot.slane %v3003_v14, 9  ;;  %v3226_v45 = vmax.f32 %v3002_v21, %v7394_v58  ;;  %v7855_v27 = vpop.f32.mrb[12].mxu1 }
 0x2c7   :  { %v3227_v3 = vmax.f32 %v3001_v20, %v7395_v44  ;;  %v4336_v2 = vcombine.high %v9561_v28, %v9561_v28  ;;  %v7727_v35 = vpack.c.bf16 %v3225_v4, %v3225_v4  ;;  %v2940_v50 = vmax.f32 %v2927_v29, %v2928_v49  ;;  %v7856_v53 = vpop.f32.mrb[13].mxu1 }
 0x2c8   :  { %v3734_v17 = vor.u32 %v3733_v11, %v3730_v23  ;;  %v3739_v62 = vrot.slane %v3737_v31, 7  ;;  %v3228_v54 = vmax.f32 %v3003_v14, %v7396_v39  ;;  %v7728_v38 = vpack.c.bf16 %v3226_v45, %v3226_v45  ;;  %v7858_v6 = vpop.f32.mrb[14].mxu1 }
 0x2c9   :  { %v7729_v0 = vpack.c.bf16 %v3227_v3, %v3227_v3  ;;  %v7857_v16 = vadd.f32 %v7856_v53, %v7855_v27  ;;  %v3445_v36 = vunpack.c.l.b16 %v7727_v35  ;;  %v3004_v1 = vcombine.high %v2940_v50, %v2940_v50  ;;  %v7859_v22 = vpop.f32.mrb[15].mxu1 }
 0x2ca   :  { %v3011_v63 = vrot.slane %v2940_v50, %v9328_v60  ;;  %v3735_v13 = vrot.slane %v3734_v17, 2  ;;  %v7730_v46 = vpack.c.bf16 %v3228_v54, %v3228_v54  ;;  %v3446_v34 = vunpack.c.l.b16 %v7728_v38 }
 0x2cb   :  { %v3447_v48 = vunpack.c.l.b16 %v7729_v0  ;;  %v2794_v26 = vadd.f32 %v7857_v16, %v9317_v57  ;;  %v3486_v18 = vrot.slane %v3445_v36, 7  ;;  %v3018_v59 = vrot.slane %v3004_v1, %v9328_v60 }
 0x2cc   :  { %v3019_v19 = vcombine.high %v3011_v63, %v3011_v63  ;;  %v7397_v15 = vrot.slane %v3011_v63, 9  ;;  %v3448_v40 = vunpack.c.l.b16 %v7730_v46  ;;  %v3487_v20 = vrot.slane %v3446_v34, 6  ;;  %v9572_v29 = vld.sshfl [vmem:[#allocation4 + $0x4] sm:$0xf pattern:$0x76325410] }
 0x2cd   :  { %v3489_v21 = vrot.slane %v3447_v48, 5  ;;  %v2891_v24 = vadd.f32 %v9388_v42, %v2794_v26  ;;  %v3020_v33 = vcombine.high %v3018_v59, %v3018_v59  ;;  %v7399_v55 = vrot.slane %v3018_v59, 9  ;;  %v7451_v49 = vld.sshfl [vmem:[#allocation4 + $0x8] sm:$0x13 pattern:$0x76325410] }
 0x2ce   :  { %v7398_v23 = vrot.slane %v3019_v19, 9  ;;  %v3229_v61 = vmax.f32 %v3011_v63, %v7397_v15  ;;  %v3488_v14 = vsel %vm3471_vm12, %v3487_v20, %v3486_v18  ;;  %v3491_v58 = vrot.slane %v3448_v40, 4  ;;  %v3553_v42 = vld [vmem:[#allocation4 + $0xc] sm:$0x7] }
 0x2cf   :  { %v2929_v44 = vmax.f32 %v2891_v24, 0.0  ;;  %v7860_v4 = vadd.f32 %v7859_v22, %v7858_v6  ;;  %v3490_v11 = vsel %vm3474_vm13, %v3489_v21, %v3488_v14  ;;  %v7400_v31 = vrot.slane %v3020_v33, 9 }
 0x2d0   :  { %v3230_v39 = vmax.f32 %v3019_v19, %v7398_v23  ;;  %v3231_v45 = vmax.f32 %v3018_v59, %v7399_v55  ;;  %v3492_v3 = vsel %vm3477_vm15, %v3491_v58, %v3490_v11  ;;  %v7731_v27 = vpack.c.bf16 %v3229_v61, %v3229_v61 }
 0x2d1   :  { %v2797_v35 = vadd.f32 %v7860_v4, %v9317_v57  ;;  %v3530_v50 = vpack.c.b16 %v3492_v3, %v3492_v3  ;;  %v3232_v53 = vmax.f32 %v3020_v33, %v7400_v31  ;;  %v3665_v6 = vcombine.high %v7451_v49, %v7451_v49 }
 0x2d2   :  { %v7732_v17 = vpack.c.bf16 %v3230_v39, %v3230_v39  ;;  %v7733_v54 = vpack.c.bf16 %v3231_v45, %v3231_v45  ;;  %v3449_v38 = vunpack.c.l.b16 %v7731_v27  ;;  %v7861_v16 = vpop.f32.mrb[16].mxu1  ;;  %v9581_v36 = vsel %vm9420_vm5, %v3735_v13, %v3739_v62 }
 0x2d3   :  { %v2894_v0 = vadd.f32 %v9408_v51, %v2797_v35  ;;  %v3554_v1 = vsel %vm9478_vm7, %v3530_v50, %v3553_v42  ;;  %v7734_v63 = vpack.c.bf16 %v3232_v53, %v3232_v53  ;;  %v7862_v34 = vpop.f32.mrb[17].mxu1  ;;  %v3742_v19 = vshrl.u32 %v7451_v49, 16 }
 0x2d4   :  { %v3450_v22 = vunpack.c.l.b16 %v7732_v17  ;;  %v3451_v46 = vunpack.c.l.b16 %v7733_v54  ;;  %3555 = vst [vmem:[#allocation4 + $0xc] sm:$0x7] %v3554_v1  ;;  %v3493_v48 = vrot.slane %v3449_v38, 7  ;;  %v7863_v18 = vadd.f32 %v7862_v34, %v7861_v16  ;;  %v7864_v59 = vpop.f32.mrb[18].mxu1 }
 0x2d5   :  { %v2930_v26 = vmax.f32 %v2894_v0, 0.0  ;;  %v3452_v51 = vunpack.c.l.b16 %v7734_v63  ;;  %v7865_v20 = vpop.f32.mrb[19].mxu1  ;;  %v3745_v21 = vshll.u32 %v7451_v49, 16  ;;  %v3744_v33 = vrot.slane %v3742_v19, 6  ;;  %v3556_v49 = vld [vmem:[#allocation4 + $0x10] sm:$0x7] }
 0x2d6   :  { %v3494_v15 = vrot.slane %v3450_v22, 6  ;;  %v3496_v40 = vrot.slane %v3451_v46, 5  ;;  %v2802_v13 = vadd.f32 %v7863_v18, %v9317_v57  ;;  %v7866_v24 = vadd.f32 %v7865_v20, %v7864_v59 }
 0x2d7   :  { %v2941_v62 = vmax.f32 %v2929_v44, %v2930_v26  ;;  %v3498_v55 = vrot.slane %v3452_v51, 4  ;;  %v3747_v61 = vrot.slane %v3745_v21, 7  ;;  %v3751_v14 = vshll.u32 %v3665_v6, 16 }
 0x2d8   :  { %v3495_v23 = vsel %vm3471_vm12, %v3494_v15, %v3493_v48  ;;  %v2899_v31 = vadd.f32 %v9379_v37, %v2802_v13  ;;  %v2805_v44 = vadd.f32 %v7866_v24, %v9317_v57  ;;  %v3825_v37 = vcombine.low %v9447_v25, %v9581_v36 }
 0x2d9   :  { %v3497_v58 = vsel %vm3474_vm13, %v3496_v40, %v3495_v23  ;;  %v3021_v4 = vcombine.high %v2941_v62, %v2941_v62  ;;  %v3028_v11 = vrot.slane %v2941_v62, %v9328_v60  ;;  %v3748_v45 = vor.u32 %v3747_v61, %v3744_v33 }
 0x2da   :  { %v3499_v39 = vsel %vm3477_vm15, %v3498_v55, %v3497_v58  ;;  %v3753_v3 = vrot.slane %v3751_v14, 7  ;;  %v2931_v53 = vmax.f32 %v2899_v31, 0.0  ;;  %v2902_v17 = vadd.f32 %v9403_v43, %v2805_v44 }
 0x2db   :  { %v3531_v42 = vpack.c.b16 %v3499_v39, %v3499_v39  ;;  %v3035_v27 = vrot.slane %v3021_v4, %v9328_v60  ;;  %v3036_v35 = vcombine.high %v3028_v11, %v3028_v11  ;;  %v7401_v50 = vrot.slane %v3028_v11, 9  ;;  %v7867_v54 = vpop.f32.mrb[20].mxu1  ;;  %v9598_v26 = vld.sshfl [vmem:[#allocation4 + $0xc] sm:$0x13 pattern:$0x76325410] }
 0x2dc   :  { %v3749_v38 = vrot.slane %v3748_v45, 2  ;;  %v7868_v63 = vpop.f32.mrb[21].mxu1  ;;  %v2932_v46 = vmax.f32 %v2902_v17, 0.0  ;;  %v3673_v15 = vcombine.high %v9598_v26, %v9598_v26  ;;  %v3756_v23 = vshrl.u32 %v9598_v26, 16 }
 0x2dd   :  { %v3557_v0 = vsel %vm9478_vm7, %v3531_v42, %v3556_v49  ;;  %v3037_v16 = vcombine.high %v3035_v27, %v3035_v27  ;;  %v7402_v6 = vrot.slane %v3036_v35, 9  ;;  %v7403_v1 = vrot.slane %v3035_v27, 9  ;;  %v7870_v48 = vpop.f32.mrb[22].mxu1 }
 0x2de   :  { %3558 = vst [vmem:[#allocation4 + $0x10] sm:$0x7] %v3557_v0  ;;  %v3233_v22 = vmax.f32 %v3028_v11, %v7401_v50  ;;  %v7869_v34 = vadd.f32 %v7868_v63, %v7867_v54  ;;  %v9602_v43 = vsel %vm9420_vm5, %v3749_v38, %v3753_v3  ;;  %v7871_v51 = vpop.f32.mrb[23].mxu1  ;;  %v2942_v20 = vmax.f32 %v2931_v53, %v2932_v46 }
 0x2df   :  { %v7404_v18 = vrot.slane %v3037_v16, 9  ;;  %v3234_v59 = vmax.f32 %v3036_v35, %v7402_v6  ;;  %v3235_v19 = vmax.f32 %v3035_v27, %v7403_v1  ;;  %v7872_v62 = vadd.f32 %v7871_v51, %v7870_v48 }
 0x2e0   :  { %v7735_v40 = vpack.c.bf16 %v3233_v22, %v3233_v22  ;;  %v2810_v21 = vadd.f32 %v7869_v34, %v9317_v57  ;;  %v3038_v61 = vcombine.high %v2942_v20, %v2942_v20  ;;  %v3045_v14 = vrot.slane %v2942_v20, %v9328_v60 }
 0x2e1   :  { %v3236_v13 = vmax.f32 %v3037_v16, %v7404_v18  ;;  %v7736_v24 = vpack.c.bf16 %v3234_v59, %v3234_v59  ;;  %v7737_v33 = vpack.c.bf16 %v3235_v19, %v3235_v19  ;;  %v2813_v39 = vadd.f32 %v7872_v62, %v9317_v57  ;;  %v3559_v59 = vld [vmem:[#allocation4 + $0x1c] sm:$0x7] }
 0x2e2   :  { %v3453_v55 = vunpack.c.l.b16 %v7735_v40  ;;  %v2907_v58 = vadd.f32 %v9470_v30, %v2810_v21  ;;  %v3052_v44 = vrot.slane %v3038_v61, %v9328_v60  ;;  %v3053_v45 = vcombine.high %v3045_v14, %v3045_v14 }
 0x2e3   :  { %v7738_v4 = vpack.c.bf16 %v3236_v13, %v3236_v13  ;;  %v3454_v11 = vunpack.c.l.b16 %v7736_v24  ;;  %v3455_v31 = vunpack.c.l.b16 %v7737_v33  ;;  %v7405_v3 = vrot.slane %v3045_v14, 9 }
 0x2e4   :  { %v3500_v49 = vrot.slane %v3453_v55, 7  ;;  %v2933_v50 = vmax.f32 %v2907_v58, 0.0  ;;  %v3054_v53 = vcombine.high %v3052_v44, %v3052_v44  ;;  %v7406_v17 = vrot.slane %v3053_v45, 9 }
 0x2e5   :  { %v3456_v42 = vunpack.c.l.b16 %v7738_v4  ;;  %v3501_v27 = vrot.slane %v3454_v11, 6  ;;  %v3503_v35 = vrot.slane %v3455_v31, 5  ;;  %v7407_v54 = vrot.slane %v3052_v44, 9 }
 0x2e6   :  { %v3237_v38 = vmax.f32 %v3045_v14, %v7405_v3  ;;  %v2910_v16 = vadd.f32 %v9491_v5, %v2813_v39  ;;  %v9614_v1 = vrot.slane %v3756_v23, 6  ;;  %v7408_v22 = vrot.slane %v3054_v53, 9  ;;  %v8347_v31 = vld.sshfl [vmem:[#allocation4 + $0xc] sm:$0xf pattern:$0x76325410] }
 0x2e7   :  { %v3502_v30 = vsel %vm3471_vm12, %v3501_v27, %v3500_v49  ;;  %v3505_v0 = vrot.slane %v3456_v42, 4  ;;  %v7873_v6 = vpop.f32.mrb[24].mxu1  ;;  %v3238_v46 = vmax.f32 %v3053_v45, %v7406_v17  ;;  %v3239_v34 = vmax.f32 %v3052_v44, %v7407_v54 }
 0x2e8   :  { %v3504_v63 = vsel %vm3474_vm13, %v3503_v35, %v3502_v30  ;;  %v7874_v48 = vpop.f32.mrb[25].mxu1  ;;  %v7739_v19 = vpack.c.bf16 %v3237_v38, %v3237_v38  ;;  %v2934_v51 = vmax.f32 %v2910_v16, 0.0  ;;  %v3240_v62 = vmax.f32 %v3054_v53, %v7408_v22 }
 0x2e9   :  { %v3506_v18 = vsel %vm3477_vm15, %v3505_v0, %v3504_v63  ;;  %v7875_v40 = vadd.f32 %v7874_v48, %v7873_v6  ;;  %v7876_v20 = vpop.f32.mrb[26].mxu1  ;;  %v7740_v13 = vpack.c.bf16 %v3238_v46, %v3238_v46  ;;  %v7741_v5 = vpack.c.bf16 %v3239_v34, %v3239_v34  ;;  %v3562_v46 = vld [vmem:[#allocation4 + $0x20] sm:$0x7] }
 0x2ea   :  { %v3532_v21 = vpack.c.b16 %v3506_v18, %v3506_v18  ;;  %v7877_v24 = vpop.f32.mrb[27].mxu1  ;;  %v3457_v33 = vunpack.c.l.b16 %v7739_v19  ;;  %v2943_v23 = vmax.f32 %v2933_v50, %v2934_v51  ;;  %v7742_v58 = vpack.c.bf16 %v3240_v62, %v3240_v62 }
 0x2eb   :  { %v2818_v55 = vadd.f32 %v7875_v40, %v9317_v57  ;;  %v7878_v61 = vadd.f32 %v7877_v24, %v7876_v20  ;;  %v3458_v4 = vunpack.c.l.b16 %v7740_v13  ;;  %v3459_v11 = vunpack.c.l.b16 %v7741_v5 }
 0x2ec   :  { %v3560_v14 = vsel %vm9478_vm7, %v3532_v21, %v3559_v59  ;;  %v3507_v39 = vrot.slane %v3457_v33, 7  ;;  %v3055_v49 = vcombine.high %v2943_v23, %v2943_v23  ;;  %v3062_v44 = vrot.slane %v2943_v23, %v9328_v60 }
 0x2ed   :  { %3561 = vst [vmem:[#allocation4 + $0x1c] sm:$0x7] %v3560_v14  ;;  %v2915_v45 = vadd.f32 %v9460_v56, %v2818_v55  ;;  %v3460_v3 = vunpack.c.l.b16 %v7742_v58  ;;  %v3508_v42 = vrot.slane %v3458_v4, 6  ;;  %v3510_v27 = vrot.slane %v3459_v11, 5 }
 0x2ee   :  { %v2821_v35 = vadd.f32 %v7878_v61, %v9317_v57  ;;  %v3069_v50 = vrot.slane %v3055_v49, %v9328_v60  ;;  %v3070_v53 = vcombine.high %v3062_v44, %v3062_v44  ;;  %v7409_v17 = vrot.slane %v3062_v44, 9  ;;  %v8236_v49 = vld [vmem:[%s10215_s5 + $0x30] sm:$0xff]  }
 0x2ef   :  { %v2935_v54 = vmax.f32 %v2915_v45, 0.0  ;;  %v3509_v38 = vsel %vm3471_vm12, %v3508_v42, %v3507_v39  ;;  %v3512_v30 = vrot.slane %v3460_v3, 4  ;;  %v4057_v48 = vcombine.low %v9572_v29, %v8347_v31  ;;  %v8235_v39 = vld [vmem:[%s10215_s5 + $0x70] sm:$0xff]  }
 0x2f0   :  { %v2918_v0 = vadd.f32 %v9482_v47, %v2821_v35  ;;  %v3511_v16 = vsel %vm3474_vm13, %v3510_v27, %v3509_v38  ;;  %v3071_v6 = vcombine.high %v3069_v50, %v3069_v50  ;;  %v7410_v63 = vrot.slane %v3070_v53, 9  ;;  %v8238_v35 = vld [vmem:[%s10215_s5 + $0xa0] sm:$0xff]   ;;  %v9652_v38 = vld.sshfl [vmem:[#allocation4 + $0x8] sm:$0x12 pattern:$0x76325410]  ;;  %7901 = vmatprep.subr.bf16.mxu1 %v8235_v39 }
 0x2f1   :  { %v7411_v56 = vrot.slane %v3069_v50, 9  ;;  %v3513_v22 = vsel %vm3477_vm15, %v3512_v30, %v3511_v16  ;;  %v3241_v34 = vmax.f32 %v3062_v44, %v7409_v17  ;;  %4075 = vrot.lane.b32.xlu0 %v4057_v48, %s8384_s10  ;;  %v3759_v47 = vshll.u32 %v9598_v26, 16  ;;  %v8237_v44 = vld [vmem:[%s10215_s5 + $0xe0] sm:$0xff]   ;;  %7902 = vmatpush3.bf16.msra.mxu1 %v8236_v49 }
 0x2f2   :  { %v2936_v57 = vmax.f32 %v2918_v0, 0.0  ;;  %v3533_v18 = vpack.c.b16 %v3513_v22, %v3513_v22  ;;  %v7412_v59 = vrot.slane %v3071_v6, 9  ;;  %v3242_v19 = vmax.f32 %v3070_v53, %v7410_v63  ;;  %7925 = vmatprep.subr.bf16.mxu0 %v8237_v44  ;;  %v3565_v48 = vld [vmem:[#allocation4 + $0x24] sm:$0x7] }
 0x2f3   :  { %v3243_v51 = vmax.f32 %v3069_v50, %v7411_v56  ;;  %v7743_v40 = vpack.c.bf16 %v3241_v34, %v3241_v34  ;;  %v3765_v21 = vshll.u32 %v3673_v15, 16  ;;  %v3761_v55 = vrot.slane %v3759_v47, 7  ;;  %7926 = vmatpush3.bf16.msra.mxu0 %v8238_v35  ;;  %v7484_v34 = vld.sshfl [vmem:[#allocation4 + $0x10] sm:$0x12 pattern:$0x76325410] }
 0x2f4   :  { %v2944_v20 = vmax.f32 %v2935_v54, %v2936_v57  ;;  %v3563_v62 = vsel %vm9478_vm7, %v3533_v18, %v3562_v46  ;;  %v3244_v13 = vmax.f32 %v3071_v6, %v7412_v59  ;;  %v7744_v5 = vpack.c.bf16 %v3242_v19, %v3242_v19  ;;  %v7483_v6 = vld.sshfl [vmem:[#allocation4 + $0xc] sm:$0x12 pattern:$0x76325410] }
 0x2f5   :  { %v7745_v29 = vpack.c.bf16 %v3243_v51, %v3243_v51  ;;  %3564 = vst [vmem:[#allocation4 + $0x20] sm:$0x7] %v3563_v62  ;;  %v3461_v24 = vunpack.c.l.b16 %v7743_v40  ;;  %v3767_v4 = vrot.slane %v3765_v21, 7  ;;  %v3762_v27 = vor.u32 %v3761_v55, %v9614_v1 }
 0x2f6   :  { %v3072_v33 = vcombine.high %v2944_v20, %v2944_v20  ;;  %v3079_v23 = vrot.slane %v2944_v20, %v9328_v60  ;;  %v7746_v61 = vpack.c.bf16 %v3244_v13, %v3244_v13  ;;  %v3462_v14 = vunpack.c.l.b16 %v7744_v5 }
 0x2f7   :  { %v3463_v58 = vunpack.c.l.b16 %v7745_v29  ;;  %v3514_v11 = vrot.slane %v3461_v24, 7  ;;  %v3763_v16 = vrot.slane %v3762_v27, 2  ;;  %v3833_v1 = vrot.slane %v3825_v37, %v9328_v60  ;;  %v3568_v27 = vld [vmem:[#allocation4 + $0x28] sm:$0x7] }
 0x2f8   :  { %v3086_v26 = vrot.slane %v3072_v33, %v9328_v60  ;;  %v3087_v15 = vcombine.high %v3079_v23, %v3079_v23  ;;  %v7413_v31 = vrot.slane %v3079_v23, 9  ;;  %v3464_v45 = vunpack.c.l.b16 %v7746_v61  ;;  %v7499_v33 = vld.sshfl [vmem:[#allocation4 + $0x10] sm:$0x13 pattern:$0x76325410] }
 0x2f9   :  { %v3515_v3 = vrot.slane %v3462_v14, 6  ;;  %v3517_v42 = vrot.slane %v3463_v58, 5  ;;  %v9663_v59 = vsel %vm9420_vm5, %v3763_v16, %v3767_v4  ;;  %v4344_v25 = vcombine.high %v9652_v38, %v9652_v38  ;;  %v8239_v58 = vld [vmem:[%s10215_s5 + $0x78] sm:$0xff]  }
 0x2fa   :  { %v3088_v50 = vcombine.high %v3086_v26, %v3086_v26  ;;  %v7414_v53 = vrot.slane %v3087_v15, 9  ;;  %v7415_v17 = vrot.slane %v3086_v26, 9  ;;  %v3245_v54 = vmax.f32 %v3079_v23, %v7413_v31  ;;  %v8240_v4 = vld [vmem:[%s10215_s5 + $0x38] sm:$0xff]   ;;  %7903 = vmatprep.subr.bf16.mxu1 %v8239_v58 }
 0x2fb   :  { %v3516_v30 = vsel %vm3471_vm12, %v3515_v3, %v3514_v11  ;;  %v3519_v0 = vrot.slane %v3464_v45, 4  ;;  %v3826_v47 = vcombine.low %v9602_v43, %v9663_v59  ;;  %v4352_v21 = vcombine.high %v7483_v6, %v7483_v6  ;;  %v8241_v11 = vld [vmem:[%s10215_s5 + $0xe8] sm:$0xff]   ;;  %7904 = vmatpush3.bf16.msra.mxu1 %v8240_v4 }
 0x2fc   :  { %v3518_v63 = vsel %vm3474_vm13, %v3517_v42, %v3516_v30  ;;  %v7416_v56 = vrot.slane %v3088_v50, 9  ;;  %v3246_v22 = vmax.f32 %v3087_v15, %v7414_v53  ;;  %v3247_v46 = vmax.f32 %v3086_v26, %v7415_v17  ;;  %7927 = vmatprep.subr.bf16.mxu0 %v8241_v11  ;;  %v7454_v30 = vld.sshfl [vmem:[#allocation4 + $0x1c] sm:$0x13 pattern:$0x76325410] }
 0x2fd   :  { %v3520_v57 = vsel %vm3477_vm15, %v3519_v0, %v3518_v63  ;;  %v7747_v18 = vpack.c.bf16 %v3245_v54, %v3245_v54  ;;  %v4360_v62 = vcombine.high %v7484_v34, %v7484_v34  ;;  %v9672_v55 = vrot.slane %v3826_v47, %v9328_v60  ;;  %v7455_v63 = vld.sshfl [vmem:[#allocation4 + $0x20] sm:$0x13 pattern:$0x76325410]  ;;  %v8245_v47 = vld [vmem:[%s10215_s5 + $0xf0] sm:$0xff]  }
 0x2fe   :  { %v3534_v37 = vpack.c.b16 %v3520_v57, %v3520_v57  ;;  %v3248_v19 = vmax.f32 %v3088_v50, %v7416_v56  ;;  %v7748_v51 = vpack.c.bf16 %v3246_v22, %v3246_v22  ;;  %v7749_v40 = vpack.c.bf16 %v3247_v46, %v3247_v46 }
 0x2ff   :  { %v3465_v20 = vunpack.c.l.b16 %v7747_v18  ;;  %v7489_v61 = vrot.slane %v9561_v28, 9  ;;  %v4395_v14 = vrot.slane %v4336_v2, 7  ;;  %v7490_v39 = vrot.slane %v9652_v38, 9  ;;  %v8242_v28 = vld [vmem:[%s10215_s5 + $0xa8] sm:$0xff]  }
 0x300   :  { %v3566_v13 = vsel %vm9478_vm7, %v3534_v37, %v3565_v48  ;;  %v7750_v5 = vpack.c.bf16 %v3248_v19, %v3248_v19  ;;  %v3466_v29 = vunpack.c.l.b16 %v7748_v51  ;;  %v3467_v24 = vunpack.c.l.b16 %v7749_v40  ;;  %7928 = vmatpush3.bf16.msra.mxu0 %v8242_v28 }
 0x301   :  { %3567 = vst [vmem:[#allocation4 + $0x24] sm:$0x7] %v3566_v13  ;;  %v3521_v23 = vrot.slane %v3465_v20, 7  ;;  %v3841_v2 = vcombine.low %v3833_v1, %v9672_v55  ;;  %v9694_v49 = vsel %vm9528_vm9, %v7489_v61, %v4395_v14  ;;  %v4399_v44 = vrot.slane %v4344_v25, 7  ;;  %7929 = vmatprep.subr.bf16.mxu0 %v8245_v47  ;;  %v8247_v14 = vld [vmem:[%s10215_s5 + $0xf8] sm:$0xff]  }
 0x302   :  { %v3468_v26 = vunpack.c.l.b16 %v7750_v5  ;;  %v3522_v15 = vrot.slane %v3466_v29, 6  ;;  %v3524_v31 = vrot.slane %v3467_v24, 5  ;;  %v7491_v45 = vrot.slane %v7483_v6, 9 }
 0x303   :  { %v4403_v35 = vrot.slane %v4352_v21, 7  ;;  %v7492_v50 = vrot.slane %v7484_v34, 9  ;;  %3859 = vrot.lane.b32.xlu1 %v3841_v2, %s8384_s10  ;;  %v9701_v17 = vsel %vm9528_vm9, %v7490_v39, %v4399_v44  ;;  %v4407_v54 = vrot.slane %v4360_v62, 7  ;;  %v8246_v21 = vld [vmem:[%s10215_s5 + $0xb0] sm:$0xff]   ;;  %v8248_v39 = vld [vmem:[%s10215_s5 + $0xb8] sm:$0xff]  }
 0x304   :  { %v3523_v3 = vsel %vm3471_vm12, %v3522_v15, %v3521_v23  ;;  %v3526_v42 = vrot.slane %v3468_v26, 4  ;;  %v4561_v38 = vcombine.high %v7499_v33, %v7499_v33  ;;  %v4425_v1 = vcombine.low %v9694_v49, %v9701_v17  ;;  %v9723_v61 = vld.sshfl [vmem:[#allocation4 + $0x1c] sm:$0xf pattern:$0x76325410]  ;;  %7930 = vmatpush3.bf16.msra.mxu0 %v8246_v21 }
 0x305   :  { %v3525_v53 = vsel %vm3474_vm13, %v3524_v31, %v3523_v3  ;;  %v9706_v16 = vsel %vm9528_vm9, %v7491_v45, %v4403_v35  ;;  %v4631_v6 = vshrl.u32 %v7499_v33, 16  ;;  %v4408_v22 = vsel %vm9528_vm9, %v7492_v50, %v4407_v54  ;;  %v7485_v15 = vld.sshfl [vmem:[#allocation4 + $0x1c] sm:$0x12 pattern:$0x76325410]  ;;  %7931 = vmatprep.subr.bf16.mxu0 %v8247_v14  ;;  %vm9862_vm13 = vmand %vm3948_vm3, %vm391_vm1 }
 0x306   :  { %v3527_v0 = vsel %vm3477_vm15, %v3526_v42, %v3525_v53  ;;  %v4634_v46 = vshll.u32 %v7499_v33, 16  ;;  %v4640_v34 = vshll.u32 %v4561_v38, 16  ;;  %v4426_v57 = vcombine.low %v9706_v16, %v4408_v22  ;;  %v7486_v31 = vld.sshfl [vmem:[#allocation4 + $0x20] sm:$0x12 pattern:$0x76325410] }
 0x307   :  { %v3535_v56 = vpack.c.b16 %v3527_v0, %v3527_v0  ;;  %v4433_v48 = vrot.slane %v4425_v1, %v9328_v60  ;;  %v4633_v18 = vrot.slane %v4631_v6, 6  ;;  %v3689_v37 = vcombine.high %v7454_v30, %v7454_v30 }
 0x308   :  { %v7456_v25 = vld.sshfl [vmem:[#allocation4 + $0x24] sm:$0x13 pattern:$0x76325410]  ;;  %v4636_v51 = vrot.slane %v4634_v46, 7  ;;  %v4642_v40 = vrot.slane %v4640_v34, 7  ;;  %v3697_v20 = vcombine.high %v7455_v63, %v7455_v63  ;;  %v4440_v62 = vrot.slane %v4426_v57, %v9328_v60  ;;  %7932 = vmatpush3.bf16.msra.mxu0 %v8248_v39 }
 0x309   :  { %v3569_v19 = vsel %vm9478_vm7, %v3535_v56, %v3568_v27  ;;  %v3705_v13 = vcombine.high %v7456_v25, %v7456_v25  ;;  %v3784_v5 = vshrl.u32 %v7454_v30, 16  ;;  %v3787_v29 = vshll.u32 %v7454_v30, 16  ;;  %v7487_v38 = vld.sshfl [vmem:[#allocation4 + $0x24] sm:$0x12 pattern:$0x76325410] }
 0x30a   :  { %3570 = vst [vmem:[#allocation4 + $0x28] sm:$0x7] %v3569_v19  ;;  %v4637_v24 = vor.u32 %v4636_v51, %v4633_v18  ;;  %v3793_v32 = vshll.u32 %v3689_v37, 16  ;;  %v3798_v33 = vshrl.u32 %v7455_v63, 16  ;;  %v3801_v23 = vshll.u32 %v7455_v63, 16 }
 0x30b   :  { %v4441_v58 = vcombine.low %v4433_v48, %v4440_v62  ;;  %v3786_v4 = vrot.slane %v3784_v5, 6  ;;  %v3789_v11 = vrot.slane %v3787_v29, 7  ;;  %v3807_v26 = vshll.u32 %v3697_v20, 16 }
 0x30c   :  { %v4638_v28 = vrot.slane %v4637_v24, 2  ;;  %v3795_v2 = vrot.slane %v3793_v32, 7  ;;  %v3800_v44 = vrot.slane %v3798_v33, 6  ;;  %v3803_v45 = vrot.slane %v3801_v23, 7 }
 0x30d   :  { %4459 = vrot.lane.b32.xlu1 %v4441_v58, %s8384_s10  ;;  %v3790_v3 = vor.u32 %v3789_v11, %v3786_v4  ;;  %v3809_v42 = vrot.slane %v3807_v26, 7  ;;  %v3812_v27 = vshrl.u32 %v7456_v25, 16  ;;  %v3815_v35 = vshll.u32 %v7456_v25, 16 }
 0x30e   :  { %v9734_v50 = vsel %vm9420_vm5, %v4638_v28, %v4642_v40  ;;  %v3804_v53 = vor.u32 %v3803_v45, %v3800_v44  ;;  %v3821_v54 = vshll.u32 %v3705_v13, 16  ;;  %v4368_v46 = vcombine.high %v7485_v15, %v7485_v15  ;;  %v8350_v39 = vld.sshfl [vmem:[#allocation4 + $0x8] sm:$0xf pattern:$0x76325410] }
 0x30f   :  { %v4715_v30 = vcombine.low %v9734_v50, %v9537_v12  ;;  %v3791_v0 = vrot.slane %v3790_v3, 2  ;;  %v3814_v1 = vrot.slane %v3812_v27, 6  ;;  %v3817_v6 = vrot.slane %v3815_v35, 7  ;;  %v9746_v12 = vld [vmem:[%s10215_s5 + $0x100] sm:$0xff]  }
 0x310   :  { %v3805_v63 = vrot.slane %v3804_v53, 2  ;;  %v3823_v56 = vrot.slane %v3821_v54, 7  ;;  %v4376_v34 = vcombine.high %v7486_v31, %v7486_v31  ;;  %v4384_v37 = vcombine.high %v7487_v38, %v7487_v38  ;;  %8068 = vmatprep.subr.bf16.mxu1 %v9746_v12  ;;  %v8351_v28 = vld.sshfl [vmem:[#allocation4] sm:$0xf pattern:$0x76325410] }
 0x311   :  { %v8349_v22 = vld.sshfl [vmem:[#allocation4 + $0x24] sm:$0xf pattern:$0x76325410]  ;;  %v4729_v57 = vrot.slane %v4715_v30, %v9328_v60  ;;  %v9741_v48 = vsel %vm9420_vm5, %v3791_v0, %v3795_v2  ;;  %v3818_v18 = vor.u32 %v3817_v6, %v3814_v1  ;;  %v7493_v21 = vrot.slane %v7485_v15, 9 }
 0x312   :  { %v7488_v25 = vld.sshfl [vmem:[#allocation4 + $0x28] sm:$0x12 pattern:$0x76325410]  ;;  %v9750_v19 = vsel %vm9420_vm5, %v3805_v63, %v3809_v42  ;;  %v3842_v51 = vcombine.low %v9544_v10, %v9741_v48  ;;  %v4411_v62 = vrot.slane %v4368_v46, 7  ;;  %v4074_v5 = vcombine.low %v9723_v61, %v8349_v22 }
 0x313   :  { %v4392_v40 = vcombine.high %v7488_v25, %v7488_v25  ;;  %v4730_v20 = vcombine.low %v9672_v55, %v4729_v57  ;;  %v3819_v47 = vrot.slane %v3818_v18, 2  ;;  %v7494_v29 = vrot.slane %v7486_v31, 9  ;;  %v7503_v32 = vld.sshfl [vmem:[#allocation4 + $0x28] sm:$0x13 pattern:$0x76325410] }
 0x314   :  { %v3850_v13 = vrot.slane %v3842_v51, %v9328_v60  ;;  %v4415_v24 = vrot.slane %v4376_v34, 7  ;;  %v9765_v55 = vsel %vm9528_vm9, %v7493_v21, %v4411_v62  ;;  %v7495_v33 = vrot.slane %v7487_v38, 9  ;;  %v8352_v54 = vld.sshfl [vmem:[#allocation4 + $0x8] sm:$0xf pattern:$0x76325410] }
 0x315   :  { %4748 = vrot.lane.b32.xlu0 %v4730_v20, %s8384_s10  ;;  %v9761_v10 = vsel %vm9420_vm5, %v3819_v47, %v3823_v56  ;;  %v4419_v23 = vrot.slane %v4384_v37, 7  ;;  %v7496_v58 = vrot.slane %v7488_v25, 9  ;;  %v4423_v4 = vrot.slane %v4392_v40, 7 }
 0x316   :  { %v3843_v14 = vcombine.low %v9750_v19, %v9761_v10  ;;  %v4416_v61 = vsel %vm9528_vm9, %v7494_v29, %v4415_v24  ;;  %v4593_v15 = vcombine.high %v7503_v32, %v7503_v32  ;;  %v4687_v31 = vshrl.u32 %v7503_v32, 16  ;;  %v8353_v38 = vld.sshfl [vmem:[#allocation4 + $0x10] sm:$0xf pattern:$0x76325410] }
 0x317   :  { %v4420_v11 = vsel %vm9528_vm9, %v7495_v33, %v4419_v23  ;;  %v4442_v26 = vcombine.low %v9765_v55, %v4416_v61  ;;  %v9779_v44 = vsel %vm9528_vm9, %v7496_v58, %v4423_v4  ;;  %v4690_v45 = vshll.u32 %v7503_v32, 16  ;;  %v8354_v63 = vld.sshfl [vmem:[#allocation4 + $0x18] sm:$0xf pattern:$0x76325410] }
 0x318   :  { %v9775_v2 = vrot.slane %v3843_v14, %v9328_v60  ;;  %v3988_v3 = vcombine.low %v9701_v17, %v9706_v16  ;;  %v4443_v42 = vcombine.low %v4420_v11, %v9779_v44  ;;  %v4689_v35 = vrot.slane %v4687_v31, 6  ;;  %v8355_v56 = vld.sshfl [vmem:[#allocation4 + $0x20] sm:$0xf pattern:$0x76325410] }
 0x319   :  { %4077 = vrot.lane.b32.xlu0 %v4074_v5, %s8384_s10  ;;  %v4450_v27 = vrot.slane %v4442_v26, %v9328_v60  ;;  %v4696_v53 = vshll.u32 %v4593_v15, 16  ;;  %v4692_v0 = vrot.slane %v4690_v45, 7  ;;  %v3987_v6 = vcombine.low %v9553_v9, %v9694_v49  ;;  %v7461_v18 = vld.sshfl [vmem:[#allocation4 + $0x18] sm:$0x12 pattern:$0x76325410] }
 0x31a   :  { %v3858_v30 = vcombine.low %v3850_v13, %v9775_v2  ;;  %v4002_v1 = vrot.slane %v3988_v3, %v9328_v60  ;;  %v4457_v17 = vrot.slane %v4443_v42, %v9328_v60  ;;  %v4275_v34 = vcombine.low %v9581_v36, %v9602_v43  ;;  %v8356_v20 = vld.sshfl [vmem:[#allocation4 + $0x20] sm:$0xf pattern:$0x76325410] }
 0x31b   :  { %v4698_v16 = vrot.slane %v4696_v53, 7  ;;  %v4693_v22 = vor.u32 %v4692_v0, %v4689_v35  ;;  %v3995_v46 = vrot.slane %v3987_v6, %v9328_v60  ;;  %v4276_v57 = vcombine.low %v9663_v59, %v9734_v50  ;;  %v8357_v47 = vld.sshfl [vmem:[#allocation4 + $0x28] sm:$0xf pattern:$0x76325410] }
 0x31c   :  { %3861 = vrot.lane.b32.xlu1 %v3858_v30, %s8384_s10  ;;  %v4458_v25 = vcombine.low %v4450_v27, %v4457_v17  ;;  %v3603_v37 = vcombine.low %v8351_v28, %v8350_v39  ;;  %v4283_v51 = vrot.slane %v4275_v34, %v9328_v60  ;;  %v4500_v21 = vcombine.low %v8352_v54, %v8353_v38  ;;  %v7505_v13 = vld.sshfl [vmem:[#allocation4 + $0x8] sm:$0x12 pattern:$0x76325410] }
 0x31d   :  { %v4694_v9 = vrot.slane %v4693_v22, 2  ;;  %v4003_v49 = vcombine.low %v3995_v46, %v4002_v1  ;;  %v4290_v40 = vrot.slane %v4276_v57, %v9328_v60  ;;  %v3923_v62 = vcombine.high %v7461_v18, %v7461_v18  ;;  %v7508_v5 = vld.sshfl [vmem:[#allocation4 + $0x14] sm:$0x12 pattern:$0x76325410] }
 0x31e   :  { %3624 = vst.msk [vmem:[#allocation5] sm:$0xff] %vm3623_vm10, %v3603_v37  ;;  %v7469_v59 = vrot.slane %v7461_v18, 9  ;;  %v4005_v50 = vcombine.low %v4416_v61, %v4420_v11  ;;  %4520 = vst.msk [vmem:[#allocation5 + $0x18] sm:$0xff] %vm3623_vm10, %v4500_v21  ;;  %v3620_v24 = vcombine.low %v8354_v63, %v8355_v56  ;;  %v4292_v33 = vcombine.low %v9741_v48, %v9750_v19  ;;  %v8255_v21 = vld [vmem:[%s10215_s5 + $0x110] sm:$0xff]  }
 0x31f   :  { %v4699_v36 = vsel %vm9420_vm5, %v4694_v9, %v4698_v16  ;;  %4023 = vst.msk [vmem:[#allocation5 + $0x8] sm:$0xff] %vm3623_vm10, %v4003_v49  ;;  %v4291_v43 = vcombine.low %v4283_v51, %v4290_v40  ;;  %v3973_v32 = vrot.slane %v3923_v62, 7  ;;  %v7506_v23 = vld.sshfl [vmem:[#allocation4 + $0xc] sm:$0x12 pattern:$0x76325410]  ;;  %v4779_v11 = vcombine.high %v7505_v13, %v7505_v13 }
 0x320   :  { %4461 = vrot.lane.b32.xlu1 %v4458_v25, %s8384_s10  ;;  %v4732_v29 = vcombine.low %v4699_v36, %v9549_v52  ;;  %v4019_v8 = vrot.slane %v4005_v50, %v9328_v60  ;;  %v4293_v14 = vcombine.low %v9761_v10, %v4699_v36  ;;  %v7507_v58 = vld.sshfl [vmem:[#allocation4 + $0x10] sm:$0x12 pattern:$0x76325410]  ;;  %3625 = vst.msk [vmem:[#allocation5 + $0x28] sm:$0xff] %vm3623_vm10, %v3620_v24  ;;  %v7513_v28 = vrot.slane %v7505_v13, 9 }
 0x321   :  { %4311 = vst.msk [vmem:[#allocation5 + $0x10] sm:$0xff] %vm3623_vm10, %v4291_v43  ;;  %v3974_v52 = vsel %vm9528_vm9, %v7469_v59, %v3973_v32  ;;  %v4300_v4 = vrot.slane %v4292_v33, %v9328_v60  ;;  %v4517_v26 = vcombine.low %v8356_v20, %v8357_v47  ;;  %v4787_v15 = vcombine.high %v7506_v23, %v7506_v23  ;;  %v7512_v45 = vld.sshfl [vmem:[#allocation4 + $0x2c] sm:$0x12 pattern:$0x76325410]  ;;  %v8256_v62 = vld [vmem:[%s10215_s5 + $0x118] sm:$0xff]  }
 0x322   :  { %v4746_v61 = vrot.slane %v4732_v29, %v9328_v60  ;;  %v4004_v48 = vcombine.low %v3974_v52, %v9765_v55  ;;  %v4307_v19 = vrot.slane %v4293_v14, %v9328_v60  ;;  %v4795_v10 = vcombine.high %v7507_v58, %v7507_v58 }
 0x323   :  { %v4803_v39 = vcombine.high %v7508_v5, %v7508_v5  ;;  %4521 = vst.msk [vmem:[#allocation5 + $0x40] sm:$0xff] %vm3623_vm10, %v4517_v26  ;;  %v4838_v27 = vrot.slane %v4779_v11, 7  ;;  %v7514_v35 = vrot.slane %v7506_v23, 9  ;;  %v4842_v55 = vrot.slane %v4787_v15, 7 }
 0x324   :  { %v4747_v31 = vcombine.low %v9775_v2, %v4746_v61  ;;  %v4012_v3 = vrot.slane %v4004_v48, %v9328_v60  ;;  %v4308_v42 = vcombine.low %v4300_v4, %v4307_v19  ;;  %v7515_v53 = vrot.slane %v7507_v58, 9  ;;  %v5467_v58 = vld [vmem:[#allocation6 + $0x2] sm:$0x1]  ;;  %v5482_v4 = vld [vmem:[#allocation6 + $0x2] sm:$0x2] }
 0x325   :  { %v4846_v54 = vrot.slane %v4795_v10, 7  ;;  %v7516_v38 = vrot.slane %v7508_v5, 9  ;;  %v4850_v2 = vrot.slane %v4803_v39, 7  ;;  %v4835_v0 = vcombine.high %v7512_v45, %v7512_v45  ;;  %v5473_v48 = vld [vmem:[#allocation6 + $0xa] sm:$0x1] }
 0x326   :  { %4750 = vrot.lane.b32.xlu0 %v4747_v31, %s8384_s10  ;;  %v4020_v30 = vcombine.low %v4012_v3, %v4019_v8  ;;  %4312 = vst.msk [vmem:[#allocation5 + $0x38] sm:$0xff] %vm3623_vm10, %v4308_v42  ;;  %v4839_v1 = vsel %vm9528_vm9, %v7513_v28, %v4838_v27  ;;  %v4843_v6 = vsel %vm9528_vm9, %v7514_v35, %v4842_v55  ;;  %v7520_v16 = vrot.slane %v7512_v45, 9  ;;  %v5488_v19 = vld [vmem:[#allocation6 + $0xa] sm:$0x2]  ;;  %v5470_v31 = vld [vmem:[#allocation6 + $0x4] sm:$0x1] }
 0x327   :  { %v4847_v17 = vsel %vm9528_vm9, %v7515_v53, %v4846_v54  ;;  %v4851_v63 = vsel %vm9528_vm9, %v7516_v38, %v4850_v2  ;;  %v4868_v56 = vcombine.low %v4839_v1, %v4843_v6  ;;  %v4866_v22 = vrot.slane %v4835_v0, 7  ;;  %v5485_v10 = vld [vmem:[#allocation6 + $0x4] sm:$0x2]  ;;  %v5476_v39 = vld [vmem:[#allocation6 + $0xc] sm:$0x1]  ;;  %v8265_v1 = vld [vmem:[%s10217_s7 + $0xd0] sm:$0xff]  }
 0x328   :  { %4024 = vst.msk [vmem:[#allocation5 + $0x30] sm:$0xff] %vm3623_vm10, %v4020_v30  ;;  %v4869_v46 = vcombine.low %v4847_v17, %v4851_v63  ;;  %vm5480_vm15 = vsmask.f32 7942  ;;  %v5468_v61 = vsel %vm9862_vm13, 0, %v5467_v58  ;;  %v5474_v26 = vsel %vm9862_vm13, 0, %v5473_v48  ;;  %v8257_v35 = vld [vmem:[%s10217_s7 + $0xc0] sm:$0xff]  }
 0x329   :  { %v4867_v34 = vsel %vm9528_vm9, %v7520_v16, %v4866_v22  ;;  %v4876_v57 = vrot.slane %v4868_v56, %v9328_v60  ;;  %vm9868_vm0 = vmand %vm5479_vm14, %vm5480_vm15  ;;  %5469 = vst [vmem:[#allocation6 + $0x2] sm:$0x1] %v5468_v61  ;;  %v5471_v28 = vsel %vm9862_vm13, 0, %v5470_v31  ;;  %v5477_v3 = vsel %vm9862_vm13, 0, %v5476_v39  ;;  %v5491_v42 = vld [vmem:[#allocation6 + $0xc] sm:$0x2]  ;;  %7973 = vmatprep.subr.bf16.mxu0 %v8257_v35 }
 0x32a   :  { %v4883_v18 = vrot.slane %v4869_v46, %v9328_v60  ;;  %v4886_v25 = vcombine.low %v9779_v44, %v4867_v34  ;;  %v8252_v44 = vld [vmem:[%s10215_s5 + $0x108] sm:$0xff]   ;;  %v5483_v11 = vsel %vm9868_vm0, 0, %v5482_v4  ;;  %v5489_v15 = vsel %vm9868_vm0, 0, %v5488_v19  ;;  %5475 = vst [vmem:[#allocation6 + $0xa] sm:$0x1] %v5474_v26  ;;  %v8258_v55 = vld [vmem:[%s10217_s7 + $0x80] sm:$0xff]  }
 0x32b   :  { %5484 = vst [vmem:[#allocation6 + $0x2] sm:$0x2] %v5483_v11  ;;  %5490 = vst [vmem:[#allocation6 + $0xa] sm:$0x2] %v5489_v15  ;;  %v5486_v45 = vsel %vm9868_vm0, 0, %v5485_v10  ;;  %v5492_v27 = vsel %vm9868_vm0, 0, %v5491_v42 }
 0x32c   :  { %v4884_v37 = vcombine.low %v4876_v57, %v4883_v18  ;;  %v4900_v9 = vrot.slane %v4886_v25, %v9328_v60  ;;  %5472 = vst [vmem:[#allocation6 + $0x4] sm:$0x1] %v5471_v28  ;;  %5487 = vst [vmem:[#allocation6 + $0x4] sm:$0x2] %v5486_v45  ;;  %v8259_v53 = vld [vmem:[%s10217_s7 + $0x40] sm:$0xff]   ;;  %v8261_v38 = vld [vmem:[%s10217_s7 + $0xc8] sm:$0xff]  }
 0x32d   :  { %5478 = vst [vmem:[#allocation6 + $0xc] sm:$0x1] %v5477_v3  ;;  %5493 = vst [vmem:[#allocation6 + $0xc] sm:$0x2] %v5492_v27  ;;  %v8260_v54 = vld [vmem:[%s10217_s7] sm:$0xff]   ;;  %v8263_v30 = vld [vmem:[%s10217_s7 + $0x48] sm:$0xff]  }
 0x32e   :  { %4904 = vst.msk [vmem:[#allocation5 + $0x20] sm:$0xff] %vm3623_vm10, %v4884_v37  ;;  %v4901_v49 = vcombine.low %v4019_v8, %v4900_v9  ;;  %v8262_v2 = vld [vmem:[%s10217_s7 + $0x88] sm:$0xff]   ;;  %v8267_v6 = vld [vmem:[%s10217_s7 + $0x50] sm:$0xff]   ;;  %v8269_v63 = vld [vmem:[%s10217_s7 + $0xd8] sm:$0xff]   ;;  %vm5678_vm3 = vcmask 1041408  }
 0x32f   :  { %v8264_v0 = vld [vmem:[%s10217_s7 + $0x8] sm:$0xff]   ;;  %v8266_v17 = vld [vmem:[%s10217_s7 + $0x90] sm:$0xff]   ;;  %v8271_v56 = vld [vmem:[%s10217_s7 + $0x58] sm:$0xff]   ;;  %vm5767_vm5 = vsmask.f32 1284 }
 0x330   :  { %4905 = vst.msk [vmem:[#allocation5 + $0x48] sm:$0xff] %vm3623_vm10, %v4901_v49  ;;  %v8268_v16 = vld [vmem:[%s10217_s7 + $0x10] sm:$0xff]   ;;  %v8270_v22 = vld [vmem:[%s10217_s7 + $0x98] sm:$0xff]   ;;  %v8273_v34 = vld [vmem:[%s10217_s7 + $0xe0] sm:$0xff]   ;;  %vm5775_vm13 = vsmask.f32 5396 }
 0x331   :  { %v8272_v46 = vld [vmem:[%s10217_s7 + $0x18] sm:$0xff]   ;;  %v8275_v57 = vld [vmem:[%s10217_s7 + $0x60] sm:$0xff]   ;;  %v8277_v37 = vld [vmem:[%s10217_s7 + $0xe8] sm:$0xff]   ;;  %vm5777_vm14 = vsmask.f32 6424 }
 0x332   :  { %v8274_v18 = vld [vmem:[%s10217_s7 + $0xa0] sm:$0xff]   ;;  %v8279_v9 = vld [vmem:[%s10217_s7 + $0x68] sm:$0xff]   ;;  %vm10009_vm6 = vmand %vm5678_vm3, %vm5679_vm4  ;;  %vm5779_vm0 = vsmask.f32 7452  ;;  %vm8389_vm4 = vmmov 0  }
 0x333   :  { %v8276_v25 = vld [vmem:[%s10217_s7 + $0x20] sm:$0xff]   ;;  %v8278_v49 = vld [vmem:[%s10217_s7 + $0xa8] sm:$0xff]   ;;  %vm5768_vm7 = vmor %vm391_vm1, %vm5767_vm5  ;;  %vm5771_vm1 = vsmask.f32 3340 }
 0x334   :  { %vm5770_vm8 = vmor %vm5768_vm7, %vm5769_vm2 }
 0x335   :  { %v4910_v24 = vld [vmem:[#allocation5 + $0x20] sm:$0xff]  ;;  %vm5772_vm9 = vmor %vm5770_vm8, %vm5771_vm1 }
 0x337   :  { %v4915_v33 = vld [vmem:[#allocation5 + $0x48] sm:$0xff] }
 0x363   :  { %v4076_v51 = vpop.permute.xlu0 %4075 }
 0x364   :  { %4081 = vst.msk [vmem:[#allocation5 + $0x8] sm:$0xff] %vm3865_vm11, %v4076_v51  ;;  %v8280_v51 = vld [vmem:[%s10217_s7 + $0x28] sm:$0xff]  }
 0x36b   :  { %v4907_v7 = vld [vmem:[#allocation5 + $0x8] sm:$0xff] }
 0x36c   :  { %5249 = vmatprep.mubr.bf16.mxu1 %v4907_v7  ;;  %v8281_v7 = vld [vmem:[%s10217_s7 + $0xf0] sm:$0xff]  }
 0x375   :  { %v3860_v40 = vpop.permute.xlu1 %3859 }
 0x376   :  { %3866 = vst.msk [vmem:[#allocation5] sm:$0xff] %vm3865_vm11, %v3860_v40  ;;  %v8283_v40 = vld [vmem:[%s10217_s7 + $0x70] sm:$0xff]  }
 0x37d   :  { %v4906_v20 = vld [vmem:[#allocation5] sm:$0xff] }
 0x37e   :  { %5250 = vmatmul.mubr.bf16.vlgmr.msra.gmra.mrb[28].mxu1 %v4906_v20  ;;  %v8284_v20 = vld [vmem:[%s10217_s7 + $0x30] sm:$0xff]  }
 0x37f   :  { %v4460_v47 = vpop.permute.xlu1 %4459  ;;  %8069 = vmatpush3.bf16.msra.mxu1 %v9746_v12 }
 0x380   :  { %4465 = vst.msk [vmem:[#allocation5 + $0x10] sm:$0xff] %vm3865_vm11, %v4460_v47  ;;  %8070 = vmatprep.subr.bf16.mxu1 %v8252_v44  ;;  %v8285_v47 = vld [vmem:[%s10217_s7 + $0xf8] sm:$0xff]  }
 0x383   :  { %8071 = vmatpush3.bf16.msra.mxu1 %v8252_v44  ;;  %v8282_v44 = vld [vmem:[%s10217_s7 + $0xb0] sm:$0xff]  }
 0x384   :  { %8072 = vmatprep.subr.bf16.mxu1 %v8255_v21 }
 0x387   :  { %v4749_v13 = vpop.permute.xlu0 %4748  ;;  %8073 = vmatpush3.bf16.msra.mxu1 %v8255_v21  ;;  %v4908_v59 = vld [vmem:[#allocation5 + $0x10] sm:$0xff]  ;;  %v8287_v21 = vld [vmem:[%s10217_s7 + $0x78] sm:$0xff]  }
 0x388   :  { %4754 = vst.msk [vmem:[#allocation5 + $0x18] sm:$0xff] %vm3865_vm11, %v4749_v13  ;;  %8074 = vmatprep.subr.bf16.mxu1 %v8256_v62  ;;  %v8288_v13 = vld [vmem:[%s10217_s7 + $0x38] sm:$0xff]  }
 0x38b   :  { %v4078_v36 = vpop.permute.xlu0 %4077  ;;  %8075 = vmatpush3.bf16.msra.mxu1 %v8256_v62  ;;  %v8286_v62 = vld [vmem:[%s10217_s7 + $0xb8] sm:$0xff]  }
 0x38c   :  { %4082 = vst.msk [vmem:[#allocation5 + $0x30] sm:$0xff] %vm3865_vm11, %v4078_v36  ;;  %7951 = vmatprep.subr.bf16.mxu1 %v8259_v53  ;;  %v8293_v36 = vld [vmem:[%s10217_s7 + $0x1c0] sm:$0xff]  }
 0x38e   :  { %v3862_v12 = vpop.permute.xlu1 %3861 }
 0x38f   :  { %v4909_v43 = vld [vmem:[#allocation5 + $0x18] sm:$0xff]  ;;  %3867 = vst.msk [vmem:[#allocation5 + $0x28] sm:$0xff] %vm3865_vm11, %v3862_v12  ;;  %v8299_v12 = vld [vmem:[%s10217_s7 + $0x140] sm:$0xff]  }
 0x390   :  { %5298 = vmatprep.mubr.bf16.mxu0 %v4909_v43 }
 0x391   :  { %5299 = vmatmul.mubr.bf16.vlgmr.msra.gmra.mrb[52].mxu0 %v4908_v59 }
 0x392   :  { %v4462_v50 = vpop.permute.xlu1 %4461  ;;  %7974 = vmatpush3.bf16.msra.mxu0 %v8258_v55 }
 0x393   :  { %4466 = vst.msk [vmem:[#allocation5 + $0x38] sm:$0xff] %vm3865_vm11, %v4462_v50  ;;  %v4912_v5 = vld [vmem:[#allocation5 + $0x30] sm:$0xff]  ;;  %7975 = vmatprep.subr.bf16.mxu0 %v8261_v38 }
 0x394   :  { %5257 = vmatprep.mubr.bf16.mxu1 %v4912_v5 }
 0x396   :  { %v4911_v29 = vld [vmem:[#allocation5 + $0x28] sm:$0xff]  ;;  %7976 = vmatpush3.bf16.msra.mxu0 %v8262_v2 }
 0x397   :  { %5258 = vmatmul.mubr.bf16.gmra.mrb[32].mxu1 %v4911_v29  ;;  %7977 = vmatprep.subr.bf16.mxu0 %v8265_v1 }
 0x398   :  { %8076 = vmatprep.mubr.msk.bf16.mxu1 %vm3623_vm10, %v4910_v24  ;;  %v4751_v32 = vpop.permute.xlu0 %4750 }
 0x399   :  { %4755 = vst.msk [vmem:[#allocation5 + $0x40] sm:$0xff] %vm3865_vm11, %v4751_v32  ;;  %v7521_v32 = vld [vmem:[%s10216_s6] ss:$0 sm:$0xff] }
 0x39a   :  { %v4913_v8 = vld [vmem:[#allocation5 + $0x38] sm:$0xff]  ;;  %7978 = vmatpush3.bf16.msra.mxu0 %v8266_v17 }
 0x39b   :  { %7979 = vmatprep.subr.bf16.mxu0 %v8269_v63 }
 0x39e   :  { %7980 = vmatpush3.bf16.msra.mxu0 %v8270_v22 }
 0x39f   :  { %8077 = vmatmul.mubr.msk.bf16.vlgmr.msra.gmra.mrb[36].mxu1 %vm3623_vm10, %v4915_v33  ;;  %7981 = vmatprep.subr.bf16.mxu0 %v8273_v34  ;;  %vm5773_vm10 = vsmask.f32 4368 }
 0x3a0   :  { %v4914_v23 = vld [vmem:[#allocation5 + $0x40] sm:$0xff]  ;;  %7952 = vmatpush3.bf16.msra.mxu1 %v8260_v54  ;;  %vm5774_vm11 = vmor %vm5772_vm9, %vm5773_vm10 }
 0x3a1   :  { %5306 = vmatprep.mubr.bf16.mxu0 %v4914_v23  ;;  %7953 = vmatprep.subr.bf16.mxu1 %v8263_v30  ;;  %vm5776_vm15 = vmor %vm5774_vm11, %vm5775_vm13 }
 0x3a2   :  { %5307 = vmatmul.mubr.bf16.gmra.mrb[56].mxu0 %v4913_v8 }
 0x3a3   :  { %7982 = vmatpush3.bf16.msra.mxu0 %v8274_v18 }
 0x3a4   :  { %7954 = vmatpush3.bf16.msra.mxu1 %v8264_v0  ;;  %7983 = vmatprep.subr.bf16.mxu0 %v8277_v37 }
 0x3a5   :  { %7955 = vmatprep.subr.bf16.mxu1 %v8267_v6 }
 0x3a7   :  { %7984 = vmatpush3.bf16.msra.mxu0 %v8278_v49 }
 0x3a8   :  { %7956 = vmatpush3.bf16.msra.mxu1 %v8268_v16  ;;  %7985 = vmatprep.subr.bf16.mxu0 %v8281_v7 }
 0x3a9   :  { %7957 = vmatprep.subr.bf16.mxu1 %v8271_v56 }
 0x3ab   :  { %7986 = vmatpush3.bf16.msra.mxu0 %v8282_v44 }
 0x3ac   :  { %7958 = vmatpush3.bf16.msra.mxu1 %v8272_v46  ;;  %7987 = vmatprep.subr.bf16.mxu0 %v8285_v47 }
 0x3ad   :  { %7959 = vmatprep.subr.bf16.mxu1 %v8275_v57 }
 0x3af   :  { %7988 = vmatpush3.bf16.msra.mxu0 %v8286_v62 }
 0x3b0   :  { %7960 = vmatpush3.bf16.msra.mxu1 %v8276_v25  ;;  %8017 = vmatprep.subr.bf16.mxu0 %v8293_v36 }
 0x3b1   :  { %7961 = vmatprep.subr.bf16.mxu1 %v8279_v9 }
 0x3b4   :  { %7962 = vmatpush3.bf16.msra.mxu1 %v8280_v51 }
 0x3b5   :  { %7963 = vmatprep.subr.bf16.mxu1 %v8283_v40 }
 0x3b8   :  { %7964 = vmatpush3.bf16.msra.mxu1 %v8284_v20 }
 0x3b9   :  { %7965 = vmatprep.subr.bf16.mxu1 %v8287_v21 }
 0x3bc   :  { %7966 = vmatpush3.bf16.msra.mxu1 %v8288_v13 }
 0x3bd   :  { %7995 = vmatprep.subr.bf16.mxu1 %v8299_v12 }
 0x451   :  { %v7905_v43 = vpop.f32.mrb[28].mxu1 }
 0x452   :  { %v7906_v59 = vpop.f32.mrb[29].mxu1 }
 0x453   :  { %v7907_v50 = vadd.f32 %v7906_v59, %v7905_v43  ;;  %v7908_v5 = vpop.f32.mrb[30].mxu1 }
 0x454   :  { %v7909_v29 = vpop.f32.mrb[31].mxu1 }
 0x455   :  { %v7910_v24 = vadd.f32 %v7909_v29, %v7908_v5  ;;  %v5252_v8 = vadd.f32 %v7907_v50, %v7521_v32 }
 0x457   :  { %v5255_v52 = vadd.f32 %v7910_v24, %v7521_v32 }
 0x464   :  { %v7933_v33 = vpop.f32.mrb[52].mxu0 }
 0x465   :  { %v7934_v23 = vpop.f32.mrb[53].mxu0 }
 0x466   :  { %v7935_v14 = vadd.f32 %v7934_v23, %v7933_v33  ;;  %v7936_v58 = vpop.f32.mrb[54].mxu0 }
 0x467   :  { %v7937_v61 = vpop.f32.mrb[55].mxu0 }
 0x468   :  { %v7938_v4 = vadd.f32 %v7937_v61, %v7936_v58  ;;  %v5301_v11 = vadd.f32 %v7935_v14, %v5252_v8 }
 0x46a   :  { %v7911_v48 = vpop.f32.mrb[32].mxu1  ;;  %v5304_v19 = vadd.f32 %v7938_v4, %v5255_v52 }
 0x46b   :  { %v7912_v26 = vpop.f32.mrb[33].mxu1 }
 0x46c   :  { %v7913_v15 = vadd.f32 %v7912_v26, %v7911_v48  ;;  %v7914_v31 = vpop.f32.mrb[34].mxu1 }
 0x46d   :  { %v7915_v10 = vpop.f32.mrb[35].mxu1 }
 0x46e   :  { %v7916_v39 = vadd.f32 %v7915_v10, %v7914_v31  ;;  %v5260_v38 = vadd.f32 %v7913_v15, %v7521_v32 }
 0x470   :  { %v5263_v6 = vadd.f32 %v7916_v39, %v7521_v32 }
 0x472   :  { %v8078_v28 = vpop.f32.mrb[36].mxu1 }
 0x473   :  { %v5349_v45 = vpop.f32.mrb[37].mxu1 }
 0x474   :  { %v5350_v3 = vadd.f32 %v5349_v45, %v5301_v11  ;;  %v8079_v42 = vpop.f32.mrb[38].mxu1 }
 0x475   :  { %v5352_v27 = vpop.f32.mrb[39].mxu1  ;;  %v7939_v35 = vpop.f32.mrb[56].mxu0 }
 0x476   :  { %v5364_v55 = vmax.f32 %v5350_v3, 0.0  ;;  %v5353_v53 = vadd.f32 %v5352_v27, %v5304_v19  ;;  %v7940_v54 = vpop.f32.mrb[57].mxu0 }
 0x477   :  { %v7941_v2 = vadd.f32 %v7940_v54, %v7939_v35  ;;  %v7942_v0 = vpop.f32.mrb[58].mxu0 }
 0x478   :  { %v5372_v30 = vcombine.high %v5364_v55, %v5364_v55  ;;  %v5365_v1 = vmax.f32 %v5353_v53, 0.0  ;;  %v7943_v17 = vpop.f32.mrb[59].mxu0 }
 0x479   :  { %v5309_v63 = vadd.f32 %v7941_v2, %v5260_v38  ;;  %v7944_v22 = vadd.f32 %v7943_v17, %v7942_v0 }
 0x47a   :  { %v5380_v16 = vmax.f32 %v5364_v55, %v5372_v30  ;;  %v5373_v56 = vcombine.high %v5365_v1, %v5365_v1 }
 0x47b   :  { %v5358_v34 = vadd.f32 %v8078_v28, %v5309_v63  ;;  %v5312_v18 = vadd.f32 %v7944_v22, %v5263_v6 }
 0x47c   :  { %v5394_v46 = vrot.slane %v5380_v16, %v9328_v60  ;;  %v5381_v57 = vmax.f32 %v5365_v1, %v5373_v56 }
 0x47d   :  { %v5366_v9 = vmax.f32 %v5358_v34, 0.0  ;;  %v5361_v51 = vadd.f32 %v8079_v42, %v5312_v18  ;;  %v5681_v18 = vld [vmem:[#allocation6 + $0x2] sm:$0x3] }
 0x47e   :  { %v5395_v25 = vcombine.high %v5394_v46, %v5394_v46  ;;  %v7560_v37 = vrot.slane %v5394_v46, 9  ;;  %v5402_v49 = vrot.slane %v5381_v57, %v9328_v60 }
 0x47f   :  { %v5374_v44 = vcombine.high %v5366_v9, %v5366_v9  ;;  %v5367_v21 = vmax.f32 %v5361_v51, 0.0 }
 0x480   :  { %v7561_v7 = vrot.slane %v5395_v25, 9  ;;  %v5452_v40 = vmax.f32 %v5394_v46, %v7560_v37  ;;  %v5403_v20 = vcombine.high %v5402_v49, %v5402_v49  ;;  %v7562_v47 = vrot.slane %v5402_v49, 9 }
 0x481   :  { %v5382_v36 = vmax.f32 %v5366_v9, %v5374_v44  ;;  %v5375_v59 = vcombine.high %v5367_v21, %v5367_v21 }
 0x482   :  { %v5453_v62 = vmax.f32 %v5395_v25, %v7561_v7  ;;  %v5494_v13 = vpack.c.bf16 %v5452_v40, %v5452_v40  ;;  %v7563_v12 = vrot.slane %v5403_v20, 9  ;;  %v5454_v43 = vmax.f32 %v5402_v49, %v7562_v47  ;;  %v5684_v47 = vld [vmem:[#allocation6 + $0x4] sm:$0x3] }
 0x483   :  { %v5410_v29 = vrot.slane %v5382_v36, %v9328_v60  ;;  %v5383_v33 = vmax.f32 %v5367_v21, %v5375_v59  ;;  %v7569_v59 = vld.sshfl [vmem:[#allocation6] sm:$0x11 pattern:$0x75316420] }
 0x484   :  { %v5495_v50 = vpack.c.bf16 %v5453_v62, %v5453_v62  ;;  %v5516_v5 = vrot.slane %v5494_v13, %v9328_v60  ;;  %v5455_v24 = vmax.f32 %v5403_v20, %v7563_v12  ;;  %v5496_v32 = vpack.c.bf16 %v5454_v43, %v5454_v43 }
 0x485   :  { %v5411_v14 = vcombine.high %v5410_v29, %v5410_v29  ;;  %v7564_v58 = vrot.slane %v5410_v29, 9  ;;  %v5418_v4 = vrot.slane %v5383_v33, %v9328_v60 }
 0x486   :  { %v5523_v23 = vrot.slane %v5495_v50, %v9328_v60  ;;  %v5572_v8 = vrot.slane %v5516_v5, %v9328_v60  ;;  %v5497_v61 = vpack.c.bf16 %v5455_v24, %v5455_v24  ;;  %v5530_v52 = vrot.slane %v5496_v32, %v9328_v60  ;;  %v7571_v32 = vld.sshfl [vmem:[#allocation6 + $0x8] sm:$0x11 pattern:$0x75316420] }
 0x487   :  { %v7565_v19 = vrot.slane %v5411_v14, 9  ;;  %v5456_v26 = vmax.f32 %v5410_v29, %v7564_v58  ;;  %v5419_v10 = vcombine.high %v5418_v4, %v5418_v4  ;;  %v7566_v39 = vrot.slane %v5418_v4, 9  ;;  %v5687_v58 = vld [vmem:[#allocation6 + $0xa] sm:$0x3] }
 0x488   :  { %v5579_v11 = vrot.slane %v5523_v23, %v9328_v60  ;;  %v5622_v48 = vunpack.c.l.b16 %v5572_v8  ;;  %v5537_v15 = vrot.slane %v5497_v61, %v9328_v60  ;;  %v5586_v31 = vrot.slane %v5530_v52, %v9328_v60  ;;  %v7606_v52 = vld.sshfl [vmem:[#allocation6 + $0xe] sm:$0x11 pattern:$0x75316420] }
 0x489   :  { %v5457_v45 = vmax.f32 %v5411_v14, %v7565_v19  ;;  %v5498_v3 = vpack.c.bf16 %v5456_v26, %v5456_v26  ;;  %v7567_v35 = vrot.slane %v5419_v10, 9  ;;  %v5458_v55 = vmax.f32 %v5418_v4, %v7566_v39  ;;  %v7604_v14 = vld.sshfl [vmem:[#allocation6 + $0x6] sm:$0x11 pattern:$0x75316420] }
 0x48a   :  { %v5623_v28 = vunpack.c.l.b16 %v5579_v11  ;;  %v5593_v42 = vrot.slane %v5537_v15, %v9328_v60  ;;  %v5624_v27 = vunpack.c.l.b16 %v5586_v31  ;;  %v5630_v53 = vrot.slane %v5622_v48, 7  ;;  %v5690_v31 = vld [vmem:[#allocation6 + $0xc] sm:$0x3] }
 0x48b   :  { %v5499_v38 = vpack.c.bf16 %v5457_v45, %v5457_v45  ;;  %v5544_v30 = vrot.slane %v5498_v3, %v9328_v60  ;;  %v5459_v0 = vmax.f32 %v5419_v10, %v7567_v35  ;;  %v5500_v1 = vpack.c.bf16 %v5458_v55, %v5458_v55  ;;  %v7578_v10 = vld.sshfl [vmem:[#allocation6] sm:$0x10 pattern:$0x75316420] }
 0x48c   :  { %v5631_v54 = vrot.slane %v5623_v28, 6  ;;  %v5625_v2 = vunpack.c.l.b16 %v5593_v42  ;;  %v5633_v63 = vrot.slane %v5624_v27, 7  ;;  %v8387_v29 = vmov 1935823168  }
 0x48d   :  { %v5551_v17 = vrot.slane %v5499_v38, %v9328_v60  ;;  %v5600_v16 = vrot.slane %v5544_v30, %v9328_v60  ;;  %v5501_v34 = vpack.c.bf16 %v5459_v0, %v5459_v0  ;;  %v5558_v57 = vrot.slane %v5500_v1, %v9328_v60  ;;  %v7580_v39 = vld.sshfl [vmem:[#allocation6 + $0x8] sm:$0x10 pattern:$0x75316420] }
 0x48e   :  { %v5632_v6 = vsel %vm3471_vm12, %v5631_v54, %v5630_v53  ;;  %v5634_v46 = vrot.slane %v5625_v2, 6  ;;  %v5704_v24 = vunpack.c.l.s4 %v8387_v29  ;;  %v5742_v61 = vcombine.high %v7569_v59, %v7569_v59  ;;  %v7613_v30 = vld.sshfl [vmem:[#allocation6 + $0x6] sm:$0x10 pattern:$0x75316420] }
 0x48f   :  { %v5642_v56 = vpack.c.b16 %v5632_v6, %v5632_v6  ;;  %v5607_v25 = vrot.slane %v5551_v17, %v9328_v60  ;;  %v5626_v37 = vunpack.c.l.b16 %v5600_v16  ;;  %v5565_v51 = vrot.slane %v5501_v34, %v9328_v60  ;;  %v8295_v2 = vld [vmem:[#allocation6] ss:$8 sps:$4 sm:$0x11]  }
 0x490   :  { %v5635_v49 = vsel %vm3471_vm12, %v5634_v46, %v5633_v63  ;;  %v5614_v7 = vrot.slane %v5558_v57, %v9328_v60  ;;  %v5758_v48 = vcombine.high %v7571_v32, %v7571_v32  ;;  %v5705_v26 = vunpack.c.0.s8 %v5704_v24  ;;  %v7615_v63 = vld.sshfl [vmem:[#allocation6 + $0xe] sm:$0x10 pattern:$0x75316420] }
 0x491   :  { %v5652_v9 = vrot.slane %v5642_v56, %v9328_v60  ;;  %v5627_v40 = vunpack.c.l.b16 %v5607_v25  ;;  %v5643_v44 = vpack.c.b16 %v5635_v49, %v5635_v49  ;;  %v5621_v21 = vrot.slane %v5565_v51, %v9328_v60  ;;  %v8306_v46 = vld [vmem:[#allocation6 + $0x6] ss:$8 sps:$4 sm:$0x11]  }
 0x492   :  { %v5628_v62 = vunpack.c.l.b16 %v5614_v7  ;;  %v5636_v13 = vrot.slane %v5626_v37, 7  ;;  %v6169_v28 = vcombine.high %v7604_v14, %v7604_v14  ;;  %v6185_v45 = vcombine.high %v7606_v52, %v7606_v52 }
 0x493   :  { %v5682_v20 = vsel %vm10009_vm6, %v5652_v9, %v5681_v18  ;;  %v5637_v36 = vrot.slane %v5627_v40, 6  ;;  %v5659_v12 = vrot.slane %v5643_v44, %v9328_v60  ;;  %v5629_v43 = vunpack.c.l.b16 %v5621_v21 }
 0x494   :  { %5683 = vst [vmem:[#allocation6 + $0x2] sm:$0x3] %v5682_v20  ;;  %v5639_v23 = vrot.slane %v5628_v62, 7  ;;  %v5782_v42 = vshrl.u32 %v7569_v59, 16  ;;  %v5787_v27 = vshll.u32 %v5742_v61, 16  ;;  %v5800_v35 = vshrl.u32 %v7571_v32, 16 }
 0x495   :  { %v5638_v50 = vsel %vm3471_vm12, %v5637_v36, %v5636_v13  ;;  %v5685_v5 = vsel %vm10009_vm6, %v5659_v12, %v5684_v47  ;;  %v5640_v8 = vrot.slane %v5629_v43, 6  ;;  %v5805_v55 = vshll.u32 %v5758_v48, 16 }
 0x496   :  { %v5644_v33 = vpack.c.b16 %v5638_v50, %v5638_v50  ;;  %5686 = vst [vmem:[#allocation6 + $0x4] sm:$0x3] %v5685_v5  ;;  %v6196_v53 = vshrl.u32 %v7604_v14, 16  ;;  %v6214_v54 = vshrl.u32 %v7606_v52, 16  ;;  %v6201_v1 = vshll.u32 %v6169_v28, 16 }
 0x497   :  { %v5641_v11 = vsel %vm3471_vm12, %v5640_v8, %v5639_v23  ;;  %vm5778_vm12 = vmor %vm5776_vm15, %vm5777_vm14  ;;  %v6219_v6 = vshll.u32 %v6185_v45, 16  ;;  %v10036_v17 = vsub.s32 %v5705_v26, %v9325_v41  ;;  %v7582_v16 = vcombine.high %v7578_v10, %v7580_v39 }
 0x498   :  { %v5666_v4 = vrot.slane %v5644_v33, %v9328_v60  ;;  %v5645_v19 = vpack.c.b16 %v5641_v11, %v5641_v11  ;;  %vm10039_vm3 = vmor %vm5778_vm12, %vm5779_vm0  ;;  %v7617_v41 = vcombine.high %v7613_v30, %v7615_v63 }
 0x499   :  { %v5789_v25 = vsel %vm10039_vm3, %v5782_v42, %v5787_v27  ;;  %v5807_v37 = vsel %vm10039_vm3, %v5800_v35, %v5805_v55  ;;  %v5891_v49 = vrot.slane %v7582_v16, %v10036_v17  ;;  %v6203_v7 = vsel %vm10039_vm3, %v6196_v53, %v6201_v1 }
 0x49a   :  { %v5688_v15 = vsel %vm10009_vm6, %v5666_v4, %v5687_v58  ;;  %v5673_v3 = vrot.slane %v5645_v19, %v9328_v60  ;;  %v6221_v40 = vsel %vm10039_vm3, %v6214_v54, %v6219_v6  ;;  %v5709_v20 = vrot.slane %v8295_v2, %v10036_v17 }
 0x49b   :  { %5689 = vst [vmem:[#allocation6 + $0xa] sm:$0x3] %v5688_v15  ;;  %v7570_v0 = vld.sshfl [vmem:[#allocation6 + $0x2] sm:$0x11 pattern:$0x75316420]  ;;  %v5817_v36 = vcombine.low %v5789_v25, %v5807_v37  ;;  %v6135_v50 = vrot.slane %v8306_v46, %v10036_v17  ;;  %v6223_v5 = vcombine.low %v6203_v7, %v6221_v40  ;;  %v6303_v29 = vrot.slane %v7617_v41, %v10036_v17 }
 0x49c   :  { %v5691_v38 = vsel %vm10009_vm6, %v5673_v3, %v5690_v31  ;;  %v7579_v56 = vld.sshfl [vmem:[#allocation6 + $0x2] sm:$0x10 pattern:$0x75316420]  ;;  %v5750_v34 = vcombine.high %v7570_v0, %v7570_v0  ;;  %v5791_v58 = vshrl.u32 %v7570_v0, 16  ;;  %v8311_v25 = vld [vmem:[%s10217_s7 + $0x1d0] sm:$0xff]  }
 0x49d   :  { %5692 = vst [vmem:[#allocation6 + $0xc] sm:$0x3] %v5691_v38  ;;  %v7587_v57 = vld.sshfl [vmem:[#allocation6 + $0x4] sm:$0x11 pattern:$0x75316420]  ;;  %v5825_v31 = vrot.slane %v5817_v36, %v10036_v17  ;;  %v6237_v54 = vrot.slane %v6223_v5, %v10036_v17 }
 0x49e   :  { %v5966_v47 = vcombine.high %v7587_v57, %v7587_v57  ;;  %v5796_v13 = vshll.u32 %v5750_v34, 16  ;;  %v7596_v59 = vld.sshfl [vmem:[#allocation6 + $0x4] sm:$0x10 pattern:$0x75316420]  ;;  %v5993_v10 = vshrl.u32 %v7587_v57, 16 }
 0x49f   :  { %v8294_v57 = vld [vmem:[%s10217_s7 + $0x180] sm:$0xff]   ;;  %v8316_v36 = vld [vmem:[%s10217_s7 + $0x198] sm:$0xff]   ;;  %v8323_v5 = vld [vmem:[%s10217_s7 + $0x1e8] sm:$0xff]  }
 0x4a0   :  { %v5998_v52 = vshll.u32 %v5966_v47, 16  ;;  %v5798_v45 = vsel %vm10039_vm3, %v5791_v58, %v5796_v13  ;;  %v8312_v47 = vld [vmem:[%s10217_s7 + $0x190] sm:$0xff]   ;;  %v8331_v58 = vld [vmem:[%s10217_s7 + $0x1f8] sm:$0xff]  }
 0x4a1   :  { %v8313_v13 = vld [vmem:[%s10217_s7 + $0x150] sm:$0xff]  }
 0x4a2   :  { %v7581_v18 = vld.sshfl [vmem:[#allocation6 + $0xa] sm:$0x10 pattern:$0x75316420]  ;;  %v6000_v55 = vsel %vm10039_vm3, %v5993_v10, %v5998_v52  ;;  %v8329_v52 = vld [vmem:[%s10217_s7 + $0x170] sm:$0xff]   ;;  %v8388_v10 = vmov 0.0  }
 0x4a3   :  { %v7583_v9 = vcombine.high %v7579_v56, %v7581_v18  ;;  %v8289_v51 = vld [vmem:[#allocation6 + $0x2] ss:$8 sps:$4 sm:$0x11]  }
 0x4a4   :  { %v8296_v44 = vld [vmem:[#allocation6 + $0x2] ss:$8 sps:$4 sm:$0x11]   ;;  %v8290_v62 = vld [vmem:[#allocation6 + $0x4] ss:$8 sps:$4 sm:$0x11]   ;;  %v5925_v32 = vrot.slane %v8289_v51, %v10036_v17 }
 0x4a5   :  { %v5898_v21 = vrot.slane %v7583_v9, %v10036_v17  ;;  %v5716_v12 = vrot.slane %v8296_v44, %v10036_v17  ;;  %v7572_v43 = vld.sshfl [vmem:[#allocation6 + $0xa] sm:$0x11 pattern:$0x75316420]  ;;  %v5932_v33 = vrot.slane %v8290_v62, %v10036_v17 }
 0x4a6   :  { %v5766_v23 = vcombine.high %v7572_v43, %v7572_v43  ;;  %v7589_v8 = vld.sshfl [vmem:[#allocation6 + $0xc] sm:$0x11 pattern:$0x75316420]  ;;  %v5809_v48 = vshrl.u32 %v7572_v43, 16  ;;  %v8314_v43 = vld [vmem:[%s10217_s7 + $0x110] sm:$0xff]  }
 0x4a7   :  { %v5899_v24 = vcombine.low %v5891_v49, %v5898_v21  ;;  %v5717_v14 = vcombine.low %v5709_v20, %v5716_v12  ;;  %v5982_v61 = vcombine.high %v7589_v8, %v7589_v8  ;;  %v7598_v4 = vld.sshfl [vmem:[#allocation6 + $0xc] sm:$0x10 pattern:$0x75316420]  ;;  %v5933_v11 = vcombine.low %v5925_v32, %v5932_v33  ;;  %v8300_v49 = vld [vmem:[%s10217_s7 + $0x100] sm:$0xff]   ;;  %v8327_v33 = vld [vmem:[%s10217_s7 + $0x1f0] sm:$0xff]  }
 0x4a8   :  { %v5814_v19 = vshll.u32 %v5766_v23, 16  ;;  %v7600_v26 = vcombine.high %v7596_v59, %v7598_v4  ;;  %v8305_v15 = vld [vmem:[#allocation6 + $0x4] ss:$8 sps:$4 sm:$0x11]   ;;  %v6011_v39 = vshrl.u32 %v7589_v8, 16  ;;  %v8317_v59 = vld [vmem:[%s10217_s7 + $0x158] sm:$0xff]  }
 0x4a9   :  { %7584 = vst.sshfl [vmem:[#allocation7 + $0x8] sm:$0x33 pattern:$0x75316420] %v5899_v24  ;;  %v6016_v28 = vshll.u32 %v5982_v61, 16  ;;  %v6128_v27 = vrot.slane %v8305_v15, %v10036_v17  ;;  %v8304_v18 = vld [vmem:[%s10217_s7 + $0x188] sm:$0xff]  }
 0x4aa   :  { %7568 = vst.sshfl [vmem:[#allocation7] sm:$0x33 pattern:$0x75316420] %v5717_v14  ;;  %v5816_v3 = vsel %vm10039_vm3, %v5809_v48, %v5814_v19  ;;  %v6100_v42 = vrot.slane %v7600_v26, %v10036_v17  ;;  %v8309_v20 = vld [vmem:[%s10217_s7 + $0x148] sm:$0xff]   ;;  %v8319_v12 = vld [vmem:[%s10217_s7 + $0x1e0] sm:$0xff]  }
 0x4ab   :  { %7585 = vst.sshfl [vmem:[#allocation7 + $0xc] sm:$0x33 pattern:$0x75316420] %v5933_v11  ;;  %v5818_v35 = vcombine.low %v5798_v45, %v5816_v3  ;;  %v6018_v53 = vsel %vm10039_vm3, %v6011_v39, %v6016_v28  ;;  %v6136_v2 = vcombine.low %v6128_v27, %v6135_v50  ;;  %v8310_v62 = vld [vmem:[%s10217_s7 + $0x108] sm:$0xff]   ;;  %v8320_v50 = vld [vmem:[%s10217_s7 + $0x1a0] sm:$0xff]  }
 0x4ac   :  { %v6020_v38 = vcombine.low %v6000_v55, %v6018_v53  ;;  %v6101_v30 = vcombine.low %v5898_v21, %v6100_v42  ;;  %v6304_v0 = vcombine.low %v6100_v42, %v6303_v29  ;;  %v8315_v21 = vld [vmem:[%s10217_s7 + $0x1d8] sm:$0xff]   ;;  %v8321_v24 = vld [vmem:[%s10217_s7 + $0x160] sm:$0xff]   ;;  %v8324_v32 = vld [vmem:[%s10217_s7 + $0x1a8] sm:$0xff]  }
 0x4ad   :  { %v5832_v1 = vrot.slane %v5818_v35, %v10036_v17  ;;  %7602 = vst.sshfl [vmem:[#allocation7 + $0x18] sm:$0x33 pattern:$0x75316420] %v6136_v2  ;;  %v8318_v29 = vld [vmem:[%s10217_s7 + $0x118] sm:$0xff]   ;;  %v8322_v23 = vld [vmem:[%s10217_s7 + $0x120] sm:$0xff]  }
 0x4ae   :  { %v6034_v6 = vrot.slane %v6020_v38, %v10036_v17  ;;  %7601 = vst.sshfl [vmem:[#allocation7 + $0x14] sm:$0x33 pattern:$0x75316420] %v6101_v30  ;;  %v8301_v17 = vld [vmem:[%s10217_s7 + $0x1c8] sm:$0xff]   ;;  %v8328_v14 = vld [vmem:[%s10217_s7 + $0x1b0] sm:$0xff]  }
 0x4af   :  { %7618 = vst.sshfl [vmem:[#allocation7 + $0x20] sm:$0x33 pattern:$0x75316420] %v6304_v0  ;;  %v5833_v16 = vcombine.low %v5825_v31, %v5832_v1  ;;  %v8325_v8 = vld [vmem:[%s10217_s7 + $0x168] sm:$0xff]   ;;  %v8332_v4 = vld [vmem:[%s10217_s7 + $0x1b8] sm:$0xff]  }
 0x4b0   :  { %v6035_v63 = vcombine.low %v5832_v1, %v6034_v6  ;;  %v6238_v56 = vcombine.low %v6034_v6, %v6237_v54  ;;  %v8326_v61 = vld [vmem:[%s10217_s7 + $0x128] sm:$0xff]   ;;  %v8330_v11 = vld [vmem:[%s10217_s7 + $0x130] sm:$0xff]   ;;  %v8333_v48 = vld [vmem:[%s10217_s7 + $0x178] sm:$0xff]  }
 0x4b1   :  { %7577 = vst.sshfl [vmem:[#allocation7 + $0x4] sm:$0x33 pattern:$0x75316420] %v5833_v16  ;;  %v8334_v26 = vld [vmem:[%s10217_s7 + $0x138] sm:$0xff]   ;;  %v8335_v15 = vld [vmem:[%s10217_s7 + $0x200] sm:$0xff]  }
 0x4b2   :  { %v6315_v46 = vld [vmem:[#allocation7 + $0x8] sm:$0xff]  ;;  %7594 = vst.sshfl [vmem:[#allocation7 + $0x10] sm:$0x33 pattern:$0x75316420] %v6035_v63  ;;  %v8336_v39 = vld [vmem:[%s10217_s7 + $0x208] sm:$0xff]  }
 0x4b3   :  { %v7622_v34 = vcombine.low %v6315_v46, %v6315_v46  ;;  %v7623_v22 = vcombine.high %v6315_v46, %v6315_v46  ;;  %7611 = vst.sshfl [vmem:[#allocation7 + $0x1c] sm:$0x33 pattern:$0x75316420] %v6238_v56  ;;  %v8337_v28 = vld [vmem:[%s10217_s7 + $0x210] sm:$0xff]   ;;  %v8338_v45 = vld [vmem:[%s10217_s7 + $0x218] sm:$0xff]  }
 0x4b4   :  { %v8339_v3 = vld [vmem:[%s10217_s7 + $0x220] sm:$0xff]   ;;  %v8340_v42 = vld [vmem:[%s10217_s7 + $0x228] sm:$0xff]   ;;  %v8341_v27 = vld [vmem:[%s10217_s7 + $0x230] sm:$0xff]  }
 0x4b5   :  { %7006 = vmatprep.mubr.bf16.mxu0 %v7623_v22  ;;  %v8342_v35 = vld [vmem:[%s10217_s7 + $0x238] sm:$0xff]   ;;  %v7619_v1 = vld [vmem:[%s10218_s8] ss:$0 sm:$0xff]  ;;  %s8390_s7 = smov [#allocation8]  }
 0x4b6   :  { %7007 = vmatmul.mubr.bf16.vlgmr.msra.gmra.mrb[60].mxu0 %v7622_v34  ;;  %v8343_v55 = vld [vmem:[#allocation7 + $0x20] ss:$0 sps:$4 sm:$0xff]   ;;  %s7178_s8 = sshll.u32 %s8390_s7, 4  ;;  %s7179_s8 = int_to_ptr.vmem [resolvable:$true] %s7178_s8 }
 0x4b7   :  { %8018 = vmatpush3.bf16.msra.mxu0 %v8294_v57  ;;  %s8358_s13 = scalar_lea.vmem %s7179_s8, 32  ;;  %p8363_p1 = scmp.lt.s32.totalorder %s7179_s8, %s7179_s8 }
 0x4b8   :  { %8019 = vmatprep.subr.bf16.mxu0 %v8301_v17  ;;  %v6314_v37 = vld [vmem:[#allocation7] sm:$0xff]  ;;  %p8359_p0 = scmp.ne.s32.totalorder %s7179_s8, %s8358_s13  ;;  %p8364_p2 = scmp.lt.s32.totalorder %s8358_s13, %s8358_s13 }
 0x4b9   :  { %v7620_v41 = vcombine.low %v6314_v37, %v6314_v37  ;;  %v7621_v9 = vcombine.high %v6314_v37, %v6314_v37  ;;  %v10088_v51 = vld [vmem:[#allocation7 + $0x10] sm:$0xff] }
 0x4ba   :  { %v6317_v7 = vld [vmem:[#allocation7 + $0x18] sm:$0xff]  ;;  %v7625_v40 = vcombine.high %v10088_v51, %v10088_v51  ;;  %v7624_v31 = vcombine.low %v10088_v51, %v10088_v51  ;;  %p8365_p3 = por %p8364_p2, %p8363_p1 }
 0x4bb   :  { %8020 = vmatpush3.bf16.msra.mxu0 %v8304_v18  ;;  %v7627_v44 = vcombine.high %v6317_v7, %v6317_v7  ;;  %6966 = vmatprep.mubr.bf16.mxu1 %v7621_v9  ;;  %v7626_v19 = vcombine.low %v6317_v7, %v6317_v7 }
 0x4bc   :  { %8021 = vmatprep.subr.bf16.mxu0 %v8311_v25  ;;  %6967 = vmatmul.mubr.bf16.vlgmr.msra.gmra.mrb[40].mxu1 %v7620_v41  ;;  %p8366_p4 = pnand %p8365_p3, %p8359_p0 }
 0x4bd   :  { %7086 = vmatprep.mubr.bf16.mxu0 %v7627_v44  ;;  %7996 = vmatpush3.bf16.msra.mxu1 %v8300_v49 }
 0x4be   :  { %7046 = vmatprep.mubr.bf16.mxu1 %v7625_v40  ;;  %7997 = vmatprep.subr.bf16.mxu1 %v8309_v20 }
 0x4bf   :  { %8022 = vmatpush3.bf16.msra.mxu0 %v8312_v47 }
 0x4c0   :  { %8023 = vmatprep.subr.bf16.mxu0 %v8315_v21 }
 0x4c1   :  { %7998 = vmatpush3.bf16.msra.mxu1 %v8310_v62 }
 0x4c2   :  { %7999 = vmatprep.subr.bf16.mxu1 %v8313_v13 }
 0x4c3   :  { %8024 = vmatpush3.bf16.msra.mxu0 %v8316_v36 }
 0x4c4   :  { %8025 = vmatprep.subr.bf16.mxu0 %v8319_v12 }
 0x4c5   :  { %8000 = vmatpush3.bf16.msra.mxu1 %v8314_v43 }
 0x4c6   :  { %8001 = vmatprep.subr.bf16.mxu1 %v8317_v59 }
 0x4c7   :  { %8026 = vmatpush3.bf16.msra.mxu0 %v8320_v50 }
 0x4c8   :  { %8027 = vmatprep.subr.bf16.mxu0 %v8323_v5 }
 0x4c9   :  { %8002 = vmatpush3.bf16.msra.mxu1 %v8318_v29 }
 0x4ca   :  { %8003 = vmatprep.subr.bf16.mxu1 %v8321_v24 }
 0x4cb   :  { %8028 = vmatpush3.bf16.msra.mxu0 %v8324_v32 }
 0x4cc   :  { %8029 = vmatprep.subr.bf16.mxu0 %v8327_v33 }
 0x4cd   :  { %8004 = vmatpush3.bf16.msra.mxu1 %v8322_v23 }
 0x4ce   :  { %8005 = vmatprep.subr.bf16.mxu1 %v8325_v8 }
 0x4cf   :  { %8030 = vmatpush3.bf16.msra.mxu0 %v8328_v14 }
 0x4d0   :  { %8031 = vmatprep.subr.bf16.mxu0 %v8331_v58 }
 0x4d1   :  { %8006 = vmatpush3.bf16.msra.mxu1 %v8326_v61 }
 0x4d2   :  { %8007 = vmatprep.subr.bf16.mxu1 %v8329_v52 }
 0x4d3   :  { %8032 = vmatpush3.bf16.msra.mxu0 %v8332_v4 }
 0x4d5   :  { %8008 = vmatpush3.bf16.msra.mxu1 %v8330_v11 }
 0x4d6   :  { %7087 = vmatmul.mubr.bf16.vlgmr.msra.gmra.mrb[64].mxu0 %v7626_v19  ;;  %8009 = vmatprep.subr.bf16.mxu1 %v8333_v48 }
 0x4d9   :  { %8010 = vmatpush3.bf16.msra.mxu1 %v8334_v26 }
 0x4da   :  { %8080 = vmatprep.subr.bf16.mxu1 %v8388_v10 }
 0x4dc   :  { %7047 = vmatmul.mubr.bf16.vlgmr.msra.gmra.mrb[44].mxu1 %v7624_v31 }
 0x4dd   :  { %8081 = vmatpush3.bf16.msra.mxu1 %v8335_v15  ;;  %8096 = vmatprep.mubr.msk.bf16.mxu1 %vm8389_vm4, %v8388_v10 }
 0x4de   :  { %8082 = vmatprep.subr.bf16.mxu1 %v8388_v10 }
 0x4e1   :  { %8083 = vmatpush3.bf16.msra.mxu1 %v8336_v39 }
 0x4e2   :  { %8084 = vmatprep.subr.bf16.mxu1 %v8388_v10 }
 0x4e5   :  { %8085 = vmatpush3.bf16.msra.mxu1 %v8337_v28 }
 0x4e6   :  { %8086 = vmatprep.subr.bf16.mxu1 %v8388_v10 }
 0x4e9   :  { %8087 = vmatpush3.bf16.msra.mxu1 %v8338_v45 }
 0x4ea   :  { %8088 = vmatprep.subr.bf16.mxu1 %v8388_v10 }
 0x4ed   :  { %8089 = vmatpush3.bf16.msra.mxu1 %v8339_v3 }
 0x4ee   :  { %8090 = vmatprep.subr.bf16.mxu1 %v8388_v10 }
 0x4f1   :  { %8091 = vmatpush3.bf16.msra.mxu1 %v8340_v42 }
 0x4f2   :  { %8092 = vmatprep.subr.bf16.mxu1 %v8388_v10 }
 0x4f5   :  { %8093 = vmatpush3.bf16.msra.mxu1 %v8341_v27 }
 0x4f6   :  { %8094 = vmatprep.subr.bf16.mxu1 %v8388_v10 }
 0x4f9   :  { %8095 = vmatpush3.bf16.msra.mxu1 %v8342_v35 }
 0x4fc   :  { %8097 = vmatmul.mubr.bf16.vlgmr.msra.gmra.mrb[48].mxu1 %v8343_v55 }
 0x589   :  { %v7989_v53 = vpop.f32.mrb[60].mxu0 }
 0x58a   :  { %v7990_v54 = vpop.f32.mrb[61].mxu0 }
 0x58b   :  { %v7991_v38 = vadd.f32 %v7990_v54, %v7989_v53  ;;  %v7992_v30 = vpop.f32.mrb[62].mxu0 }
 0x58c   :  { %v7993_v2 = vpop.f32.mrb[63].mxu0 }
 0x58f   :  { %v7967_v0 = vpop.f32.mrb[40].mxu1 }
 0x590   :  { %v7968_v6 = vpop.f32.mrb[41].mxu1 }
 0x591   :  { %v7969_v16 = vadd.f32 %v7968_v6, %v7967_v0  ;;  %v7970_v63 = vpop.f32.mrb[42].mxu1 }
 0x592   :  { %v7971_v56 = vpop.f32.mrb[43].mxu1 }
 0x593   :  { %v6969_v46 = vadd.f32 %v7969_v16, %v7619_v1 }
 0x595   :  { %v7009_v34 = vadd.f32 %v7991_v38, %v6969_v46 }
 0x5a9   :  { %v8033_v22 = vpop.f32.mrb[64].mxu0 }
 0x5aa   :  { %v8034_v57 = vpop.f32.mrb[65].mxu0 }
 0x5ab   :  { %v8035_v17 = vadd.f32 %v8034_v57, %v8033_v22  ;;  %v8036_v18 = vpop.f32.mrb[66].mxu0 }
 0x5ac   :  { %v8037_v25 = vpop.f32.mrb[67].mxu0 }
 0x5af   :  { %v8011_v37 = vpop.f32.mrb[44].mxu1 }
 0x5b0   :  { %v8012_v41 = vpop.f32.mrb[45].mxu1 }
 0x5b1   :  { %v8013_v9 = vadd.f32 %v8012_v41, %v8011_v37  ;;  %v8014_v49 = vpop.f32.mrb[46].mxu1 }
 0x5b2   :  { %v8015_v51 = vpop.f32.mrb[47].mxu1 }
 0x5b3   :  { %v7049_v7 = vadd.f32 %v8013_v9, %v7009_v34 }
 0x5b5   :  { %v7089_v40 = vadd.f32 %v8035_v17, %v7049_v7 }
 0x5cf   :  { %v7128_v44 = vpop.f32.mrb[48].mxu1 }
 0x5d0   :  { %v7129_v20 = vadd.f32 %v7128_v44, %v7089_v40  ;;  %v8098_v47 = vpop.f32.mrb[49].mxu1 }
 0x5d1   :  { %v7131_v21 = vpop.f32.mrb[50].mxu1 }
 0x5d2   :  { %v7134_v62 = vmax.f32 %v7129_v20, 0.0  ;;  %v8099_v13 = vpop.f32.mrb[51].mxu1 }
 0x5d4   :  { %v7136_v36 = vcombine.high %v7134_v62, %v7134_v62  ;;  %v7143_v12 = vrot.slane %v7134_v62, %v9328_v60 }
 0x5d6   :  { %v7150_v43 = vrot.slane %v7136_v36, %v9328_v60  ;;  %v7151_v59 = vcombine.high %v7143_v12, %v7143_v12 }
 0x5d8   :  { %v7152_v50 = vcombine.high %v7150_v43, %v7150_v43  ;;  %v7157_v5 = vadd.f32 %v7151_v59, %v7143_v12 }
 0x5da   :  { %v7158_v29 = vadd.f32 %v7152_v50, %v7150_v43  ;;  %v7701_v24 = vrot.slane %v7157_v5, 9 }
 0x5dc   :  { %v7702_v32 = vrot.slane %v7158_v29, 9  ;;  %v7167_v33 = vadd.f32 %v7701_v24, %v7157_v5 }
 0x5de   :  { %v7168_v23 = vadd.f32 %v7702_v32, %v7158_v29  ;;  %v7169_v8 = vmul.f32 0.25, %v7167_v33 }
 0x5e0   :  { %7171 = vst [vmem:[#allocation8] sm:$0x1] %v7169_v8  ;;  %v7170_v14 = vmul.f32 0.25, %v7168_v23 }
 0x5e2   :  { %7172 = vst [vmem:[#allocation8 + $0x1] sm:$0x1] %v7170_v14 }
 0x5e3   :  { %8369 = shalt.err (!%p8366_p4)
}
 0x5e4   :  { %s8370_s17 = scalar_lea.hbm %s10219_s9, 32 }
 0x5e5   :  { %p8371_p5 = scmp.ne.s32.totalorder %s10219_s9, %s8370_s17  ;;  %p8374_p6 = scmp.lt.u32.totalorder %s8370_s17, %s10219_s9 }
 0x5e7   :  { %p8376_p7 = pnand %p8374_p6, %p8371_p5 }
 0x5e9   :  { %8379 = shalt.err (!%p8376_p7)
}
 0x5ea   :  { %s8391_s21 = smov 16   ;;  %s8392_s22 = smov 1  }
 0x5eb   :  { %7184 = dma.vmem_to_hbm [thread:$0]  %s7179_s8, 32, %s10219_s9, [#allocation9], %s8391_s21, %s8391_s21, %s8392_s22  }
 0x5ec   :  { %8380 = dma.done.wait [#allocation9], 32  }
 0x5ed   :  { %8381 = vsyncadd [#allocation9], 4294967264 }
 0x5ee   :  { %7188 = vsyncpa [#allocation9], 1 }

</bundles_post_ra>
